<compile_context>
chip_gen: v6e
topology: v6e:2x2x1
jax: 0.10.0
libtpu: 0.0.40
codegen_flags: <defaults>
</compile_context>

<pallas_src>
import functools
import math

import jax
import jax.numpy as jnp
from jax.experimental import pallas as pl
from jax.experimental.pallas import tpu as pltpu

# ----------------------------- config ---------------------------------------
D_MODEL = 128        # stand-in for model.config.hidden_size (lane-dense)
Z_DIM = 128          # stand-in for z_dim=768                (lane-dense)
VOCAB = 128          # stand-in for model.config.vocab_size  (lane-dense)
N_LAYERS = 2
D_FF = 4 * D_MODEL
MAX_T = 32
NEG_INF = -1e9
LN_EPS = 1e-5
F32_MIN = float(jnp.finfo(jnp.float32).min)

# packed per-layer vector params "vec": [L, 6, D], rows are
# 0 ln1_g, 1 ln1_b, 2 bo, 3 ln2_g, 4 ln2_b, 5 b2
# qkv biases are packed separately as bqkv: [L, 3D]


# ----------------------------- fused kernel ---------------------------------
def _fused_forward_kernel(
        ids_ref,           # [1, R, 1]    int32  enc ids ++ dec ids (column layout)
        mask_enc_ref,      # [1, 1, S]    f32    encoder mask (lane layout)
        mask_enc_col_ref,  # [1, S, 1]    f32    encoder mask (column layout, VAE)
        mask_dec_ref,      # [1, 1, T]    f32    decoder mask ([1, prefix, input, 0-pad])
        noise_ref,         # [1, 1, Z]    f32    N(0,1) noise for vae.sample
        embed_ref,         # [V, D]       bf16   input embedding table
        pos_ref,           # [MAX_T, D]   f32    learned positions (stand-in)
        lm_ref,            # [D, V]       bf16   lm_head pre-transposed: logits = h @ lm
        wqkv_ref,          # [L, D, 3D]   bf16   fused q/k/v weights ([in, out])
        wo_ref,            # [L, D, D]    bf16
        w1_ref,            # [L, D, F]    bf16
        w2_ref,            # [L, F, D]    bf16
        vec_ref,           # [L, 6, D]    f32    packed ln/bias vectors
        bqkv_ref,          # [L, 3D]      f32
        b1_ref,            # [L, F]       f32
        f_w_ref,           # [1, D]       f32    VAE f.weight
        f_b_ref,           # [1, 1]       f32    VAE f.bias
        we_ref,            # [D, Z]       f32    VAE w_e.weight^T (pre-transposed)
        we_b_ref,          # [1, Z]       f32
        wd_ref,            # [Z, D]       f32    VAE w_d.weight^T (pre-transposed)
        wd_b_ref,          # [1, D]       f32
        logits_ref,        # [1, T, V]
        hid_ref,           # [1, T, D]
        mean_ref,          # [1, 1, Z]
        *, tau):
    f32 = jnp.float32
    bf16 = jnp.bfloat16
    S = mask_enc_ref.shape[2]
    T = mask_dec_ref.shape[2]            # padded decoder length (mult. of 8)
    R = ids_ref.shape[1]                 # S + T
    V, D = embed_ref.shape
    L = wqkv_ref.shape[0]
    scale = 1.0 / math.sqrt(D)
    tau_sqrt = math.sqrt(tau)

    # ---- 0) fused one-hot embedding of encoder + decoder token streams ------
    # TODO(synk): at a real 32k vocab this should become a scalar-prefetch /
    # DMA row gather instead of a one-hot contraction over V.
    ids_col = ids_ref[0]                                              # [R, 1]
    iota_v = jax.lax.broadcasted_iota(jnp.int32, (R, V), 1)
    onehot = (iota_v == ids_col).astype(f32).astype(bf16)
    emb_all = jnp.dot(onehot, embed_ref[...], preferred_element_type=f32)
    emb_enc = emb_all[0:S]                                            # [S, D]
    emb_dec = emb_all[S:S + T]                                        # [T, D]

    # ---- helpers -------------------------------------------------------------
    def layernorm(h, g, b):
        # two independent cross-lane reductions; var = E[x^2] - mu^2
        s1 = jnp.sum(h, axis=-1, keepdims=True)
        s2 = jnp.sum(h * h, axis=-1, keepdims=True)
        mu = s1 * (1.0 / D)
        var = s2 * (1.0 / D) - mu * mu
        return (h - mu) * jax.lax.rsqrt(var + LN_EPS) * g + b

    def run_layers(x, bias):
        # x: [T', D] per-example hidden state; bias broadcastable to [T', T'].
        # TODO(synk): real Mistral uses RMSNorm + rotary + GQA + LoRA adapters;
        # replaced here by a plain pre-LN single-head block stand-in.
        for l in range(L):
            vec = vec_ref[l]                              # [6, D]
            ln1_g, ln1_b = vec[0:1], vec[1:2]
            bo, ln2_g, ln2_b, b2 = vec[2:3], vec[3:4], vec[4:5], vec[5:6]
            bqkv = bqkv_ref[l:l + 1]                      # [1, 3D]
            b1 = b1_ref[l:l + 1]                          # [1, F]

            h = layernorm(x, ln1_g, ln1_b)
            qkv = jnp.dot(h.astype(bf16), wqkv_ref[l],
                          preferred_element_type=f32) + bqkv
            q, k, v = qkv[:, 0:D], qkv[:, D:2 * D], qkv[:, 2 * D:3 * D]
            s = jax.lax.dot_general(q.astype(bf16), k.astype(bf16),
                                    (((1,), (1,)), ((), ())),
                                    preferred_element_type=f32) * scale
            s = s + bias
            s = s - jnp.max(s, axis=-1, keepdims=True)
            p = jnp.exp(s)
            attn = p * pl.reciprocal(jnp.sum(p, axis=-1, keepdims=True),
                                     approx=True)
            ctx = jnp.dot(attn.astype(bf16), v.astype(bf16),
                          preferred_element_type=f32)
            x = x + jnp.dot(ctx.astype(bf16), wo_ref[l],
                            preferred_element_type=f32) + bo
            h2 = layernorm(x, ln2_g, ln2_b)
            ff = jnp.dot(h2.astype(bf16), w1_ref[l],
                         preferred_element_type=f32) + b1
            # TODO(synk): torch nn.GELU defaults to exact erf; tanh approx here.
            ff = jax.nn.gelu(ff)
            x = x + jnp.dot(ff.astype(bf16), w2_ref[l],
                            preferred_element_type=f32) + b2
        # TODO(synk): HF models apply a final norm before lm_head; omitted here.
        return x

    # ---- 1) encoder pass (causal mask disabled; key-padding mask only) ------
    mask_enc = mask_enc_ref[0]                                        # [1, S]
    enc_bias = jnp.where(mask_enc > 0.0, 0.0, NEG_INF)                # [1, S]
    enc_h = run_layers(emb_enc + pos_ref[0:S], enc_bias)              # [S, D]

    # ---- 2) VAE encode: score + log(mask) -> softmax(seq) -> pool -> w_e ----
    sc = jnp.sum(enc_h * f_w_ref[...], axis=-1, keepdims=True) + f_b_ref[...]
    # nan_to_num on log of a {0,1} mask: only -inf -> F32_MIN can occur.
    logm = jnp.maximum(jnp.log(mask_enc_col_ref[0]), F32_MIN)         # [S, 1]
    sc = sc + logm
    sc = sc - jnp.max(sc, axis=0, keepdims=True)
    e = jnp.exp(sc)
    w = e * pl.reciprocal(jnp.sum(e, axis=0, keepdims=True), approx=True)
    pooled = jnp.sum(enc_h * w, axis=0, keepdims=True)                # [1, D]
    mean = jnp.dot(pooled, we_ref[...], preferred_element_type=f32) + we_b_ref[...]
    mean_ref[0] = mean

    # ---- 3) sample + decode latent -------------------------------------------
    z = mean + noise_ref[0] * tau_sqrt                                # [1, Z]
    z_embed = jnp.dot(z, wd_ref[...], preferred_element_type=f32) + wd_b_ref[...]

    # ---- 4) decoder pass: row 0 <- z_embed, causal + padding mask ------------
    row_d = jax.lax.broadcasted_iota(jnp.int32, (T, D), 0)
    dec_x = jnp.where(row_d == 0, z_embed, emb_dec) + pos_ref[0:T]
    ri = jax.lax.broadcasted_iota(jnp.int32, (T, T), 0)
    ci = jax.lax.broadcasted_iota(jnp.int32, (T, T), 1)
    mask_dec = mask_dec_ref[0]                                        # [1, T]
    dec_bias = jnp.where(jnp.logical_and(ri >= ci, mask_dec > 0.0), 0.0, NEG_INF)
    dec_h = run_layers(dec_x, dec_bias)                               # [T, D]

    # ---- 5) lm_head + output writes ------------------------------------------
    logits = jnp.dot(dec_h.astype(bf16), lm_ref[...],
                     preferred_element_type=f32)                      # [T, V]
    hid_ref[0] = dec_h
    logits_ref[0] = logits


# ----------------------------- wrapper ---------------------------------------
def forward(params, input_ids, attention_mask, decoder_prefix_ids,
            decoder_prefix_mask, noise_key, tau=1.0):
    """Whole DecoderOnlyTransformerVAE.forward in one fused pallas_call."""
    f32, bf16 = jnp.float32, jnp.bfloat16
    B, S = input_ids.shape
    P = decoder_prefix_ids.shape[1]
    T_dec = 1 + P + S
    T_pad = ((T_dec + 7) // 8) * 8            # sublane-aligned decoder length
    assert T_pad <= MAX_T and S % 8 == 0      # keep all slices (8,128)-aligned
    pad = T_pad - T_dec
    R = S + T_pad

    ids_all = jnp.concatenate([decoder_prefix_ids, input_ids],
                              axis=1).astype(jnp.int32)
    # decoder token stream: [dummy(z slot), prefix, input, 0-pad]  (len T_pad)
    ids_dec = jnp.concatenate(
        [jnp.zeros((B, 1), jnp.int32), ids_all, jnp.zeros((B, pad), jnp.int32)],
        axis=1)
    ids_col = jnp.concatenate([input_ids.astype(jnp.int32), ids_dec],
                              axis=1).reshape(B, R, 1)

    mask_enc = attention_mask.astype(f32)
    mask_enc_row = mask_enc.reshape(B, 1, S)
    mask_enc_col = mask_enc.reshape(B, S, 1)
    mask_all = jnp.concatenate([decoder_prefix_mask, attention_mask],
                               axis=1).astype(f32)
    mask_dec = jnp.concatenate(
        [jnp.ones((B, 1), f32), mask_all, jnp.zeros((B, pad), f32)],
        axis=1).reshape(B, 1, T_pad)
    noise = jax.random.normal(noise_key, (B, 1, Z_DIM), dtype=f32)

    # one-time weight prep outside the kernel: QKV fusion, transposes, bf16 cast
    embed_b = params["embed"].astype(bf16)
    lm_T = jnp.transpose(params["lm_head"]).astype(bf16)              # [D, V]
    wqkv = jnp.concatenate([params["wq"], params["wk"], params["wv"]],
                           axis=2).astype(bf16)                       # [L, D, 3D]
    wo_b = params["wo"].astype(bf16)
    w1_b = params["w1"].astype(bf16)
    w2_b = params["w2"].astype(bf16)
    vae = params["vae"]
    we_T = jnp.transpose(vae["we_w"])                                 # [D, Z]
    wd_T = jnp.transpose(vae["wd_w"])                                 # [Z, D]

    per3 = lambda b: (b, 0, 0)
    const3 = lambda b: (0, 0, 0)
    const2 = lambda b: (0, 0)

    kernel = functools.partial(_fused_forward_kernel, tau=float(tau))
    logits_p, hid_p, mean_p = pl.pallas_call(
        kernel,
        grid=(B,),
        in_specs=[
            pl.BlockSpec((1, R, 1), per3),                       # ids
            pl.BlockSpec((1, 1, S), per3),                       # mask_enc row
            pl.BlockSpec((1, S, 1), per3),                       # mask_enc col
            pl.BlockSpec((1, 1, T_pad), per3),                   # mask_dec
            pl.BlockSpec((1, 1, Z_DIM), per3),                   # noise
            pl.BlockSpec((VOCAB, D_MODEL), const2),              # embed
            pl.BlockSpec((MAX_T, D_MODEL), const2),              # pos
            pl.BlockSpec((D_MODEL, VOCAB), const2),              # lm_head^T
            pl.BlockSpec((N_LAYERS, D_MODEL, 3 * D_MODEL), const3),   # wqkv
            pl.BlockSpec((N_LAYERS, D_MODEL, D_MODEL), const3),       # wo
            pl.BlockSpec((N_LAYERS, D_MODEL, D_FF), const3),          # w1
            pl.BlockSpec((N_LAYERS, D_FF, D_MODEL), const3),          # w2
            pl.BlockSpec((N_LAYERS, 6, D_MODEL), const3),             # vec
            pl.BlockSpec((N_LAYERS, 3 * D_MODEL), const2),            # bqkv
            pl.BlockSpec((N_LAYERS, D_FF), const2),                   # b1
            pl.BlockSpec((1, D_MODEL), const2),                       # f_w
            pl.BlockSpec((1, 1), const2),                             # f_b
            pl.BlockSpec((D_MODEL, Z_DIM), const2),                   # we^T
            pl.BlockSpec((1, Z_DIM), const2),                         # we_b
            pl.BlockSpec((Z_DIM, D_MODEL), const2),                   # wd^T
            pl.BlockSpec((1, D_MODEL), const2),                       # wd_b
        ],
        out_specs=(
            pl.BlockSpec((1, T_pad, VOCAB), per3),
            pl.BlockSpec((1, T_pad, D_MODEL), per3),
            pl.BlockSpec((1, 1, Z_DIM), per3),
        ),
        out_shape=(
            jax.ShapeDtypeStruct((B, T_pad, VOCAB), f32),
            jax.ShapeDtypeStruct((B, T_pad, D_MODEL), f32),
            jax.ShapeDtypeStruct((B, 1, Z_DIM), f32),
        ),
        compiler_params=pltpu.CompilerParams(
            dimension_semantics=("parallel",)),
    )(ids_col, mask_enc_row, mask_enc_col, mask_dec, noise,
      embed_b, params["pos"], lm_T,
      wqkv, wo_b, w1_b, w2_b, params["vec"], params["bqkv"], params["b1"],
      vae["f_w"], vae["f_b"], we_T, vae["we_b"], wd_T, vae["wd_b"])

    # drop the sublane padding; outputs ~ (logits, last hidden_states), plus mean
    return logits_p[:, :T_dec], hid_p[:, :T_dec], mean_p[:, 0]


# ----------------------------- parameters ------------------------------------
def init_params(key):
    keys = iter(jax.random.split(key, 16))

    def nrm(shape, scale=0.02):
        return (scale * jax.random.normal(next(keys), shape)).astype(jnp.float32)

    vec = jnp.zeros((N_LAYERS, 6, D_MODEL), jnp.float32)
    vec = vec.at[:, 0, :].set(1.0).at[:, 3, :].set(1.0)   # layernorm gains = 1

    params = {
        "embed": nrm((VOCAB, D_MODEL)),
        "pos": nrm((MAX_T, D_MODEL)),
        "lm_head": nrm((VOCAB, D_MODEL)),                  # torch [out, in]
        # per-layer weights stacked over layers ([in, out] convention)
        "wq": nrm((N_LAYERS, D_MODEL, D_MODEL)),
        "wk": nrm((N_LAYERS, D_MODEL, D_MODEL)),
        "wv": nrm((N_LAYERS, D_MODEL, D_MODEL)),
        "wo": nrm((N_LAYERS, D_MODEL, D_MODEL)),
        "w1": nrm((N_LAYERS, D_MODEL, D_FF)),
        "w2": nrm((N_LAYERS, D_FF, D_MODEL)),
        "vec": vec,
        "bqkv": jnp.zeros((N_LAYERS, 3 * D_MODEL), jnp.float32),
        "b1": jnp.zeros((N_LAYERS, D_FF), jnp.float32),
    }
    # VAEComponent: f, w_e (orthogonal rows), w_d.weight = w_e.weight.T
    f_w = nrm((1, D_MODEL))
    a = jax.random.normal(next(keys), (D_MODEL, Z_DIM))
    q, _ = jnp.linalg.qr(a)
    we_w = q.T.astype(jnp.float32)                 # [Z, D]  (nn.init.orthogonal_)
    wd_w = jnp.transpose(we_w)                     # [D, Z]  (w_d.weight = w_e.weight.T)
    params["vae"] = {"f_w": f_w, "f_b": jnp.zeros((1, 1), jnp.float32),
                     "we_w": we_w, "we_b": jnp.zeros((1, Z_DIM), jnp.float32),
                     "wd_w": wd_w, "wd_b": jnp.zeros((1, D_MODEL), jnp.float32)}
    return params


# ----------------------------- main -------------------------------------------
if __name__ == "__main__":
    key = jax.random.PRNGKey(0)
    pkey, dkey, nkey = jax.random.split(key, 3)
    params = init_params(pkey)

    B, S, P = 2, 8, 4
    k1, k2 = jax.random.split(dkey)
    input_ids = jax.random.randint(k1, (B, S), 0, VOCAB, dtype=jnp.int32)
    decoder_prefix_ids = jax.random.randint(k2, (B, P), 0, VOCAB, dtype=jnp.int32)
    attention_mask = jnp.ones((B, S), jnp.float32).at[1, 6:].set(0.0)
    decoder_prefix_mask = jnp.ones((B, P), jnp.float32)

    logits, hidden, mean = forward(params, input_ids, attention_mask,
                                   decoder_prefix_ids, decoder_prefix_mask, nkey)
    jax.block_until_ready((logits, hidden, mean))

    T = 1 + P + S
    assert logits.shape == (B, T, VOCAB)
    assert hidden.shape == (B, T, D_MODEL)
    assert mean.shape == (B, Z_DIM)
    assert bool(jnp.all(jnp.isfinite(logits)))
    assert bool(jnp.all(jnp.isfinite(hidden)))
    assert bool(jnp.all(jnp.isfinite(mean)))
    print("KERNEL_OK")
</pallas_src>

<mosaic_0001>
module attributes {stable_mosaic.version = 11 : i64} {
  func.func @_fused_forward_kernel(%arg0: i32, %arg1: memref<1x24x1xi32, #tpu.memory_space<vmem>>, %arg2: memref<1x1x8xf32, #tpu.memory_space<vmem>>, %arg3: memref<1x8x1xf32, #tpu.memory_space<vmem>>, %arg4: memref<1x1x16xf32, #tpu.memory_space<vmem>>, %arg5: memref<1x1x128xf32, #tpu.memory_space<vmem>>, %arg6: memref<128x128xbf16, #tpu.memory_space<vmem>>, %arg7: memref<32x128xf32, #tpu.memory_space<vmem>>, %arg8: memref<128x128xbf16, #tpu.memory_space<vmem>>, %arg9: memref<2x128x384xbf16, #tpu.memory_space<vmem>>, %arg10: memref<2x128x128xbf16, #tpu.memory_space<vmem>>, %arg11: memref<2x128x512xbf16, #tpu.memory_space<vmem>>, %arg12: memref<2x512x128xbf16, #tpu.memory_space<vmem>>, %arg13: memref<2x6x128xf32, #tpu.memory_space<vmem>>, %arg14: memref<2x384xf32, #tpu.memory_space<vmem>>, %arg15: memref<2x512xf32, #tpu.memory_space<vmem>>, %arg16: memref<1x128xf32, #tpu.memory_space<vmem>>, %arg17: memref<1x1xf32, #tpu.memory_space<vmem>>, %arg18: memref<128x128xf32, #tpu.memory_space<vmem>>, %arg19: memref<1x128xf32, #tpu.memory_space<vmem>>, %arg20: memref<128x128xf32, #tpu.memory_space<vmem>>, %arg21: memref<1x128xf32, #tpu.memory_space<vmem>>, %arg22: memref<1x16x128xf32, #tpu.memory_space<vmem>>, %arg23: memref<1x16x128xf32, #tpu.memory_space<vmem>>, %arg24: memref<1x1x128xf32, #tpu.memory_space<vmem>>) attributes {dimension_semantics = [#tpu.dimension_semantics<parallel>], iteration_bounds = array<i64: 2>, scalar_prefetch = 0 : i64, scratch_operands = 0 : i64, tpu.core_type = #tpu.core_type<tc>, window_params = [{transform_indices = @transform_0, window_bounds = array<i64: 1, 24, 1>}, {transform_indices = @transform_1, window_bounds = array<i64: 1, 1, 8>}, {transform_indices = @transform_2, window_bounds = array<i64: 1, 8, 1>}, {transform_indices = @transform_3, window_bounds = array<i64: 1, 1, 16>}, {transform_indices = @transform_4, window_bounds = array<i64: 1, 1, 128>}, {pipeline_mode = #tpu.pipeline_mode<synchronous>, transform_indices = @transform_5, window_bounds = array<i64: 128, 128>}, {pipeline_mode = #tpu.pipeline_mode<synchronous>, transform_indices = @transform_6, window_bounds = array<i64: 32, 128>}, {pipeline_mode = #tpu.pipeline_mode<synchronous>, transform_indices = @transform_7, window_bounds = array<i64: 128, 128>}, {pipeline_mode = #tpu.pipeline_mode<synchronous>, transform_indices = @transform_8, window_bounds = array<i64: 2, 128, 384>}, {pipeline_mode = #tpu.pipeline_mode<synchronous>, transform_indices = @transform_9, window_bounds = array<i64: 2, 128, 128>}, {pipeline_mode = #tpu.pipeline_mode<synchronous>, transform_indices = @transform_10, window_bounds = array<i64: 2, 128, 512>}, {pipeline_mode = #tpu.pipeline_mode<synchronous>, transform_indices = @transform_11, window_bounds = array<i64: 2, 512, 128>}, {pipeline_mode = #tpu.pipeline_mode<synchronous>, transform_indices = @transform_12, window_bounds = array<i64: 2, 6, 128>}, {pipeline_mode = #tpu.pipeline_mode<synchronous>, transform_indices = @transform_13, window_bounds = array<i64: 2, 384>}, {pipeline_mode = #tpu.pipeline_mode<synchronous>, transform_indices = @transform_14, window_bounds = array<i64: 2, 512>}, {pipeline_mode = #tpu.pipeline_mode<synchronous>, transform_indices = @transform_15, window_bounds = array<i64: 1, 128>}, {pipeline_mode = #tpu.pipeline_mode<synchronous>, transform_indices = @transform_16, window_bounds = array<i64: 1, 1>}, {pipeline_mode = #tpu.pipeline_mode<synchronous>, transform_indices = @transform_17, window_bounds = array<i64: 128, 128>}, {pipeline_mode = #tpu.pipeline_mode<synchronous>, transform_indices = @transform_18, window_bounds = array<i64: 1, 128>}, {pipeline_mode = #tpu.pipeline_mode<synchronous>, transform_indices = @transform_19, window_bounds = array<i64: 128, 128>}, {pipeline_mode = #tpu.pipeline_mode<synchronous>, transform_indices = @transform_20, window_bounds = array<i64: 1, 128>}, {transform_indices = @transform_21, window_bounds = array<i64: 1, 16, 128>}, {transform_indices = @transform_22, window_bounds = array<i64: 1, 16, 128>}, {transform_indices = @transform_23, window_bounds = array<i64: 1, 1, 128>}]} {
    %c0 = arith.constant 0 : index
    %c0_0 = arith.constant 0 : index
    %c0_1 = arith.constant 0 : index
    %0 = vector.load %arg1[%c0, %c0_0, %c0_1] : memref<1x24x1xi32, #tpu.memory_space<vmem>>, vector<1x24x1xi32>
    %1 = vector.shape_cast %0 : vector<1x24x1xi32> to vector<24x1xi32>
    %2 = tpu.iota {dimensions = array<i32: 1>} : vector<24x128xi32>
    %3 = vector.broadcast %1 : vector<24x1xi32> to vector<24x128xi32>
    %4 = arith.cmpi eq, %2, %3 : vector<24x128xi32>
    %5 = arith.extui %4 : vector<24x128xi1> to vector<24x128xi32>
    %6 = arith.sitofp %5 : vector<24x128xi32> to vector<24x128xf32>
    %7 = arith.truncf %6 : vector<24x128xf32> to vector<24x128xbf16>
    %c0_2 = arith.constant 0 : index
    %c0_3 = arith.constant 0 : index
    %8 = vector.load %arg6[%c0_2, %c0_3] : memref<128x128xbf16, #tpu.memory_space<vmem>>, vector<128x128xbf16>
    %cst = arith.constant dense<0.000000e+00> : vector<24x128xf32>
    %9 = tpu.matmul %7, %8, %cst {dimension_numbers = #tpu.dot_dimension_numbers<[1], [0], [0], [1], [0, 0, 1, 1], [], []>} : vector<24x128xbf16>, vector<128x128xbf16>, vector<24x128xf32> -> vector<24x128xf32>
    %10 = vector.extract_strided_slice %9 {offsets = [0, 0], sizes = [8, 128], strides = [1, 1]} : vector<24x128xf32> to vector<8x128xf32>
    %11 = vector.extract_strided_slice %9 {offsets = [8, 0], sizes = [16, 128], strides = [1, 1]} : vector<24x128xf32> to vector<16x128xf32>
    %c0_4 = arith.constant 0 : index
    %c0_5 = arith.constant 0 : index
    %c0_6 = arith.constant 0 : index
    %12 = vector.load %arg2[%c0_4, %c0_5, %c0_6] : memref<1x1x8xf32, #tpu.memory_space<vmem>>, vector<1x1x8xf32>
    %13 = vector.shape_cast %12 : vector<1x1x8xf32> to vector<1x8xf32>
    %cst_7 = arith.constant 0.000000e+00 : f32
    %14 = vector.broadcast %cst_7 : f32 to vector<1x8xf32>
    %15 = arith.cmpf ogt, %13, %14 : vector<1x8xf32>
    %cst_8 = arith.constant 0.000000e+00 : f32
    %cst_9 = arith.constant -1.000000e+09 : f32
    %16 = vector.broadcast %cst_8 : f32 to vector<1x8xf32>
    %17 = vector.broadcast %cst_9 : f32 to vector<1x8xf32>
    %18 = arith.select %15, %16, %17 : vector<1x8xi1>, vector<1x8xf32>
    %c0_10 = arith.constant 0 : index
    %c0_11 = arith.constant 0 : index
    %19 = vector.load %arg7[%c0_10, %c0_11] : memref<32x128xf32, #tpu.memory_space<vmem>>, vector<8x128xf32>
    %20 = arith.addf %10, %19 : vector<8x128xf32>
    %c0_12 = arith.constant 0 : index
    %c0_13 = arith.constant 0 : index
    %c0_14 = arith.constant 0 : index
    %21 = vector.load %arg13[%c0_12, %c0_13, %c0_14] : memref<2x6x128xf32, #tpu.memory_space<vmem>>, vector<1x6x128xf32>
    %22 = vector.shape_cast %21 : vector<1x6x128xf32> to vector<6x128xf32>
    %23 = vector.extract_strided_slice %22 {offsets = [0, 0], sizes = [1, 128], strides = [1, 1]} : vector<6x128xf32> to vector<1x128xf32>
    %24 = vector.extract_strided_slice %22 {offsets = [1, 0], sizes = [1, 128], strides = [1, 1]} : vector<6x128xf32> to vector<1x128xf32>
    %25 = vector.extract_strided_slice %22 {offsets = [2, 0], sizes = [1, 128], strides = [1, 1]} : vector<6x128xf32> to vector<1x128xf32>
    %26 = vector.extract_strided_slice %22 {offsets = [3, 0], sizes = [1, 128], strides = [1, 1]} : vector<6x128xf32> to vector<1x128xf32>
    %27 = vector.extract_strided_slice %22 {offsets = [4, 0], sizes = [1, 128], strides = [1, 1]} : vector<6x128xf32> to vector<1x128xf32>
    %28 = vector.extract_strided_slice %22 {offsets = [5, 0], sizes = [1, 128], strides = [1, 1]} : vector<6x128xf32> to vector<1x128xf32>
    %c0_15 = arith.constant 0 : index
    %c0_16 = arith.constant 0 : index
    %29 = vector.load %arg14[%c0_15, %c0_16] : memref<2x384xf32, #tpu.memory_space<vmem>>, vector<1x384xf32>
    %c0_17 = arith.constant 0 : index
    %c0_18 = arith.constant 0 : index
    %30 = vector.load %arg15[%c0_17, %c0_18] : memref<2x512xf32, #tpu.memory_space<vmem>>, vector<1x512xf32>
    %cst_19 = arith.constant dense<0.000000e+00> : vector<8xf32>
    %31 = vector.multi_reduction <add>, %20, %cst_19 [1] : vector<8x128xf32> to vector<8xf32>
    %32 = vector.shape_cast %31 : vector<8xf32> to vector<8x1xf32>
    %33 = arith.mulf %20, %20 : vector<8x128xf32>
    %cst_20 = arith.constant dense<0.000000e+00> : vector<8xf32>
    %34 = vector.multi_reduction <add>, %33, %cst_20 [1] : vector<8x128xf32> to vector<8xf32>
    %35 = vector.shape_cast %34 : vector<8xf32> to vector<8x1xf32>
    %cst_21 = arith.constant 7.812500e-03 : f32
    %36 = vector.broadcast %cst_21 : f32 to vector<8x1xf32>
    %37 = arith.mulf %32, %36 : vector<8x1xf32>
    %cst_22 = arith.constant 7.812500e-03 : f32
    %38 = vector.broadcast %cst_22 : f32 to vector<8x1xf32>
    %39 = arith.mulf %35, %38 : vector<8x1xf32>
    %40 = arith.mulf %37, %37 : vector<8x1xf32>
    %41 = arith.subf %39, %40 : vector<8x1xf32>
    %42 = vector.broadcast %37 : vector<8x1xf32> to vector<8x128xf32>
    %43 = arith.subf %20, %42 : vector<8x128xf32>
    %cst_23 = arith.constant 9.99999974E-6 : f32
    %44 = vector.broadcast %cst_23 : f32 to vector<8x1xf32>
    %45 = arith.addf %41, %44 : vector<8x1xf32>
    %46 = math.rsqrt %45 : vector<8x1xf32>
    %47 = vector.broadcast %46 : vector<8x1xf32> to vector<8x128xf32>
    %48 = arith.mulf %43, %47 : vector<8x128xf32>
    %49 = vector.broadcast %23 : vector<1x128xf32> to vector<8x128xf32>
    %50 = arith.mulf %48, %49 : vector<8x128xf32>
    %51 = vector.broadcast %24 : vector<1x128xf32> to vector<8x128xf32>
    %52 = arith.addf %50, %51 : vector<8x128xf32>
    %53 = arith.truncf %52 : vector<8x128xf32> to vector<8x128xbf16>
    %c0_24 = arith.constant 0 : index
    %c0_25 = arith.constant 0 : index
    %c0_26 = arith.constant 0 : index
    %54 = vector.load %arg9[%c0_24, %c0_25, %c0_26] : memref<2x128x384xbf16, #tpu.memory_space<vmem>>, vector<1x128x384xbf16>
    %55 = vector.shape_cast %54 : vector<1x128x384xbf16> to vector<128x384xbf16>
    %cst_27 = arith.constant dense<0.000000e+00> : vector<8x384xf32>
    %56 = tpu.matmul %53, %55, %cst_27 {dimension_numbers = #tpu.dot_dimension_numbers<[1], [0], [0], [1], [0, 0, 1, 1], [], []>} : vector<8x128xbf16>, vector<128x384xbf16>, vector<8x384xf32> -> vector<8x384xf32>
    %57 = vector.broadcast %29 : vector<1x384xf32> to vector<8x384xf32>
    %58 = arith.addf %56, %57 : vector<8x384xf32>
    %59 = vector.extract_strided_slice %58 {offsets = [0, 0], sizes = [8, 128], strides = [1, 1]} : vector<8x384xf32> to vector<8x128xf32>
    %60 = vector.extract_strided_slice %58 {offsets = [0, 128], sizes = [8, 128], strides = [1, 1]} : vector<8x384xf32> to vector<8x128xf32>
    %61 = vector.extract_strided_slice %58 {offsets = [0, 256], sizes = [8, 128], strides = [1, 1]} : vector<8x384xf32> to vector<8x128xf32>
    %62 = arith.truncf %59 : vector<8x128xf32> to vector<8x128xbf16>
    %63 = arith.truncf %60 : vector<8x128xf32> to vector<8x128xbf16>
    %cst_28 = arith.constant dense<0.000000e+00> : vector<8x8xf32>
    %64 = tpu.matmul %62, %63, %cst_28 {dimension_numbers = #tpu.dot_dimension_numbers<[1], [1], [0], [0], [0, 0, 1, 0], [], []>} : vector<8x128xbf16>, vector<8x128xbf16>, vector<8x8xf32> -> vector<8x8xf32>
    %cst_29 = arith.constant 0.0883883461 : f32
    %65 = vector.broadcast %cst_29 : f32 to vector<8x8xf32>
    %66 = arith.mulf %64, %65 : vector<8x8xf32>
    %67 = vector.broadcast %18 : vector<1x8xf32> to vector<8x8xf32>
    %68 = arith.addf %66, %67 : vector<8x8xf32>
    %cst_30 = arith.constant dense<0xFF800000> : vector<8xf32>
    %69 = vector.multi_reduction <maximumf>, %68, %cst_30 [1] : vector<8x8xf32> to vector<8xf32>
    %70 = vector.shape_cast %69 : vector<8xf32> to vector<8x1xf32>
    %71 = vector.broadcast %70 : vector<8x1xf32> to vector<8x8xf32>
    %72 = arith.subf %68, %71 : vector<8x8xf32>
    %73 = math.exp %72 : vector<8x8xf32>
    %cst_31 = arith.constant dense<0.000000e+00> : vector<8xf32>
    %74 = vector.multi_reduction <add>, %73, %cst_31 [1] : vector<8x8xf32> to vector<8xf32>
    %75 = vector.shape_cast %74 : vector<8xf32> to vector<8x1xf32>
    %76 = tpu.reciprocal %75 {approx = true} : vector<8x1xf32> -> vector<8x1xf32>
    %77 = vector.broadcast %76 : vector<8x1xf32> to vector<8x8xf32>
    %78 = arith.mulf %73, %77 : vector<8x8xf32>
    %79 = arith.truncf %78 : vector<8x8xf32> to vector<8x8xbf16>
    %80 = arith.truncf %61 : vector<8x128xf32> to vector<8x128xbf16>
    %cst_32 = arith.constant dense<0.000000e+00> : vector<8x128xf32>
    %81 = tpu.matmul %79, %80, %cst_32 {dimension_numbers = #tpu.dot_dimension_numbers<[1], [0], [0], [1], [0, 0, 1, 1], [], []>} : vector<8x8xbf16>, vector<8x128xbf16>, vector<8x128xf32> -> vector<8x128xf32>
    %82 = arith.truncf %81 : vector<8x128xf32> to vector<8x128xbf16>
    %c0_33 = arith.constant 0 : index
    %c0_34 = arith.constant 0 : index
    %c0_35 = arith.constant 0 : index
    %83 = vector.load %arg10[%c0_33, %c0_34, %c0_35] : memref<2x128x128xbf16, #tpu.memory_space<vmem>>, vector<1x128x128xbf16>
    %84 = vector.shape_cast %83 : vector<1x128x128xbf16> to vector<128x128xbf16>
    %cst_36 = arith.constant dense<0.000000e+00> : vector<8x128xf32>
    %85 = tpu.matmul %82, %84, %cst_36 {dimension_numbers = #tpu.dot_dimension_numbers<[1], [0], [0], [1], [0, 0, 1, 1], [], []>} : vector<8x128xbf16>, vector<128x128xbf16>, vector<8x128xf32> -> vector<8x128xf32>
    %86 = arith.addf %20, %85 : vector<8x128xf32>
    %87 = vector.broadcast %25 : vector<1x128xf32> to vector<8x128xf32>
    %88 = arith.addf %86, %87 : vector<8x128xf32>
    %cst_37 = arith.constant dense<0.000000e+00> : vector<8xf32>
    %89 = vector.multi_reduction <add>, %88, %cst_37 [1] : vector<8x128xf32> to vector<8xf32>
    %90 = vector.shape_cast %89 : vector<8xf32> to vector<8x1xf32>
    %91 = arith.mulf %88, %88 : vector<8x128xf32>
    %cst_38 = arith.constant dense<0.000000e+00> : vector<8xf32>
    %92 = vector.multi_reduction <add>, %91, %cst_38 [1] : vector<8x128xf32> to vector<8xf32>
    %93 = vector.shape_cast %92 : vector<8xf32> to vector<8x1xf32>
    %cst_39 = arith.constant 7.812500e-03 : f32
    %94 = vector.broadcast %cst_39 : f32 to vector<8x1xf32>
    %95 = arith.mulf %90, %94 : vector<8x1xf32>
    %cst_40 = arith.constant 7.812500e-03 : f32
    %96 = vector.broadcast %cst_40 : f32 to vector<8x1xf32>
    %97 = arith.mulf %93, %96 : vector<8x1xf32>
    %98 = arith.mulf %95, %95 : vector<8x1xf32>
    %99 = arith.subf %97, %98 : vector<8x1xf32>
    %100 = vector.broadcast %95 : vector<8x1xf32> to vector<8x128xf32>
    %101 = arith.subf %88, %100 : vector<8x128xf32>
    %cst_41 = arith.constant 9.99999974E-6 : f32
    %102 = vector.broadcast %cst_41 : f32 to vector<8x1xf32>
    %103 = arith.addf %99, %102 : vector<8x1xf32>
    %104 = math.rsqrt %103 : vector<8x1xf32>
    %105 = vector.broadcast %104 : vector<8x1xf32> to vector<8x128xf32>
    %106 = arith.mulf %101, %105 : vector<8x128xf32>
    %107 = vector.broadcast %26 : vector<1x128xf32> to vector<8x128xf32>
    %108 = arith.mulf %106, %107 : vector<8x128xf32>
    %109 = vector.broadcast %27 : vector<1x128xf32> to vector<8x128xf32>
    %110 = arith.addf %108, %109 : vector<8x128xf32>
    %111 = arith.truncf %110 : vector<8x128xf32> to vector<8x128xbf16>
    %c0_42 = arith.constant 0 : index
    %c0_43 = arith.constant 0 : index
    %c0_44 = arith.constant 0 : index
    %112 = vector.load %arg11[%c0_42, %c0_43, %c0_44] : memref<2x128x512xbf16, #tpu.memory_space<vmem>>, vector<1x128x512xbf16>
    %113 = vector.shape_cast %112 : vector<1x128x512xbf16> to vector<128x512xbf16>
    %cst_45 = arith.constant dense<0.000000e+00> : vector<8x512xf32>
    %114 = tpu.matmul %111, %113, %cst_45 {dimension_numbers = #tpu.dot_dimension_numbers<[1], [0], [0], [1], [0, 0, 1, 1], [], []>} : vector<8x128xbf16>, vector<128x512xbf16>, vector<8x512xf32> -> vector<8x512xf32>
    %115 = vector.broadcast %30 : vector<1x512xf32> to vector<8x512xf32>
    %116 = arith.addf %114, %115 : vector<8x512xf32>
    %117 = arith.mulf %116, %116 : vector<8x512xf32>
    %118 = arith.mulf %116, %117 : vector<8x512xf32>
    %cst_46 = arith.constant 4.471500e-02 : f32
    %119 = vector.broadcast %cst_46 : f32 to vector<8x512xf32>
    %120 = arith.mulf %119, %118 : vector<8x512xf32>
    %121 = arith.addf %116, %120 : vector<8x512xf32>
    %cst_47 = arith.constant 0.797884583 : f32
    %122 = vector.broadcast %cst_47 : f32 to vector<8x512xf32>
    %123 = arith.mulf %122, %121 : vector<8x512xf32>
    %124 = math.tanh %123 : vector<8x512xf32>
    %cst_48 = arith.constant 1.000000e+00 : f32
    %125 = vector.broadcast %cst_48 : f32 to vector<8x512xf32>
    %126 = arith.addf %125, %124 : vector<8x512xf32>
    %cst_49 = arith.constant 5.000000e-01 : f32
    %127 = vector.broadcast %cst_49 : f32 to vector<8x512xf32>
    %128 = arith.mulf %127, %126 : vector<8x512xf32>
    %129 = arith.mulf %116, %128 : vector<8x512xf32>
    %130 = arith.truncf %129 : vector<8x512xf32> to vector<8x512xbf16>
    %c0_50 = arith.constant 0 : index
    %c0_51 = arith.constant 0 : index
    %c0_52 = arith.constant 0 : index
    %131 = vector.load %arg12[%c0_50, %c0_51, %c0_52] : memref<2x512x128xbf16, #tpu.memory_space<vmem>>, vector<1x512x128xbf16>
    %132 = vector.shape_cast %131 : vector<1x512x128xbf16> to vector<512x128xbf16>
    %cst_53 = arith.constant dense<0.000000e+00> : vector<8x128xf32>
    %133 = tpu.matmul %130, %132, %cst_53 {dimension_numbers = #tpu.dot_dimension_numbers<[1], [0], [0], [1], [0, 0, 1, 1], [], []>} : vector<8x512xbf16>, vector<512x128xbf16>, vector<8x128xf32> -> vector<8x128xf32>
    %134 = arith.addf %88, %133 : vector<8x128xf32>
    %135 = vector.broadcast %28 : vector<1x128xf32> to vector<8x128xf32>
    %136 = arith.addf %134, %135 : vector<8x128xf32>
    %c1 = arith.constant 1 : index
    %c0_54 = arith.constant 0 : index
    %c0_55 = arith.constant 0 : index
    %137 = vector.load %arg13[%c1, %c0_54, %c0_55] : memref<2x6x128xf32, #tpu.memory_space<vmem>>, vector<1x6x128xf32>
    %138 = vector.shape_cast %137 : vector<1x6x128xf32> to vector<6x128xf32>
    %139 = vector.extract_strided_slice %138 {offsets = [0, 0], sizes = [1, 128], strides = [1, 1]} : vector<6x128xf32> to vector<1x128xf32>
    %140 = vector.extract_strided_slice %138 {offsets = [1, 0], sizes = [1, 128], strides = [1, 1]} : vector<6x128xf32> to vector<1x128xf32>
    %141 = vector.extract_strided_slice %138 {offsets = [2, 0], sizes = [1, 128], strides = [1, 1]} : vector<6x128xf32> to vector<1x128xf32>
    %142 = vector.extract_strided_slice %138 {offsets = [3, 0], sizes = [1, 128], strides = [1, 1]} : vector<6x128xf32> to vector<1x128xf32>
    %143 = vector.extract_strided_slice %138 {offsets = [4, 0], sizes = [1, 128], strides = [1, 1]} : vector<6x128xf32> to vector<1x128xf32>
    %144 = vector.extract_strided_slice %138 {offsets = [5, 0], sizes = [1, 128], strides = [1, 1]} : vector<6x128xf32> to vector<1x128xf32>
    %c1_56 = arith.constant 1 : index
    %c0_57 = arith.constant 0 : index
    %145 = vector.load %arg14[%c1_56, %c0_57] : memref<2x384xf32, #tpu.memory_space<vmem>>, vector<1x384xf32>
    %c1_58 = arith.constant 1 : index
    %c0_59 = arith.constant 0 : index
    %146 = vector.load %arg15[%c1_58, %c0_59] : memref<2x512xf32, #tpu.memory_space<vmem>>, vector<1x512xf32>
    %cst_60 = arith.constant dense<0.000000e+00> : vector<8xf32>
    %147 = vector.multi_reduction <add>, %136, %cst_60 [1] : vector<8x128xf32> to vector<8xf32>
    %148 = vector.shape_cast %147 : vector<8xf32> to vector<8x1xf32>
    %149 = arith.mulf %136, %136 : vector<8x128xf32>
    %cst_61 = arith.constant dense<0.000000e+00> : vector<8xf32>
    %150 = vector.multi_reduction <add>, %149, %cst_61 [1] : vector<8x128xf32> to vector<8xf32>
    %151 = vector.shape_cast %150 : vector<8xf32> to vector<8x1xf32>
    %cst_62 = arith.constant 7.812500e-03 : f32
    %152 = vector.broadcast %cst_62 : f32 to vector<8x1xf32>
    %153 = arith.mulf %148, %152 : vector<8x1xf32>
    %cst_63 = arith.constant 7.812500e-03 : f32
    %154 = vector.broadcast %cst_63 : f32 to vector<8x1xf32>
    %155 = arith.mulf %151, %154 : vector<8x1xf32>
    %156 = arith.mulf %153, %153 : vector<8x1xf32>
    %157 = arith.subf %155, %156 : vector<8x1xf32>
    %158 = vector.broadcast %153 : vector<8x1xf32> to vector<8x128xf32>
    %159 = arith.subf %136, %158 : vector<8x128xf32>
    %cst_64 = arith.constant 9.99999974E-6 : f32
    %160 = vector.broadcast %cst_64 : f32 to vector<8x1xf32>
    %161 = arith.addf %157, %160 : vector<8x1xf32>
    %162 = math.rsqrt %161 : vector<8x1xf32>
    %163 = vector.broadcast %162 : vector<8x1xf32> to vector<8x128xf32>
    %164 = arith.mulf %159, %163 : vector<8x128xf32>
    %165 = vector.broadcast %139 : vector<1x128xf32> to vector<8x128xf32>
    %166 = arith.mulf %164, %165 : vector<8x128xf32>
    %167 = vector.broadcast %140 : vector<1x128xf32> to vector<8x128xf32>
    %168 = arith.addf %166, %167 : vector<8x128xf32>
    %169 = arith.truncf %168 : vector<8x128xf32> to vector<8x128xbf16>
    %c1_65 = arith.constant 1 : index
    %c0_66 = arith.constant 0 : index
    %c0_67 = arith.constant 0 : index
    %170 = vector.load %arg9[%c1_65, %c0_66, %c0_67] : memref<2x128x384xbf16, #tpu.memory_space<vmem>>, vector<1x128x384xbf16>
    %171 = vector.shape_cast %170 : vector<1x128x384xbf16> to vector<128x384xbf16>
    %cst_68 = arith.constant dense<0.000000e+00> : vector<8x384xf32>
    %172 = tpu.matmul %169, %171, %cst_68 {dimension_numbers = #tpu.dot_dimension_numbers<[1], [0], [0], [1], [0, 0, 1, 1], [], []>} : vector<8x128xbf16>, vector<128x384xbf16>, vector<8x384xf32> -> vector<8x384xf32>
    %173 = vector.broadcast %145 : vector<1x384xf32> to vector<8x384xf32>
    %174 = arith.addf %172, %173 : vector<8x384xf32>
    %175 = vector.extract_strided_slice %174 {offsets = [0, 0], sizes = [8, 128], strides = [1, 1]} : vector<8x384xf32> to vector<8x128xf32>
    %176 = vector.extract_strided_slice %174 {offsets = [0, 128], sizes = [8, 128], strides = [1, 1]} : vector<8x384xf32> to vector<8x128xf32>
    %177 = vector.extract_strided_slice %174 {offsets = [0, 256], sizes = [8, 128], strides = [1, 1]} : vector<8x384xf32> to vector<8x128xf32>
    %178 = arith.truncf %175 : vector<8x128xf32> to vector<8x128xbf16>
    %179 = arith.truncf %176 : vector<8x128xf32> to vector<8x128xbf16>
    %cst_69 = arith.constant dense<0.000000e+00> : vector<8x8xf32>
    %180 = tpu.matmul %178, %179, %cst_69 {dimension_numbers = #tpu.dot_dimension_numbers<[1], [1], [0], [0], [0, 0, 1, 0], [], []>} : vector<8x128xbf16>, vector<8x128xbf16>, vector<8x8xf32> -> vector<8x8xf32>
    %cst_70 = arith.constant 0.0883883461 : f32
    %181 = vector.broadcast %cst_70 : f32 to vector<8x8xf32>
    %182 = arith.mulf %180, %181 : vector<8x8xf32>
    %183 = vector.broadcast %18 : vector<1x8xf32> to vector<8x8xf32>
    %184 = arith.addf %182, %183 : vector<8x8xf32>
    %cst_71 = arith.constant dense<0xFF800000> : vector<8xf32>
    %185 = vector.multi_reduction <maximumf>, %184, %cst_71 [1] : vector<8x8xf32> to vector<8xf32>
    %186 = vector.shape_cast %185 : vector<8xf32> to vector<8x1xf32>
    %187 = vector.broadcast %186 : vector<8x1xf32> to vector<8x8xf32>
    %188 = arith.subf %184, %187 : vector<8x8xf32>
    %189 = math.exp %188 : vector<8x8xf32>
    %cst_72 = arith.constant dense<0.000000e+00> : vector<8xf32>
    %190 = vector.multi_reduction <add>, %189, %cst_72 [1] : vector<8x8xf32> to vector<8xf32>
    %191 = vector.shape_cast %190 : vector<8xf32> to vector<8x1xf32>
    %192 = tpu.reciprocal %191 {approx = true} : vector<8x1xf32> -> vector<8x1xf32>
    %193 = vector.broadcast %192 : vector<8x1xf32> to vector<8x8xf32>
    %194 = arith.mulf %189, %193 : vector<8x8xf32>
    %195 = arith.truncf %194 : vector<8x8xf32> to vector<8x8xbf16>
    %196 = arith.truncf %177 : vector<8x128xf32> to vector<8x128xbf16>
    %cst_73 = arith.constant dense<0.000000e+00> : vector<8x128xf32>
    %197 = tpu.matmul %195, %196, %cst_73 {dimension_numbers = #tpu.dot_dimension_numbers<[1], [0], [0], [1], [0, 0, 1, 1], [], []>} : vector<8x8xbf16>, vector<8x128xbf16>, vector<8x128xf32> -> vector<8x128xf32>
    %198 = arith.truncf %197 : vector<8x128xf32> to vector<8x128xbf16>
    %c1_74 = arith.constant 1 : index
    %c0_75 = arith.constant 0 : index
    %c0_76 = arith.constant 0 : index
    %199 = vector.load %arg10[%c1_74, %c0_75, %c0_76] : memref<2x128x128xbf16, #tpu.memory_space<vmem>>, vector<1x128x128xbf16>
    %200 = vector.shape_cast %199 : vector<1x128x128xbf16> to vector<128x128xbf16>
    %cst_77 = arith.constant dense<0.000000e+00> : vector<8x128xf32>
    %201 = tpu.matmul %198, %200, %cst_77 {dimension_numbers = #tpu.dot_dimension_numbers<[1], [0], [0], [1], [0, 0, 1, 1], [], []>} : vector<8x128xbf16>, vector<128x128xbf16>, vector<8x128xf32> -> vector<8x128xf32>
    %202 = arith.addf %136, %201 : vector<8x128xf32>
    %203 = vector.broadcast %141 : vector<1x128xf32> to vector<8x128xf32>
    %204 = arith.addf %202, %203 : vector<8x128xf32>
    %cst_78 = arith.constant dense<0.000000e+00> : vector<8xf32>
    %205 = vector.multi_reduction <add>, %204, %cst_78 [1] : vector<8x128xf32> to vector<8xf32>
    %206 = vector.shape_cast %205 : vector<8xf32> to vector<8x1xf32>
    %207 = arith.mulf %204, %204 : vector<8x128xf32>
    %cst_79 = arith.constant dense<0.000000e+00> : vector<8xf32>
    %208 = vector.multi_reduction <add>, %207, %cst_79 [1] : vector<8x128xf32> to vector<8xf32>
    %209 = vector.shape_cast %208 : vector<8xf32> to vector<8x1xf32>
    %cst_80 = arith.constant 7.812500e-03 : f32
    %210 = vector.broadcast %cst_80 : f32 to vector<8x1xf32>
    %211 = arith.mulf %206, %210 : vector<8x1xf32>
    %cst_81 = arith.constant 7.812500e-03 : f32
    %212 = vector.broadcast %cst_81 : f32 to vector<8x1xf32>
    %213 = arith.mulf %209, %212 : vector<8x1xf32>
    %214 = arith.mulf %211, %211 : vector<8x1xf32>
    %215 = arith.subf %213, %214 : vector<8x1xf32>
    %216 = vector.broadcast %211 : vector<8x1xf32> to vector<8x128xf32>
    %217 = arith.subf %204, %216 : vector<8x128xf32>
    %cst_82 = arith.constant 9.99999974E-6 : f32
    %218 = vector.broadcast %cst_82 : f32 to vector<8x1xf32>
    %219 = arith.addf %215, %218 : vector<8x1xf32>
    %220 = math.rsqrt %219 : vector<8x1xf32>
    %221 = vector.broadcast %220 : vector<8x1xf32> to vector<8x128xf32>
    %222 = arith.mulf %217, %221 : vector<8x128xf32>
    %223 = vector.broadcast %142 : vector<1x128xf32> to vector<8x128xf32>
    %224 = arith.mulf %222, %223 : vector<8x128xf32>
    %225 = vector.broadcast %143 : vector<1x128xf32> to vector<8x128xf32>
    %226 = arith.addf %224, %225 : vector<8x128xf32>
    %227 = arith.truncf %226 : vector<8x128xf32> to vector<8x128xbf16>
    %c1_83 = arith.constant 1 : index
    %c0_84 = arith.constant 0 : index
    %c0_85 = arith.constant 0 : index
    %228 = vector.load %arg11[%c1_83, %c0_84, %c0_85] : memref<2x128x512xbf16, #tpu.memory_space<vmem>>, vector<1x128x512xbf16>
    %229 = vector.shape_cast %228 : vector<1x128x512xbf16> to vector<128x512xbf16>
    %cst_86 = arith.constant dense<0.000000e+00> : vector<8x512xf32>
    %230 = tpu.matmul %227, %229, %cst_86 {dimension_numbers = #tpu.dot_dimension_numbers<[1], [0], [0], [1], [0, 0, 1, 1], [], []>} : vector<8x128xbf16>, vector<128x512xbf16>, vector<8x512xf32> -> vector<8x512xf32>
    %231 = vector.broadcast %146 : vector<1x512xf32> to vector<8x512xf32>
    %232 = arith.addf %230, %231 : vector<8x512xf32>
    %233 = arith.mulf %232, %232 : vector<8x512xf32>
    %234 = arith.mulf %232, %233 : vector<8x512xf32>
    %cst_87 = arith.constant 4.471500e-02 : f32
    %235 = vector.broadcast %cst_87 : f32 to vector<8x512xf32>
    %236 = arith.mulf %235, %234 : vector<8x512xf32>
    %237 = arith.addf %232, %236 : vector<8x512xf32>
    %cst_88 = arith.constant 0.797884583 : f32
    %238 = vector.broadcast %cst_88 : f32 to vector<8x512xf32>
    %239 = arith.mulf %238, %237 : vector<8x512xf32>
    %240 = math.tanh %239 : vector<8x512xf32>
    %cst_89 = arith.constant 1.000000e+00 : f32
    %241 = vector.broadcast %cst_89 : f32 to vector<8x512xf32>
    %242 = arith.addf %241, %240 : vector<8x512xf32>
    %cst_90 = arith.constant 5.000000e-01 : f32
    %243 = vector.broadcast %cst_90 : f32 to vector<8x512xf32>
    %244 = arith.mulf %243, %242 : vector<8x512xf32>
    %245 = arith.mulf %232, %244 : vector<8x512xf32>
    %246 = arith.truncf %245 : vector<8x512xf32> to vector<8x512xbf16>
    %c1_91 = arith.constant 1 : index
    %c0_92 = arith.constant 0 : index
    %c0_93 = arith.constant 0 : index
    %247 = vector.load %arg12[%c1_91, %c0_92, %c0_93] : memref<2x512x128xbf16, #tpu.memory_space<vmem>>, vector<1x512x128xbf16>
    %248 = vector.shape_cast %247 : vector<1x512x128xbf16> to vector<512x128xbf16>
    %cst_94 = arith.constant dense<0.000000e+00> : vector<8x128xf32>
    %249 = tpu.matmul %246, %248, %cst_94 {dimension_numbers = #tpu.dot_dimension_numbers<[1], [0], [0], [1], [0, 0, 1, 1], [], []>} : vector<8x512xbf16>, vector<512x128xbf16>, vector<8x128xf32> -> vector<8x128xf32>
    %250 = arith.addf %204, %249 : vector<8x128xf32>
    %251 = vector.broadcast %144 : vector<1x128xf32> to vector<8x128xf32>
    %252 = arith.addf %250, %251 : vector<8x128xf32>
    %c0_95 = arith.constant 0 : index
    %c0_96 = arith.constant 0 : index
    %253 = vector.load %arg16[%c0_95, %c0_96] : memref<1x128xf32, #tpu.memory_space<vmem>>, vector<1x128xf32>
    %254 = vector.broadcast %253 : vector<1x128xf32> to vector<8x128xf32>
    %255 = arith.mulf %252, %254 : vector<8x128xf32>
    %cst_97 = arith.constant dense<0.000000e+00> : vector<8xf32>
    %256 = vector.multi_reduction <add>, %255, %cst_97 [1] : vector<8x128xf32> to vector<8xf32>
    %257 = vector.shape_cast %256 : vector<8xf32> to vector<8x1xf32>
    %c0_98 = arith.constant 0 : index
    %c0_99 = arith.constant 0 : index
    %258 = vector.load %arg17[%c0_98, %c0_99] : memref<1x1xf32, #tpu.memory_space<vmem>>, vector<1x1xf32>
    %259 = vector.broadcast %258 : vector<1x1xf32> to vector<8x1xf32>
    %260 = arith.addf %257, %259 : vector<8x1xf32>
    %c0_100 = arith.constant 0 : index
    %c0_101 = arith.constant 0 : index
    %c0_102 = arith.constant 0 : index
    %261 = vector.load %arg3[%c0_100, %c0_101, %c0_102] : memref<1x8x1xf32, #tpu.memory_space<vmem>>, vector<1x8x1xf32>
    %262 = vector.shape_cast %261 : vector<1x8x1xf32> to vector<8x1xf32>
    %263 = math.log %262 : vector<8x1xf32>
    %cst_103 = arith.constant -3.40282347E+38 : f32
    %264 = vector.broadcast %cst_103 : f32 to vector<8x1xf32>
    %265 = arith.maximumf %263, %264 : vector<8x1xf32>
    %266 = arith.addf %260, %265 : vector<8x1xf32>
    %cst_104 = arith.constant dense<0xFF800000> : vector<1xf32>
    %267 = vector.multi_reduction <maximumf>, %266, %cst_104 [0] : vector<8x1xf32> to vector<1xf32>
    %268 = vector.shape_cast %267 : vector<1xf32> to vector<1x1xf32>
    %269 = vector.broadcast %268 : vector<1x1xf32> to vector<8x1xf32>
    %270 = arith.subf %266, %269 : vector<8x1xf32>
    %271 = math.exp %270 : vector<8x1xf32>
    %cst_105 = arith.constant dense<0.000000e+00> : vector<1xf32>
    %272 = vector.multi_reduction <add>, %271, %cst_105 [0] : vector<8x1xf32> to vector<1xf32>
    %273 = vector.shape_cast %272 : vector<1xf32> to vector<1x1xf32>
    %274 = tpu.reciprocal %273 {approx = true} : vector<1x1xf32> -> vector<1x1xf32>
    %275 = vector.broadcast %274 : vector<1x1xf32> to vector<8x1xf32>
    %276 = arith.mulf %271, %275 : vector<8x1xf32>
    %277 = vector.broadcast %276 : vector<8x1xf32> to vector<8x128xf32>
    %278 = arith.mulf %252, %277 : vector<8x128xf32>
    %cst_106 = arith.constant dense<0.000000e+00> : vector<128xf32>
    %279 = vector.multi_reduction <add>, %278, %cst_106 [0] : vector<8x128xf32> to vector<128xf32>
    %280 = vector.shape_cast %279 : vector<128xf32> to vector<1x128xf32>
    %c0_107 = arith.constant 0 : index
    %c0_108 = arith.constant 0 : index
    %281 = vector.load %arg18[%c0_107, %c0_108] : memref<128x128xf32, #tpu.memory_space<vmem>>, vector<128x128xf32>
    %cst_109 = arith.constant dense<0.000000e+00> : vector<1x128xf32>
    %282 = tpu.matmul %280, %281, %cst_109 {dimension_numbers = #tpu.dot_dimension_numbers<[1], [0], [0], [1], [0, 0, 1, 1], [], []>} : vector<1x128xf32>, vector<128x128xf32>, vector<1x128xf32> -> vector<1x128xf32>
    %c0_110 = arith.constant 0 : index
    %c0_111 = arith.constant 0 : index
    %283 = vector.load %arg19[%c0_110, %c0_111] : memref<1x128xf32, #tpu.memory_space<vmem>>, vector<1x128xf32>
    %284 = arith.addf %282, %283 : vector<1x128xf32>
    %c0_112 = arith.constant 0 : index
    %c0_113 = arith.constant 0 : index
    %c0_114 = arith.constant 0 : index
    %285 = vector.load %arg24[%c0_112, %c0_113, %c0_114] : memref<1x1x128xf32, #tpu.memory_space<vmem>>, vector<1x1x128xf32>
    %286 = vector.shape_cast %285 : vector<1x1x128xf32> to vector<1x128xf32>
    %287 = vector.shape_cast %284 : vector<1x128xf32> to vector<1x1x128xf32>
    tpu.vector_store %arg24[%c0_112, %c0_113, %c0_114], %287 {strides = array<i32>} : memref<1x1x128xf32, #tpu.memory_space<vmem>>, vector<1x1x128xf32>,
    %c0_115 = arith.constant 0 : index
    %c0_116 = arith.constant 0 : index
    %c0_117 = arith.constant 0 : index
    %288 = vector.load %arg5[%c0_115, %c0_116, %c0_117] : memref<1x1x128xf32, #tpu.memory_space<vmem>>, vector<1x1x128xf32>
    %289 = vector.shape_cast %288 : vector<1x1x128xf32> to vector<1x128xf32>
    %cst_118 = arith.constant 1.000000e+00 : f32
    %290 = vector.broadcast %cst_118 : f32 to vector<1x128xf32>
    %291 = arith.mulf %289, %290 : vector<1x128xf32>
    %292 = arith.addf %284, %291 : vector<1x128xf32>
    %c0_119 = arith.constant 0 : index
    %c0_120 = arith.constant 0 : index
    %293 = vector.load %arg20[%c0_119, %c0_120] : memref<128x128xf32, #tpu.memory_space<vmem>>, vector<128x128xf32>
    %cst_121 = arith.constant dense<0.000000e+00> : vector<1x128xf32>
    %294 = tpu.matmul %292, %293, %cst_121 {dimension_numbers = #tpu.dot_dimension_numbers<[1], [0], [0], [1], [0, 0, 1, 1], [], []>} : vector<1x128xf32>, vector<128x128xf32>, vector<1x128xf32> -> vector<1x128xf32>
    %c0_122 = arith.constant 0 : index
    %c0_123 = arith.constant 0 : index
    %295 = vector.load %arg21[%c0_122, %c0_123] : memref<1x128xf32, #tpu.memory_space<vmem>>, vector<1x128xf32>
    %296 = arith.addf %294, %295 : vector<1x128xf32>
    %297 = tpu.iota {dimensions = array<i32: 0>} : vector<16x128xi32>
    %c0_i32 = arith.constant 0 : i32
    %298 = vector.broadcast %c0_i32 : i32 to vector<16x128xi32>
    %299 = arith.cmpi eq, %297, %298 : vector<16x128xi32>
    %300 = vector.shape_cast %296 : vector<1x128xf32> to vector<1x128xf32>
    %301 = vector.broadcast %300 : vector<1x128xf32> to vector<16x128xf32>
    %302 = arith.select %299, %301, %11 : vector<16x128xi1>, vector<16x128xf32>
    %c0_124 = arith.constant 0 : index
    %c0_125 = arith.constant 0 : index
    %303 = vector.load %arg7[%c0_124, %c0_125] : memref<32x128xf32, #tpu.memory_space<vmem>>, vector<16x128xf32>
    %304 = arith.addf %302, %303 : vector<16x128xf32>
    %305 = tpu.iota {dimensions = array<i32: 0>} : vector<16x16xi32>
    %306 = tpu.iota {dimensions = array<i32: 1>} : vector<16x16xi32>
    %c0_126 = arith.constant 0 : index
    %c0_127 = arith.constant 0 : index
    %c0_128 = arith.constant 0 : index
    %307 = vector.load %arg4[%c0_126, %c0_127, %c0_128] : memref<1x1x16xf32, #tpu.memory_space<vmem>>, vector<1x1x16xf32>
    %308 = vector.shape_cast %307 : vector<1x1x16xf32> to vector<1x16xf32>
    %309 = arith.cmpi sge, %305, %306 : vector<16x16xi32>
    %cst_129 = arith.constant 0.000000e+00 : f32
    %310 = vector.broadcast %cst_129 : f32 to vector<1x16xf32>
    %311 = arith.cmpf ogt, %308, %310 : vector<1x16xf32>
    %312 = vector.broadcast %311 : vector<1x16xi1> to vector<16x16xi1>
    %313 = arith.andi %309, %312 : vector<16x16xi1>
    %cst_130 = arith.constant 0.000000e+00 : f32
    %cst_131 = arith.constant -1.000000e+09 : f32
    %314 = vector.broadcast %cst_130 : f32 to vector<16x16xf32>
    %315 = vector.broadcast %cst_131 : f32 to vector<16x16xf32>
    %316 = arith.select %313, %314, %315 : vector<16x16xi1>, vector<16x16xf32>
    %c0_132 = arith.constant 0 : index
    %c0_133 = arith.constant 0 : index
    %c0_134 = arith.constant 0 : index
    %317 = vector.load %arg13[%c0_132, %c0_133, %c0_134] : memref<2x6x128xf32, #tpu.memory_space<vmem>>, vector<1x6x128xf32>
    %318 = vector.shape_cast %317 : vector<1x6x128xf32> to vector<6x128xf32>
    %319 = vector.extract_strided_slice %318 {offsets = [0, 0], sizes = [1, 128], strides = [1, 1]} : vector<6x128xf32> to vector<1x128xf32>
    %320 = vector.extract_strided_slice %318 {offsets = [1, 0], sizes = [1, 128], strides = [1, 1]} : vector<6x128xf32> to vector<1x128xf32>
    %321 = vector.extract_strided_slice %318 {offsets = [2, 0], sizes = [1, 128], strides = [1, 1]} : vector<6x128xf32> to vector<1x128xf32>
    %322 = vector.extract_strided_slice %318 {offsets = [3, 0], sizes = [1, 128], strides = [1, 1]} : vector<6x128xf32> to vector<1x128xf32>
    %323 = vector.extract_strided_slice %318 {offsets = [4, 0], sizes = [1, 128], strides = [1, 1]} : vector<6x128xf32> to vector<1x128xf32>
    %324 = vector.extract_strided_slice %318 {offsets = [5, 0], sizes = [1, 128], strides = [1, 1]} : vector<6x128xf32> to vector<1x128xf32>
    %c0_135 = arith.constant 0 : index
    %c0_136 = arith.constant 0 : index
    %325 = vector.load %arg14[%c0_135, %c0_136] : memref<2x384xf32, #tpu.memory_space<vmem>>, vector<1x384xf32>
    %c0_137 = arith.constant 0 : index
    %c0_138 = arith.constant 0 : index
    %326 = vector.load %arg15[%c0_137, %c0_138] : memref<2x512xf32, #tpu.memory_space<vmem>>, vector<1x512xf32>
    %cst_139 = arith.constant dense<0.000000e+00> : vector<16xf32>
    %327 = vector.multi_reduction <add>, %304, %cst_139 [1] : vector<16x128xf32> to vector<16xf32>
    %328 = vector.shape_cast %327 : vector<16xf32> to vector<16x1xf32>
    %329 = arith.mulf %304, %304 : vector<16x128xf32>
    %cst_140 = arith.constant dense<0.000000e+00> : vector<16xf32>
    %330 = vector.multi_reduction <add>, %329, %cst_140 [1] : vector<16x128xf32> to vector<16xf32>
    %331 = vector.shape_cast %330 : vector<16xf32> to vector<16x1xf32>
    %cst_141 = arith.constant 7.812500e-03 : f32
    %332 = vector.broadcast %cst_141 : f32 to vector<16x1xf32>
    %333 = arith.mulf %328, %332 : vector<16x1xf32>
    %cst_142 = arith.constant 7.812500e-03 : f32
    %334 = vector.broadcast %cst_142 : f32 to vector<16x1xf32>
    %335 = arith.mulf %331, %334 : vector<16x1xf32>
    %336 = arith.mulf %333, %333 : vector<16x1xf32>
    %337 = arith.subf %335, %336 : vector<16x1xf32>
    %338 = vector.broadcast %333 : vector<16x1xf32> to vector<16x128xf32>
    %339 = arith.subf %304, %338 : vector<16x128xf32>
    %cst_143 = arith.constant 9.99999974E-6 : f32
    %340 = vector.broadcast %cst_143 : f32 to vector<16x1xf32>
    %341 = arith.addf %337, %340 : vector<16x1xf32>
    %342 = math.rsqrt %341 : vector<16x1xf32>
    %343 = vector.broadcast %342 : vector<16x1xf32> to vector<16x128xf32>
    %344 = arith.mulf %339, %343 : vector<16x128xf32>
    %345 = vector.broadcast %319 : vector<1x128xf32> to vector<16x128xf32>
    %346 = arith.mulf %344, %345 : vector<16x128xf32>
    %347 = vector.broadcast %320 : vector<1x128xf32> to vector<16x128xf32>
    %348 = arith.addf %346, %347 : vector<16x128xf32>
    %349 = arith.truncf %348 : vector<16x128xf32> to vector<16x128xbf16>
    %c0_144 = arith.constant 0 : index
    %c0_145 = arith.constant 0 : index
    %c0_146 = arith.constant 0 : index
    %350 = vector.load %arg9[%c0_144, %c0_145, %c0_146] : memref<2x128x384xbf16, #tpu.memory_space<vmem>>, vector<1x128x384xbf16>
    %351 = vector.shape_cast %350 : vector<1x128x384xbf16> to vector<128x384xbf16>
    %cst_147 = arith.constant dense<0.000000e+00> : vector<16x384xf32>
    %352 = tpu.matmul %349, %351, %cst_147 {dimension_numbers = #tpu.dot_dimension_numbers<[1], [0], [0], [1], [0, 0, 1, 1], [], []>} : vector<16x128xbf16>, vector<128x384xbf16>, vector<16x384xf32> -> vector<16x384xf32>
    %353 = vector.broadcast %325 : vector<1x384xf32> to vector<16x384xf32>
    %354 = arith.addf %352, %353 : vector<16x384xf32>
    %355 = vector.extract_strided_slice %354 {offsets = [0, 0], sizes = [16, 128], strides = [1, 1]} : vector<16x384xf32> to vector<16x128xf32>
    %356 = vector.extract_strided_slice %354 {offsets = [0, 128], sizes = [16, 128], strides = [1, 1]} : vector<16x384xf32> to vector<16x128xf32>
    %357 = vector.extract_strided_slice %354 {offsets = [0, 256], sizes = [16, 128], strides = [1, 1]} : vector<16x384xf32> to vector<16x128xf32>
    %358 = arith.truncf %355 : vector<16x128xf32> to vector<16x128xbf16>
    %359 = arith.truncf %356 : vector<16x128xf32> to vector<16x128xbf16>
    %cst_148 = arith.constant dense<0.000000e+00> : vector<16x16xf32>
    %360 = tpu.matmul %358, %359, %cst_148 {dimension_numbers = #tpu.dot_dimension_numbers<[1], [1], [0], [0], [0, 0, 1, 0], [], []>} : vector<16x128xbf16>, vector<16x128xbf16>, vector<16x16xf32> -> vector<16x16xf32>
    %cst_149 = arith.constant 0.0883883461 : f32
    %361 = vector.broadcast %cst_149 : f32 to vector<16x16xf32>
    %362 = arith.mulf %360, %361 : vector<16x16xf32>
    %363 = arith.addf %362, %316 : vector<16x16xf32>
    %cst_150 = arith.constant dense<0xFF800000> : vector<16xf32>
    %364 = vector.multi_reduction <maximumf>, %363, %cst_150 [1] : vector<16x16xf32> to vector<16xf32>
    %365 = vector.shape_cast %364 : vector<16xf32> to vector<16x1xf32>
    %366 = vector.broadcast %365 : vector<16x1xf32> to vector<16x16xf32>
    %367 = arith.subf %363, %366 : vector<16x16xf32>
    %368 = math.exp %367 : vector<16x16xf32>
    %cst_151 = arith.constant dense<0.000000e+00> : vector<16xf32>
    %369 = vector.multi_reduction <add>, %368, %cst_151 [1] : vector<16x16xf32> to vector<16xf32>
    %370 = vector.shape_cast %369 : vector<16xf32> to vector<16x1xf32>
    %371 = tpu.reciprocal %370 {approx = true} : vector<16x1xf32> -> vector<16x1xf32>
    %372 = vector.broadcast %371 : vector<16x1xf32> to vector<16x16xf32>
    %373 = arith.mulf %368, %372 : vector<16x16xf32>
    %374 = arith.truncf %373 : vector<16x16xf32> to vector<16x16xbf16>
    %375 = arith.truncf %357 : vector<16x128xf32> to vector<16x128xbf16>
    %cst_152 = arith.constant dense<0.000000e+00> : vector<16x128xf32>
    %376 = tpu.matmul %374, %375, %cst_152 {dimension_numbers = #tpu.dot_dimension_numbers<[1], [0], [0], [1], [0, 0, 1, 1], [], []>} : vector<16x16xbf16>, vector<16x128xbf16>, vector<16x128xf32> -> vector<16x128xf32>
    %377 = arith.truncf %376 : vector<16x128xf32> to vector<16x128xbf16>
    %c0_153 = arith.constant 0 : index
    %c0_154 = arith.constant 0 : index
    %c0_155 = arith.constant 0 : index
    %378 = vector.load %arg10[%c0_153, %c0_154, %c0_155] : memref<2x128x128xbf16, #tpu.memory_space<vmem>>, vector<1x128x128xbf16>
    %379 = vector.shape_cast %378 : vector<1x128x128xbf16> to vector<128x128xbf16>
    %cst_156 = arith.constant dense<0.000000e+00> : vector<16x128xf32>
    %380 = tpu.matmul %377, %379, %cst_156 {dimension_numbers = #tpu.dot_dimension_numbers<[1], [0], [0], [1], [0, 0, 1, 1], [], []>} : vector<16x128xbf16>, vector<128x128xbf16>, vector<16x128xf32> -> vector<16x128xf32>
    %381 = arith.addf %304, %380 : vector<16x128xf32>
    %382 = vector.broadcast %321 : vector<1x128xf32> to vector<16x128xf32>
    %383 = arith.addf %381, %382 : vector<16x128xf32>
    %cst_157 = arith.constant dense<0.000000e+00> : vector<16xf32>
    %384 = vector.multi_reduction <add>, %383, %cst_157 [1] : vector<16x128xf32> to vector<16xf32>
    %385 = vector.shape_cast %384 : vector<16xf32> to vector<16x1xf32>
    %386 = arith.mulf %383, %383 : vector<16x128xf32>
    %cst_158 = arith.constant dense<0.000000e+00> : vector<16xf32>
    %387 = vector.multi_reduction <add>, %386, %cst_158 [1] : vector<16x128xf32> to vector<16xf32>
    %388 = vector.shape_cast %387 : vector<16xf32> to vector<16x1xf32>
    %cst_159 = arith.constant 7.812500e-03 : f32
    %389 = vector.broadcast %cst_159 : f32 to vector<16x1xf32>
    %390 = arith.mulf %385, %389 : vector<16x1xf32>
    %cst_160 = arith.constant 7.812500e-03 : f32
    %391 = vector.broadcast %cst_160 : f32 to vector<16x1xf32>
    %392 = arith.mulf %388, %391 : vector<16x1xf32>
    %393 = arith.mulf %390, %390 : vector<16x1xf32>
    %394 = arith.subf %392, %393 : vector<16x1xf32>
    %395 = vector.broadcast %390 : vector<16x1xf32> to vector<16x128xf32>
    %396 = arith.subf %383, %395 : vector<16x128xf32>
    %cst_161 = arith.constant 9.99999974E-6 : f32
    %397 = vector.broadcast %cst_161 : f32 to vector<16x1xf32>
    %398 = arith.addf %394, %397 : vector<16x1xf32>
    %399 = math.rsqrt %398 : vector<16x1xf32>
    %400 = vector.broadcast %399 : vector<16x1xf32> to vector<16x128xf32>
    %401 = arith.mulf %396, %400 : vector<16x128xf32>
    %402 = vector.broadcast %322 : vector<1x128xf32> to vector<16x128xf32>
    %403 = arith.mulf %401, %402 : vector<16x128xf32>
    %404 = vector.broadcast %323 : vector<1x128xf32> to vector<16x128xf32>
    %405 = arith.addf %403, %404 : vector<16x128xf32>
    %406 = arith.truncf %405 : vector<16x128xf32> to vector<16x128xbf16>
    %c0_162 = arith.constant 0 : index
    %c0_163 = arith.constant 0 : index
    %c0_164 = arith.constant 0 : index
    %407 = vector.load %arg11[%c0_162, %c0_163, %c0_164] : memref<2x128x512xbf16, #tpu.memory_space<vmem>>, vector<1x128x512xbf16>
    %408 = vector.shape_cast %407 : vector<1x128x512xbf16> to vector<128x512xbf16>
    %cst_165 = arith.constant dense<0.000000e+00> : vector<16x512xf32>
    %409 = tpu.matmul %406, %408, %cst_165 {dimension_numbers = #tpu.dot_dimension_numbers<[1], [0], [0], [1], [0, 0, 1, 1], [], []>} : vector<16x128xbf16>, vector<128x512xbf16>, vector<16x512xf32> -> vector<16x512xf32>
    %410 = vector.broadcast %326 : vector<1x512xf32> to vector<16x512xf32>
    %411 = arith.addf %409, %410 : vector<16x512xf32>
    %412 = arith.mulf %411, %411 : vector<16x512xf32>
    %413 = arith.mulf %411, %412 : vector<16x512xf32>
    %cst_166 = arith.constant 4.471500e-02 : f32
    %414 = vector.broadcast %cst_166 : f32 to vector<16x512xf32>
    %415 = arith.mulf %414, %413 : vector<16x512xf32>
    %416 = arith.addf %411, %415 : vector<16x512xf32>
    %cst_167 = arith.constant 0.797884583 : f32
    %417 = vector.broadcast %cst_167 : f32 to vector<16x512xf32>
    %418 = arith.mulf %417, %416 : vector<16x512xf32>
    %419 = math.tanh %418 : vector<16x512xf32>
    %cst_168 = arith.constant 1.000000e+00 : f32
    %420 = vector.broadcast %cst_168 : f32 to vector<16x512xf32>
    %421 = arith.addf %420, %419 : vector<16x512xf32>
    %cst_169 = arith.constant 5.000000e-01 : f32
    %422 = vector.broadcast %cst_169 : f32 to vector<16x512xf32>
    %423 = arith.mulf %422, %421 : vector<16x512xf32>
    %424 = arith.mulf %411, %423 : vector<16x512xf32>
    %425 = arith.truncf %424 : vector<16x512xf32> to vector<16x512xbf16>
    %c0_170 = arith.constant 0 : index
    %c0_171 = arith.constant 0 : index
    %c0_172 = arith.constant 0 : index
    %426 = vector.load %arg12[%c0_170, %c0_171, %c0_172] : memref<2x512x128xbf16, #tpu.memory_space<vmem>>, vector<1x512x128xbf16>
    %427 = vector.shape_cast %426 : vector<1x512x128xbf16> to vector<512x128xbf16>
    %cst_173 = arith.constant dense<0.000000e+00> : vector<16x128xf32>
    %428 = tpu.matmul %425, %427, %cst_173 {dimension_numbers = #tpu.dot_dimension_numbers<[1], [0], [0], [1], [0, 0, 1, 1], [], []>} : vector<16x512xbf16>, vector<512x128xbf16>, vector<16x128xf32> -> vector<16x128xf32>
    %429 = arith.addf %383, %428 : vector<16x128xf32>
    %430 = vector.broadcast %324 : vector<1x128xf32> to vector<16x128xf32>
    %431 = arith.addf %429, %430 : vector<16x128xf32>
    %c1_174 = arith.constant 1 : index
    %c0_175 = arith.constant 0 : index
    %c0_176 = arith.constant 0 : index
    %432 = vector.load %arg13[%c1_174, %c0_175, %c0_176] : memref<2x6x128xf32, #tpu.memory_space<vmem>>, vector<1x6x128xf32>
    %433 = vector.shape_cast %432 : vector<1x6x128xf32> to vector<6x128xf32>
    %434 = vector.extract_strided_slice %433 {offsets = [0, 0], sizes = [1, 128], strides = [1, 1]} : vector<6x128xf32> to vector<1x128xf32>
    %435 = vector.extract_strided_slice %433 {offsets = [1, 0], sizes = [1, 128], strides = [1, 1]} : vector<6x128xf32> to vector<1x128xf32>
    %436 = vector.extract_strided_slice %433 {offsets = [2, 0], sizes = [1, 128], strides = [1, 1]} : vector<6x128xf32> to vector<1x128xf32>
    %437 = vector.extract_strided_slice %433 {offsets = [3, 0], sizes = [1, 128], strides = [1, 1]} : vector<6x128xf32> to vector<1x128xf32>
    %438 = vector.extract_strided_slice %433 {offsets = [4, 0], sizes = [1, 128], strides = [1, 1]} : vector<6x128xf32> to vector<1x128xf32>
    %439 = vector.extract_strided_slice %433 {offsets = [5, 0], sizes = [1, 128], strides = [1, 1]} : vector<6x128xf32> to vector<1x128xf32>
    %c1_177 = arith.constant 1 : index
    %c0_178 = arith.constant 0 : index
    %440 = vector.load %arg14[%c1_177, %c0_178] : memref<2x384xf32, #tpu.memory_space<vmem>>, vector<1x384xf32>
    %c1_179 = arith.constant 1 : index
    %c0_180 = arith.constant 0 : index
    %441 = vector.load %arg15[%c1_179, %c0_180] : memref<2x512xf32, #tpu.memory_space<vmem>>, vector<1x512xf32>
    %cst_181 = arith.constant dense<0.000000e+00> : vector<16xf32>
    %442 = vector.multi_reduction <add>, %431, %cst_181 [1] : vector<16x128xf32> to vector<16xf32>
    %443 = vector.shape_cast %442 : vector<16xf32> to vector<16x1xf32>
    %444 = arith.mulf %431, %431 : vector<16x128xf32>
    %cst_182 = arith.constant dense<0.000000e+00> : vector<16xf32>
    %445 = vector.multi_reduction <add>, %444, %cst_182 [1] : vector<16x128xf32> to vector<16xf32>
    %446 = vector.shape_cast %445 : vector<16xf32> to vector<16x1xf32>
    %cst_183 = arith.constant 7.812500e-03 : f32
    %447 = vector.broadcast %cst_183 : f32 to vector<16x1xf32>
    %448 = arith.mulf %443, %447 : vector<16x1xf32>
    %cst_184 = arith.constant 7.812500e-03 : f32
    %449 = vector.broadcast %cst_184 : f32 to vector<16x1xf32>
    %450 = arith.mulf %446, %449 : vector<16x1xf32>
    %451 = arith.mulf %448, %448 : vector<16x1xf32>
    %452 = arith.subf %450, %451 : vector<16x1xf32>
    %453 = vector.broadcast %448 : vector<16x1xf32> to vector<16x128xf32>
    %454 = arith.subf %431, %453 : vector<16x128xf32>
    %cst_185 = arith.constant 9.99999974E-6 : f32
    %455 = vector.broadcast %cst_185 : f32 to vector<16x1xf32>
    %456 = arith.addf %452, %455 : vector<16x1xf32>
    %457 = math.rsqrt %456 : vector<16x1xf32>
    %458 = vector.broadcast %457 : vector<16x1xf32> to vector<16x128xf32>
    %459 = arith.mulf %454, %458 : vector<16x128xf32>
    %460 = vector.broadcast %434 : vector<1x128xf32> to vector<16x128xf32>
    %461 = arith.mulf %459, %460 : vector<16x128xf32>
    %462 = vector.broadcast %435 : vector<1x128xf32> to vector<16x128xf32>
    %463 = arith.addf %461, %462 : vector<16x128xf32>
    %464 = arith.truncf %463 : vector<16x128xf32> to vector<16x128xbf16>
    %c1_186 = arith.constant 1 : index
    %c0_187 = arith.constant 0 : index
    %c0_188 = arith.constant 0 : index
    %465 = vector.load %arg9[%c1_186, %c0_187, %c0_188] : memref<2x128x384xbf16, #tpu.memory_space<vmem>>, vector<1x128x384xbf16>
    %466 = vector.shape_cast %465 : vector<1x128x384xbf16> to vector<128x384xbf16>
    %cst_189 = arith.constant dense<0.000000e+00> : vector<16x384xf32>
    %467 = tpu.matmul %464, %466, %cst_189 {dimension_numbers = #tpu.dot_dimension_numbers<[1], [0], [0], [1], [0, 0, 1, 1], [], []>} : vector<16x128xbf16>, vector<128x384xbf16>, vector<16x384xf32> -> vector<16x384xf32>
    %468 = vector.broadcast %440 : vector<1x384xf32> to vector<16x384xf32>
    %469 = arith.addf %467, %468 : vector<16x384xf32>
    %470 = vector.extract_strided_slice %469 {offsets = [0, 0], sizes = [16, 128], strides = [1, 1]} : vector<16x384xf32> to vector<16x128xf32>
    %471 = vector.extract_strided_slice %469 {offsets = [0, 128], sizes = [16, 128], strides = [1, 1]} : vector<16x384xf32> to vector<16x128xf32>
    %472 = vector.extract_strided_slice %469 {offsets = [0, 256], sizes = [16, 128], strides = [1, 1]} : vector<16x384xf32> to vector<16x128xf32>
    %473 = arith.truncf %470 : vector<16x128xf32> to vector<16x128xbf16>
    %474 = arith.truncf %471 : vector<16x128xf32> to vector<16x128xbf16>
    %cst_190 = arith.constant dense<0.000000e+00> : vector<16x16xf32>
    %475 = tpu.matmul %473, %474, %cst_190 {dimension_numbers = #tpu.dot_dimension_numbers<[1], [1], [0], [0], [0, 0, 1, 0], [], []>} : vector<16x128xbf16>, vector<16x128xbf16>, vector<16x16xf32> -> vector<16x16xf32>
    %cst_191 = arith.constant 0.0883883461 : f32
    %476 = vector.broadcast %cst_191 : f32 to vector<16x16xf32>
    %477 = arith.mulf %475, %476 : vector<16x16xf32>
    %478 = arith.addf %477, %316 : vector<16x16xf32>
    %cst_192 = arith.constant dense<0xFF800000> : vector<16xf32>
    %479 = vector.multi_reduction <maximumf>, %478, %cst_192 [1] : vector<16x16xf32> to vector<16xf32>
    %480 = vector.shape_cast %479 : vector<16xf32> to vector<16x1xf32>
    %481 = vector.broadcast %480 : vector<16x1xf32> to vector<16x16xf32>
    %482 = arith.subf %478, %481 : vector<16x16xf32>
    %483 = math.exp %482 : vector<16x16xf32>
    %cst_193 = arith.constant dense<0.000000e+00> : vector<16xf32>
    %484 = vector.multi_reduction <add>, %483, %cst_193 [1] : vector<16x16xf32> to vector<16xf32>
    %485 = vector.shape_cast %484 : vector<16xf32> to vector<16x1xf32>
    %486 = tpu.reciprocal %485 {approx = true} : vector<16x1xf32> -> vector<16x1xf32>
    %487 = vector.broadcast %486 : vector<16x1xf32> to vector<16x16xf32>
    %488 = arith.mulf %483, %487 : vector<16x16xf32>
    %489 = arith.truncf %488 : vector<16x16xf32> to vector<16x16xbf16>
    %490 = arith.truncf %472 : vector<16x128xf32> to vector<16x128xbf16>
    %cst_194 = arith.constant dense<0.000000e+00> : vector<16x128xf32>
    %491 = tpu.matmul %489, %490, %cst_194 {dimension_numbers = #tpu.dot_dimension_numbers<[1], [0], [0], [1], [0, 0, 1, 1], [], []>} : vector<16x16xbf16>, vector<16x128xbf16>, vector<16x128xf32> -> vector<16x128xf32>
    %492 = arith.truncf %491 : vector<16x128xf32> to vector<16x128xbf16>
    %c1_195 = arith.constant 1 : index
    %c0_196 = arith.constant 0 : index
    %c0_197 = arith.constant 0 : index
    %493 = vector.load %arg10[%c1_195, %c0_196, %c0_197] : memref<2x128x128xbf16, #tpu.memory_space<vmem>>, vector<1x128x128xbf16>
    %494 = vector.shape_cast %493 : vector<1x128x128xbf16> to vector<128x128xbf16>
    %cst_198 = arith.constant dense<0.000000e+00> : vector<16x128xf32>
    %495 = tpu.matmul %492, %494, %cst_198 {dimension_numbers = #tpu.dot_dimension_numbers<[1], [0], [0], [1], [0, 0, 1, 1], [], []>} : vector<16x128xbf16>, vector<128x128xbf16>, vector<16x128xf32> -> vector<16x128xf32>
    %496 = arith.addf %431, %495 : vector<16x128xf32>
    %497 = vector.broadcast %436 : vector<1x128xf32> to vector<16x128xf32>
    %498 = arith.addf %496, %497 : vector<16x128xf32>
    %cst_199 = arith.constant dense<0.000000e+00> : vector<16xf32>
    %499 = vector.multi_reduction <add>, %498, %cst_199 [1] : vector<16x128xf32> to vector<16xf32>
    %500 = vector.shape_cast %499 : vector<16xf32> to vector<16x1xf32>
    %501 = arith.mulf %498, %498 : vector<16x128xf32>
    %cst_200 = arith.constant dense<0.000000e+00> : vector<16xf32>
    %502 = vector.multi_reduction <add>, %501, %cst_200 [1] : vector<16x128xf32> to vector<16xf32>
    %503 = vector.shape_cast %502 : vector<16xf32> to vector<16x1xf32>
    %cst_201 = arith.constant 7.812500e-03 : f32
    %504 = vector.broadcast %cst_201 : f32 to vector<16x1xf32>
    %505 = arith.mulf %500, %504 : vector<16x1xf32>
    %cst_202 = arith.constant 7.812500e-03 : f32
    %506 = vector.broadcast %cst_202 : f32 to vector<16x1xf32>
    %507 = arith.mulf %503, %506 : vector<16x1xf32>
    %508 = arith.mulf %505, %505 : vector<16x1xf32>
    %509 = arith.subf %507, %508 : vector<16x1xf32>
    %510 = vector.broadcast %505 : vector<16x1xf32> to vector<16x128xf32>
    %511 = arith.subf %498, %510 : vector<16x128xf32>
    %cst_203 = arith.constant 9.99999974E-6 : f32
    %512 = vector.broadcast %cst_203 : f32 to vector<16x1xf32>
    %513 = arith.addf %509, %512 : vector<16x1xf32>
    %514 = math.rsqrt %513 : vector<16x1xf32>
    %515 = vector.broadcast %514 : vector<16x1xf32> to vector<16x128xf32>
    %516 = arith.mulf %511, %515 : vector<16x128xf32>
    %517 = vector.broadcast %437 : vector<1x128xf32> to vector<16x128xf32>
    %518 = arith.mulf %516, %517 : vector<16x128xf32>
    %519 = vector.broadcast %438 : vector<1x128xf32> to vector<16x128xf32>
    %520 = arith.addf %518, %519 : vector<16x128xf32>
    %521 = arith.truncf %520 : vector<16x128xf32> to vector<16x128xbf16>
    %c1_204 = arith.constant 1 : index
    %c0_205 = arith.constant 0 : index
    %c0_206 = arith.constant 0 : index
    %522 = vector.load %arg11[%c1_204, %c0_205, %c0_206] : memref<2x128x512xbf16, #tpu.memory_space<vmem>>, vector<1x128x512xbf16>
    %523 = vector.shape_cast %522 : vector<1x128x512xbf16> to vector<128x512xbf16>
    %cst_207 = arith.constant dense<0.000000e+00> : vector<16x512xf32>
    %524 = tpu.matmul %521, %523, %cst_207 {dimension_numbers = #tpu.dot_dimension_numbers<[1], [0], [0], [1], [0, 0, 1, 1], [], []>} : vector<16x128xbf16>, vector<128x512xbf16>, vector<16x512xf32> -> vector<16x512xf32>
    %525 = vector.broadcast %441 : vector<1x512xf32> to vector<16x512xf32>
    %526 = arith.addf %524, %525 : vector<16x512xf32>
    %527 = arith.mulf %526, %526 : vector<16x512xf32>
    %528 = arith.mulf %526, %527 : vector<16x512xf32>
    %cst_208 = arith.constant 4.471500e-02 : f32
    %529 = vector.broadcast %cst_208 : f32 to vector<16x512xf32>
    %530 = arith.mulf %529, %528 : vector<16x512xf32>
    %531 = arith.addf %526, %530 : vector<16x512xf32>
    %cst_209 = arith.constant 0.797884583 : f32
    %532 = vector.broadcast %cst_209 : f32 to vector<16x512xf32>
    %533 = arith.mulf %532, %531 : vector<16x512xf32>
    %534 = math.tanh %533 : vector<16x512xf32>
    %cst_210 = arith.constant 1.000000e+00 : f32
    %535 = vector.broadcast %cst_210 : f32 to vector<16x512xf32>
    %536 = arith.addf %535, %534 : vector<16x512xf32>
    %cst_211 = arith.constant 5.000000e-01 : f32
    %537 = vector.broadcast %cst_211 : f32 to vector<16x512xf32>
    %538 = arith.mulf %537, %536 : vector<16x512xf32>
    %539 = arith.mulf %526, %538 : vector<16x512xf32>
    %540 = arith.truncf %539 : vector<16x512xf32> to vector<16x512xbf16>
    %c1_212 = arith.constant 1 : index
    %c0_213 = arith.constant 0 : index
    %c0_214 = arith.constant 0 : index
    %541 = vector.load %arg12[%c1_212, %c0_213, %c0_214] : memref<2x512x128xbf16, #tpu.memory_space<vmem>>, vector<1x512x128xbf16>
    %542 = vector.shape_cast %541 : vector<1x512x128xbf16> to vector<512x128xbf16>
    %cst_215 = arith.constant dense<0.000000e+00> : vector<16x128xf32>
    %543 = tpu.matmul %540, %542, %cst_215 {dimension_numbers = #tpu.dot_dimension_numbers<[1], [0], [0], [1], [0, 0, 1, 1], [], []>} : vector<16x512xbf16>, vector<512x128xbf16>, vector<16x128xf32> -> vector<16x128xf32>
    %544 = arith.addf %498, %543 : vector<16x128xf32>
    %545 = vector.broadcast %439 : vector<1x128xf32> to vector<16x128xf32>
    %546 = arith.addf %544, %545 : vector<16x128xf32>
    %547 = arith.truncf %546 : vector<16x128xf32> to vector<16x128xbf16>
    %c0_216 = arith.constant 0 : index
    %c0_217 = arith.constant 0 : index
    %548 = vector.load %arg8[%c0_216, %c0_217] : memref<128x128xbf16, #tpu.memory_space<vmem>>, vector<128x128xbf16>
    %cst_218 = arith.constant dense<0.000000e+00> : vector<16x128xf32>
    %549 = tpu.matmul %547, %548, %cst_218 {dimension_numbers = #tpu.dot_dimension_numbers<[1], [0], [0], [1], [0, 0, 1, 1], [], []>} : vector<16x128xbf16>, vector<128x128xbf16>, vector<16x128xf32> -> vector<16x128xf32>
    %c0_219 = arith.constant 0 : index
    %c0_220 = arith.constant 0 : index
    %c0_221 = arith.constant 0 : index
    %550 = vector.load %arg23[%c0_219, %c0_220, %c0_221] : memref<1x16x128xf32, #tpu.memory_space<vmem>>, vector<1x16x128xf32>
    %551 = vector.shape_cast %550 : vector<1x16x128xf32> to vector<16x128xf32>
    %552 = vector.shape_cast %546 : vector<16x128xf32> to vector<1x16x128xf32>
    tpu.vector_store %arg23[%c0_219, %c0_220, %c0_221], %552 {strides = array<i32>} : memref<1x16x128xf32, #tpu.memory_space<vmem>>, vector<1x16x128xf32>,
    %c0_222 = arith.constant 0 : index
    %c0_223 = arith.constant 0 : index
    %c0_224 = arith.constant 0 : index
    %553 = vector.load %arg22[%c0_222, %c0_223, %c0_224] : memref<1x16x128xf32, #tpu.memory_space<vmem>>, vector<1x16x128xf32>
    %554 = vector.shape_cast %553 : vector<1x16x128xf32> to vector<16x128xf32>
    %555 = vector.shape_cast %549 : vector<16x128xf32> to vector<1x16x128xf32>
    tpu.vector_store %arg22[%c0_222, %c0_223, %c0_224], %555 {strides = array<i32>} : memref<1x16x128xf32, #tpu.memory_space<vmem>>, vector<1x16x128xf32>,
    return
  }
  func.func @transform_0(%arg0: i32) -> (i32, i32, i32) {
    %c0_i32 = arith.constant 0 : i32
    %c0_i32_0 = arith.constant 0 : i32
    %c0_i32_1 = arith.constant 0 : i32
    return %arg0, %c0_i32, %c0_i32_0 : i32, i32, i32
  }
  func.func @transform_1(%arg0: i32) -> (i32, i32, i32) {
    %c0_i32 = arith.constant 0 : i32
    %c0_i32_0 = arith.constant 0 : i32
    %c0_i32_1 = arith.constant 0 : i32
    return %arg0, %c0_i32, %c0_i32_0 : i32, i32, i32
  }
  func.func @transform_2(%arg0: i32) -> (i32, i32, i32) {
    %c0_i32 = arith.constant 0 : i32
    %c0_i32_0 = arith.constant 0 : i32
    %c0_i32_1 = arith.constant 0 : i32
    return %arg0, %c0_i32, %c0_i32_0 : i32, i32, i32
  }
  func.func @transform_3(%arg0: i32) -> (i32, i32, i32) {
    %c0_i32 = arith.constant 0 : i32
    %c0_i32_0 = arith.constant 0 : i32
    %c0_i32_1 = arith.constant 0 : i32
    return %arg0, %c0_i32, %c0_i32_0 : i32, i32, i32
  }
  func.func @transform_4(%arg0: i32) -> (i32, i32, i32) {
    %c0_i32 = arith.constant 0 : i32
    %c0_i32_0 = arith.constant 0 : i32
    %c0_i32_1 = arith.constant 0 : i32
    return %arg0, %c0_i32, %c0_i32_0 : i32, i32, i32
  }
  func.func @transform_5(%arg0: i32) -> (i32, i32) {
    %c0_i32 = arith.constant 0 : i32
    %c0_i32_0 = arith.constant 0 : i32
    %c0_i32_1 = arith.constant 0 : i32
    return %c0_i32, %c0_i32_0 : i32, i32
  }
  func.func @transform_6(%arg0: i32) -> (i32, i32) {
    %c0_i32 = arith.constant 0 : i32
    %c0_i32_0 = arith.constant 0 : i32
    %c0_i32_1 = arith.constant 0 : i32
    return %c0_i32, %c0_i32_0 : i32, i32
  }
  func.func @transform_7(%arg0: i32) -> (i32, i32) {
    %c0_i32 = arith.constant 0 : i32
    %c0_i32_0 = arith.constant 0 : i32
    %c0_i32_1 = arith.constant 0 : i32
    return %c0_i32, %c0_i32_0 : i32, i32
  }
  func.func @transform_8(%arg0: i32) -> (i32, i32, i32) {
    %c0_i32 = arith.constant 0 : i32
    %c0_i32_0 = arith.constant 0 : i32
    %c0_i32_1 = arith.constant 0 : i32
    %c0_i32_2 = arith.constant 0 : i32
    return %c0_i32, %c0_i32_0, %c0_i32_1 : i32, i32, i32
  }
  func.func @transform_9(%arg0: i32) -> (i32, i32, i32) {
    %c0_i32 = arith.constant 0 : i32
    %c0_i32_0 = arith.constant 0 : i32
    %c0_i32_1 = arith.constant 0 : i32
    %c0_i32_2 = arith.constant 0 : i32
    return %c0_i32, %c0_i32_0, %c0_i32_1 : i32, i32, i32
  }
  func.func @transform_10(%arg0: i32) -> (i32, i32, i32) {
    %c0_i32 = arith.constant 0 : i32
    %c0_i32_0 = arith.constant 0 : i32
    %c0_i32_1 = arith.constant 0 : i32
    %c0_i32_2 = arith.constant 0 : i32
    return %c0_i32, %c0_i32_0, %c0_i32_1 : i32, i32, i32
  }
  func.func @transform_11(%arg0: i32) -> (i32, i32, i32) {
    %c0_i32 = arith.constant 0 : i32
    %c0_i32_0 = arith.constant 0 : i32
    %c0_i32_1 = arith.constant 0 : i32
    %c0_i32_2 = arith.constant 0 : i32
    return %c0_i32, %c0_i32_0, %c0_i32_1 : i32, i32, i32
  }
  func.func @transform_12(%arg0: i32) -> (i32, i32, i32) {
    %c0_i32 = arith.constant 0 : i32
    %c0_i32_0 = arith.constant 0 : i32
    %c0_i32_1 = arith.constant 0 : i32
    %c0_i32_2 = arith.constant 0 : i32
    return %c0_i32, %c0_i32_0, %c0_i32_1 : i32, i32, i32
  }
  func.func @transform_13(%arg0: i32) -> (i32, i32) {
    %c0_i32 = arith.constant 0 : i32
    %c0_i32_0 = arith.constant 0 : i32
    %c0_i32_1 = arith.constant 0 : i32
    return %c0_i32, %c0_i32_0 : i32, i32
  }
  func.func @transform_14(%arg0: i32) -> (i32, i32) {
    %c0_i32 = arith.constant 0 : i32
    %c0_i32_0 = arith.constant 0 : i32
    %c0_i32_1 = arith.constant 0 : i32
    return %c0_i32, %c0_i32_0 : i32, i32
  }
  func.func @transform_15(%arg0: i32) -> (i32, i32) {
    %c0_i32 = arith.constant 0 : i32
    %c0_i32_0 = arith.constant 0 : i32
    %c0_i32_1 = arith.constant 0 : i32
    return %c0_i32, %c0_i32_0 : i32, i32
  }
  func.func @transform_16(%arg0: i32) -> (i32, i32) {
    %c0_i32 = arith.constant 0 : i32
    %c0_i32_0 = arith.constant 0 : i32
    %c0_i32_1 = arith.constant 0 : i32
    return %c0_i32, %c0_i32_0 : i32, i32
  }
  func.func @transform_17(%arg0: i32) -> (i32, i32) {
    %c0_i32 = arith.constant 0 : i32
    %c0_i32_0 = arith.constant 0 : i32
    %c0_i32_1 = arith.constant 0 : i32
    return %c0_i32, %c0_i32_0 : i32, i32
  }
  func.func @transform_18(%arg0: i32) -> (i32, i32) {
    %c0_i32 = arith.constant 0 : i32
    %c0_i32_0 = arith.constant 0 : i32
    %c0_i32_1 = arith.constant 0 : i32
    return %c0_i32, %c0_i32_0 : i32, i32
  }
  func.func @transform_19(%arg0: i32) -> (i32, i32) {
    %c0_i32 = arith.constant 0 : i32
    %c0_i32_0 = arith.constant 0 : i32
    %c0_i32_1 = arith.constant 0 : i32
    return %c0_i32, %c0_i32_0 : i32, i32
  }
  func.func @transform_20(%arg0: i32) -> (i32, i32) {
    %c0_i32 = arith.constant 0 : i32
    %c0_i32_0 = arith.constant 0 : i32
    %c0_i32_1 = arith.constant 0 : i32
    return %c0_i32, %c0_i32_0 : i32, i32
  }
  func.func @transform_21(%arg0: i32) -> (i32, i32, i32) {
    %c0_i32 = arith.constant 0 : i32
    %c0_i32_0 = arith.constant 0 : i32
    %c0_i32_1 = arith.constant 0 : i32
    return %arg0, %c0_i32, %c0_i32_0 : i32, i32, i32
  }
  func.func @transform_22(%arg0: i32) -> (i32, i32, i32) {
    %c0_i32 = arith.constant 0 : i32
    %c0_i32_0 = arith.constant 0 : i32
    %c0_i32_1 = arith.constant 0 : i32
    return %arg0, %c0_i32, %c0_i32_0 : i32, i32, i32
  }
  func.func @transform_23(%arg0: i32) -> (i32, i32, i32) {
    %c0_i32 = arith.constant 0 : i32
    %c0_i32_0 = arith.constant 0 : i32
    %c0_i32_1 = arith.constant 0 : i32
    return %arg0, %c0_i32, %c0_i32_0 : i32, i32, i32
  }
}

</mosaic_0001>

<bundles_post_ra>
// kernel: tpu_custom_call.1
= control target key start
LH: loop header
LB: loop body
LE: loop exit
PB: predicated region body
PF: predicated region fallthrough
CT: control target
= control target key end

     0   :  { %s10457_s0 = inlined_call_operand.vmem [shape: s32[2,24,1], index: 0, kind: input, shape index: {}]   ;;  %s10458_s1 = inlined_call_operand.vmem [shape: f32[2,1,8], index: 1, kind: input, shape index: {}]   ;;  %s10459_s2 = inlined_call_operand.vmem [shape: f32[2,8,1], index: 2, kind: input, shape index: {}]   ;;  %s10460_s3 = inlined_call_operand.hbm [shape: f32[2,1,16], index: 3, kind: input, shape index: {}]   ;;  %s10461_s4 = inlined_call_operand.hbm [shape: f32[2,1,128], index: 4, kind: input, shape index: {}]   ;;  %s10462_s5 = inlined_call_operand.hbm [shape: bf16[128,128], index: 5, kind: input, shape index: {}]   ;;  %s10463_s6 = inlined_call_operand.hbm [shape: f32[32,128], index: 6, kind: input, shape index: {}]   ;;  %s10464_s7 = inlined_call_operand.hbm [shape: bf16[128,128], index: 7, kind: input, shape index: {}]   ;;  %s10465_s8 = inlined_call_operand.hbm [shape: bf16[2,128,384], index: 8, kind: input, shape index: {}]   ;;  %s10466_s9 = inlined_call_operand.hbm [shape: bf16[2,128,128], index: 9, kind: input, shape index: {}]   ;;  %s10467_s10 = inlined_call_operand.hbm [shape: bf16[2,128,512], index: 10, kind: input, shape index: {}]   ;;  %s10468_s11 = inlined_call_operand.hbm [shape: bf16[2,512,128], index: 11, kind: input, shape index: {}]   ;;  %s10469_s12 = inlined_call_operand.vmem [shape: f32[2,6,128], index: 12, kind: input, shape index: {}]   ;;  %s10470_s13 = inlined_call_operand.hbm [shape: f32[2,384], index: 13, kind: input, shape index: {}]   ;;  %s10471_s14 = inlined_call_operand.hbm [shape: f32[2,512], index: 14, kind: input, shape index: {}]   ;;  %s10472_s15 = inlined_call_operand.hbm [shape: f32[1,128], index: 15, kind: input, shape index: {}]   ;;  %s10473_s16 = inlined_call_operand.<no memory space> [shape: f32[1,1], index: 16, kind: input, shape index: {}]   ;;  %s10474_s17 = inlined_call_operand.hbm [shape: f32[128,128], index: 17, kind: input, shape index: {}]   ;;  %s10475_s18 = inlined_call_operand.hbm [shape: f32[1,128], index: 18, kind: input, shape index: {}]   ;;  %s10476_s19 = inlined_call_operand.vmem [shape: f32[128,128], index: 19, kind: input, shape index: {}]   ;;  %s10477_s20 = inlined_call_operand.vmem [shape: f32[1,128], index: 20, kind: input, shape index: {}]   ;;  %s10478_s21 = inlined_call_operand.hbm [shape: f32[2,16,128], index: 21, kind: output, shape index: {0}]   ;;  %s10479_s22 = inlined_call_operand.hbm [shape: f32[2,16,128], index: 22, kind: output, shape index: {1}]   ;;  %s10480_s23 = inlined_call_operand.hbm [shape: f32[2,1,128], index: 23, kind: output, shape index: {2}]  }
   0x1   :  { %10499 = sst [smem:[#allocation41_spill]] %s10457_s0  ;;  %v29_v0 = vstv %s10473_s16 }
   0x2   :  { %10500 = sst [smem:[#allocation42_spill]] %s10458_s1  ;;  %30 = vst [vmem:[#allocation2] sm:$0x1] %v29_v0 }
   0x3   :  { %10501 = sst [smem:[#allocation43_spill]] %s10459_s2 }
   0x4   :  { %10502 = sst [smem:[#allocation44_spill]] %s10460_s3 }
   0x5   :  { %10503 = sst [smem:[#allocation45_spill]] %s10461_s4 }
   0x6   :  { %10504 = sst [smem:[#allocation46_spill]] %s10462_s5 }
   0x7   :  { %10505 = sst [smem:[#allocation47_spill]] %s10463_s6 }
   0x8   :  { %10506 = sst [smem:[#allocation48_spill]] %s10464_s7 }
   0x9   :  { %10507 = sst [smem:[#allocation49_spill]] %s10465_s8 }
   0xa   :  { %10508 = sst [smem:[#allocation50_spill]] %s10466_s9 }
   0xb   :  { %10509 = sst [smem:[#allocation51_spill]] %s10467_s10 }
   0xc   :  { %10510 = sst [smem:[#allocation52_spill]] %s10468_s11 }
   0xd   :  { %10511 = sst [smem:[#allocation53_spill]] %s10470_s13 }
   0xe   :  { %10512 = sst [smem:[#allocation54_spill]] %s10471_s14 }
   0xf   :  { %10513 = sst [smem:[#allocation55_spill]] %s10472_s15 }
  0x10   :  { %10514 = sst [smem:[#allocation56_spill]] %s10474_s17 }
  0x11   :  { %10515 = sst [smem:[#allocation57_spill]] %s10477_s20 }
  0x12   :  { %10516 = sst [smem:[#allocation58_spill]] %s10478_s21 }
  0x13   :  { %10517 = sst [smem:[#allocation59_spill]] %s10479_s22 }
  0x14   :  { %10518 = sst [smem:[#allocation60_spill]] %s10480_s23 }
  0x15   :  { %31 = vsyncpa [#allocation4], 0 }
  0x16   :  { %33 = vsyncpa [#allocation4 + $0x1], 0 }
  0x17   :  { %34 = vsyncpa [#allocation7], 0 }
  0x18   :  { %36 = vsyncpa [#allocation7 + $0x1], 0 }
  0x19   :  { %37 = vsyncpa [#allocation10], 0 }
  0x1a   :  { %38 = vsyncpa [#allocation13], 0 }
  0x1b   :  { %39 = vsyncpa [#allocation16], 0 }
  0x1c   :  { %40 = vsyncpa [#allocation19], 0 }
  0x1d   :  { %41 = vsyncpa [#allocation22], 0 }
  0x1e   :  { %42 = vsyncpa [#allocation25], 0 }
  0x1f   :  { %43 = vsyncpa [#allocation5], 0 }
  0x20   :  { %45 = vsyncpa [#allocation5 + $0x1], 0 }
  0x21   :  { %46 = vsyncpa [#allocation28], 0 }
  0x22   :  { %48 = vsyncpa [#allocation28 + $0x1], 0  ;;  %s9419_s24 = smov 0   ;;  %s9421_s25 = smov 0  }
  0x23   :  { %s9423_s16 = smov 0   ;;  %s9425_s5 = smov 0  }
  0x24 LB: > { %s9264_s1 = smov [#allocation8]   ;;  %s9440_s2 = sadd.s32 4294967295, %s9262_s5   ;;  %s9262_s5 = sphi %s9425_s5, %s10576_s5   ;;  %s9258_s16 = sphi %s9423_s16, %s10575_s16   ;;  %s9254_s25 = sphi %s9421_s25, %s10574_s25   ;;  %s9250_s24 = sphi %s9419_s24, %s10573_s24  }
  0x25   : > { %s615_s26 = sshll.u32 %s9264_s1, 4  ;;  %p6850_p0 = scmp.ge.s32.totalorder %s9262_s5, 1  ;;  %s616_s26 = int_to_ptr.vmem [resolvable:$true] %s615_s26 }
  0x26   : > { %p10491_p1 = scmp.eq.s32.totalorder %s9440_s2, 0  ;;  %p603_p2 = scmp.lt.s32.totalorder %s9262_s5, 3 }
  0x27   : > { %s9265_s27 = smov [#allocation9]   ;;  %s9266_s29 = smov [#allocation12]  }
  0x28   : > { %p9445_p3 = pnand %p6850_p0, %p603_p2  ;;  %s628_s7 = sshll.u32 %s9265_s27, 4  ;;  %s9458_s7 = int_to_ptr.vmem [resolvable:$true] %s628_s7 }
  0x29   : > { %s9460_s3 = sshll.u32 %s9266_s29, 4  ;;  %s8753_s4 = scalar_lea.vmem %s616_s26, 1024  ;;  %s655_s3 = int_to_ptr.vmem [resolvable:$true] %s9460_s3 }
  0x2a   : > { %s10519_s6 = scalar_select %p9445_p3, 1, 0 }
  0x2b   : > { %p8003_p5 = pneg %p9445_p3  ;;  %p8754_p8 = scmp.ne.s32.totalorder %s616_s26, %s8753_s4 }
  0x2c   : > { %p8761_p11 = scmp.lt.s32.totalorder %s616_s26, %s616_s26  ;;  %p8762_p12 = scmp.lt.s32.totalorder %s8753_s4, %s8753_s4 }
  0x2d   : > { %p9454_p6 = pnand %p8003_p5, %p10491_p1 }
  0x2e   : > { %p8763_p13 = por %p8762_p12, %p8761_p11 }
  0x2f   : > { %p9464_p7 = pneg %p9454_p6 }
  0x31   : > { %p8756_p9 = pnand %p8754_p8, %p9464_p7 }
  0x33   : > { %p8757_p10 = pneg %p8756_p9 }
  0x35   : > { %p8764_p0 = pnand %p8763_p13, %p8757_p10 }
  0x37   : > { %8767 = shalt.err (!%p8764_p0)
}
  0x38   : > { %s10486_s30 = smov 64   ;;  %s10488_s1 = smov 4  }
  0x39   : > { %s10522_s21 = sld [smem:[#allocation46_spill]]  ;;  %s8779_s23 = scalar_lea.vmem %s9458_s7, 512 }
  0x3a   : > { %p8780_p2 = scmp.ne.s32.totalorder %s9458_s7, %s8779_s23  ;;  %p8787_p9 = scmp.lt.s32.totalorder %s9458_s7, %s9458_s7 }
  0x3b   : > { %p8788_p10 = scmp.lt.s32.totalorder %s8779_s23, %s8779_s23 }
  0x3c   : > { %p8782_p5 = pnand %p8780_p2, %p9464_p7 }
  0x3d   : > { %p8789_p11 = por %p8788_p10, %p8787_p9 }
  0x3e   : > { %p8783_p8 = pneg %p8782_p5 }
  0x3f   : > { %8006 = dma.hbm_to_vmem [thread:$0]  (!%p9454_p6), %s10522_s21, 1024, %s616_s26, [#allocation7], %s10486_s30, %s10486_s30, %s10488_s1  }
  0x40   : > { %p8790_p12 = pnand %p8789_p11, %p8783_p8 }
  0x42   : > { %8793 = shalt.err (!%p8790_p12)
}
  0x43   : > { %s10490_s4 = smov 128   ;;  %s9270_s22 = smov 8  }
  0x44   : > { %s10523_s27 = sld [smem:[#allocation47_spill]]  ;;  %s8805_s29 = scalar_lea.vmem %s655_s3, 6144 }
  0x45   : > { %p8806_p13 = scmp.ne.s32.totalorder %s655_s3, %s8805_s29  ;;  %p8813_p5 = scmp.lt.s32.totalorder %s655_s3, %s655_s3 }
  0x46   : > { %p8814_p8 = scmp.lt.s32.totalorder %s8805_s29, %s8805_s29 }
  0x47   : > { %p8808_p0 = pnand %p8806_p13, %p9464_p7 }
  0x48   : > { %p8815_p9 = por %p8814_p8, %p8813_p5 }
  0x49   : > { %p8809_p2 = pneg %p8808_p0 }
  0x4a   : > { %8009 = dma.hbm_to_vmem [thread:$0]  (!%p9454_p6), %s10523_s27, 512, %s9458_s7, [#allocation10], %s10490_s4, %s10490_s4, %s9270_s22  }
  0x4b   : > { %p8816_p10 = pnand %p8815_p9, %p8809_p2 }
  0x4d   : > { %8819 = shalt.err (!%p8816_p10)
}
  0x4e   : > { %s9271_s23 = smov 192   ;;  %s9272_s30 = smov 12  }
  0x4f   : > { %s10524_s8 = sld [smem:[#allocation49_spill]]  ;;  %s9273_s7 = smov [#allocation15]  }
  0x50   : > { %s680_s21 = sshll.u32 %s9273_s7, 4  ;;  %s681_s21 = int_to_ptr.vmem [resolvable:$true] %s680_s21 }
  0x51   : > { %s8831_s26 = scalar_lea.vmem %s681_s21, 8192  ;;  %p8839_p0 = scmp.lt.s32.totalorder %s681_s21, %s681_s21 }
  0x52   : > { %p8832_p11 = scmp.ne.s32.totalorder %s681_s21, %s8831_s26  ;;  %p8840_p2 = scmp.lt.s32.totalorder %s8831_s26, %s8831_s26 }
  0x54   : > { %p8834_p12 = pnand %p8832_p11, %p9464_p7  ;;  %p8841_p5 = por %p8840_p2, %p8839_p0 }
  0x55   : > { %8015 = dma.hbm_to_vmem [thread:$0]  (!%p9454_p6), %s10524_s8, 6144, %s655_s3, [#allocation13], %s9271_s23, %s9271_s23, %s9272_s30  }
  0x56   : > { %p8835_p13 = pneg %p8834_p12 }
  0x58   : > { %p8842_p8 = pnand %p8841_p5, %p8835_p13 }
  0x5a   : > { %8845 = shalt.err (!%p8842_p8)
}
  0x5b   : > { %s9274_s27 = smov 256   ;;  %s9275_s29 = smov 16  }
  0x5c   : > { %s10525_s10 = sld [smem:[#allocation51_spill]]  ;;  %s9276_s30 = smov [#allocation18]  }
  0x5d   : > { %s710_s1 = sshll.u32 %s9276_s30, 4  ;;  %s9277_s23 = smov [#allocation21]   ;;  %s711_s1 = int_to_ptr.vmem [resolvable:$true] %s710_s1 }
  0x5e   : > { %s732_s7 = sshll.u32 %s9277_s23, 4  ;;  %s8857_s4 = scalar_lea.vmem %s711_s1, 96  ;;  %s733_s7 = int_to_ptr.vmem [resolvable:$true] %s732_s7 }
  0x5f   : > { %p8858_p9 = scmp.ne.s32.totalorder %s711_s1, %s8857_s4  ;;  %p8865_p12 = scmp.lt.s32.totalorder %s711_s1, %s711_s1 }
  0x60   : > { %p8866_p13 = scmp.lt.s32.totalorder %s8857_s4, %s8857_s4 }
  0x61   : > { %p8860_p10 = pnand %p8858_p9, %p9464_p7 }
  0x62   : > { %8021 = dma.hbm_to_vmem [thread:$0]  (!%p9454_p6), %s10525_s10, 8192, %s681_s21, [#allocation16], %s9274_s27, %s9274_s27, %s9275_s29  }
  0x63   : > { %p8861_p11 = pneg %p8860_p10  ;;  %p8867_p0 = por %p8866_p13, %p8865_p12 }
  0x65   : > { %p8868_p2 = pnand %p8867_p0, %p8861_p11 }
  0x67   : > { %8871 = shalt.err (!%p8868_p2)
}
  0x68   : > { %s10526_s13 = sld [smem:[#allocation53_spill]]  ;;  %s8883_s27 = scalar_lea.vmem %s733_s7, 16 }
  0x69   : > { %p8884_p5 = scmp.ne.s32.totalorder %s733_s7, %s8883_s27  ;;  %s8890_s29 = scalar_lea.vmem %s733_s7, 32 }
  0x6a   : > { %p8891_p9 = scmp.lt.s32.totalorder %s733_s7, %s733_s7  ;;  %p8892_p10 = scmp.lt.s32.totalorder %s8890_s29, %s8883_s27 }
  0x6b   : > { %p8886_p8 = pnand %p8884_p5, %p9464_p7 }
  0x6c   : > { %p8893_p1 = por %p8892_p10, %p8891_p9 }
  0x6d   : > { %p8887_p4 = pneg %p8886_p8 }
  0x6e   : > { %8027 = dma.hbm_to_vmem [thread:$0]  (!%p9454_p6), %s10526_s13, 96, %s711_s1, [#allocation19]  }
  0x6f   : > { %p8894_p3 = pnand %p8893_p1, %p8887_p4 }
  0x71   : > { %8897 = shalt.err (!%p8894_p3)
}
  0x72   : > { %s10527_s15 = sld [smem:[#allocation55_spill]]  ;;  %s9278_s3 = smov [#allocation11]  }
  0x73   : > { %s641_s30 = sshll.u32 %s9278_s3, 4  ;;  %s9279_s1 = smov [#allocation14]   ;;  %s642_s30 = int_to_ptr.vmem [resolvable:$true] %s641_s30 }
  0x74   : > { %s667_s23 = sshll.u32 %s9279_s1, 4  ;;  %s8909_s26 = scalar_lea.vmem %s642_s30, 1024  ;;  %s668_s23 = int_to_ptr.vmem [resolvable:$true] %s667_s23 }
  0x75   : > { %p8910_p11 = scmp.ne.s32.totalorder %s642_s30, %s8909_s26  ;;  %p8917_p1 = scmp.lt.s32.totalorder %s642_s30, %s642_s30 }
  0x76   : > { %p8918_p3 = scmp.lt.s32.totalorder %s8909_s26, %s8909_s26 }
  0x77   : > { %p8912_p12 = pnand %p8910_p11, %p9464_p7 }
  0x78   : > { %8033 = dma.hbm_to_vmem [thread:$0]  (!%p9454_p6), %s10527_s15, 16, %s733_s7, [#allocation22]  }
  0x79   : > { %p8913_p13 = pneg %p8912_p12  ;;  %p8919_p4 = por %p8918_p3, %p8917_p1 }
  0x7b   : > { %p8920_p0 = pnand %p8919_p4, %p8913_p13 }
  0x7d   : > { %8923 = shalt.err (!%p8920_p0)
}
  0x7e   : > { %s10528_s21 = smov 4   ;;  %s10529_s7 = smov 64  }
  0x7f   : > { %s10530_s4 = sld [smem:[#allocation48_spill]]  ;;  %s8935_s20 = scalar_lea.vmem %s668_s23, 2048 }
  0x80   : > { %p8936_p2 = scmp.ne.s32.totalorder %s668_s23, %s8935_s20  ;;  %p8943_p9 = scmp.lt.s32.totalorder %s668_s23, %s668_s23 }
  0x81   : > { %p8944_p10 = scmp.lt.s32.totalorder %s8935_s20, %s8935_s20 }
  0x82   : > { %p8938_p5 = pnand %p8936_p2, %p9464_p7 }
  0x83   : > { %p8945_p11 = por %p8944_p10, %p8943_p9 }
  0x84   : > { %p8939_p8 = pneg %p8938_p5 }
  0x85   : > { %8012 = dma.hbm_to_vmem [thread:$0]  (!%p9454_p6), %s10530_s4, 1024, %s642_s30, [#allocation10], %s10529_s7, %s10529_s7, %s10528_s21  }
  0x86   : > { %p8946_p12 = pnand %p8945_p11, %p8939_p8 }
  0x88   : > { %8949 = shalt.err (!%p8946_p12)
}
  0x89   : > { %s10531_s9 = sld [smem:[#allocation50_spill]]  ;;  %s9280_s30 = smov [#allocation17]  }
  0x8a   : > { %s693_s26 = sshll.u32 %s9280_s30, 4  ;;  %s9281_s27 = smov [#allocation20]   ;;  %s694_s26 = int_to_ptr.vmem [resolvable:$true] %s693_s26 }
  0x8b   : > { %s721_s29 = sshll.u32 %s9281_s27, 4  ;;  %s8961_s4 = scalar_lea.vmem %s694_s26, 8192  ;;  %s722_s29 = int_to_ptr.vmem [resolvable:$true] %s721_s29 }
  0x8c   : > { %p8962_p13 = scmp.ne.s32.totalorder %s694_s26, %s8961_s4  ;;  %p8969_p4 = scmp.lt.s32.totalorder %s694_s26, %s694_s26 }
  0x8d   : > { %p8970_p0 = scmp.lt.s32.totalorder %s8961_s4, %s8961_s4 }
  0x8e   : > { %p8964_p1 = pnand %p8962_p13, %p9464_p7 }
  0x8f   : > { %8018 = dma.hbm_to_vmem [thread:$0]  (!%p9454_p6), %s10531_s9, 2048, %s668_s23, [#allocation13], %s10529_s7, %s10529_s7, %s10528_s21  }
  0x90   : > { %p8965_p3 = pneg %p8964_p1  ;;  %p8971_p2 = por %p8970_p0, %p8969_p4 }
  0x92   : > { %p8972_p5 = pnand %p8971_p2, %p8965_p3 }
  0x94   : > { %8975 = shalt.err (!%p8972_p5)
}
  0x95   : > { %s10532_s11 = sld [smem:[#allocation52_spill]]  ;;  %s8987_s3 = scalar_lea.vmem %s722_s29, 128 }
  0x96   : > { %p8988_p8 = scmp.ne.s32.totalorder %s722_s29, %s8987_s3  ;;  %p8995_p11 = scmp.lt.s32.totalorder %s722_s29, %s722_s29 }
  0x97   : > { %p8996_p12 = scmp.lt.s32.totalorder %s8987_s3, %s8987_s3 }
  0x98   : > { %p8990_p9 = pnand %p8988_p8, %p9464_p7 }
  0x99   : > { %p8997_p13 = por %p8996_p12, %p8995_p11 }
  0x9a   : > { %p8991_p10 = pneg %p8990_p9 }
  0x9b   : > { %8024 = dma.hbm_to_vmem [thread:$0]  (!%p9454_p6), %s10532_s11, 8192, %s694_s26, [#allocation16], %s10529_s7, %s10529_s7, %s10528_s21  }
  0x9c   : > { %p8998_p1 = pnand %p8997_p13, %p8991_p10 }
  0x9e   : > { %9001 = shalt.err (!%p8998_p1)
}
  0x9f   : > { %s10533_s14 = sld [smem:[#allocation54_spill]]  ;;  %s9282_s27 = smov [#allocation23]  }
  0xa0   : > { %s745_s4 = sshll.u32 %s9282_s27, 4  ;;  %s9283_s21 = smov [#allocation24]   ;;  %s746_s4 = int_to_ptr.vmem [resolvable:$true] %s745_s4 }
  0xa1   : > { %s759_s7 = sshll.u32 %s9283_s21, 4  ;;  %s9013_s26 = scalar_lea.vmem %s746_s4, 2048  ;;  %s760_s7 = int_to_ptr.vmem [resolvable:$true] %s759_s7 }
  0xa2   : > { %p9014_p3 = scmp.ne.s32.totalorder %s746_s4, %s9013_s26  ;;  %p9021_p2 = scmp.lt.s32.totalorder %s746_s4, %s746_s4 }
  0xa3   : > { %p9022_p5 = scmp.lt.s32.totalorder %s9013_s26, %s9013_s26 }
  0xa4   : > { %p9016_p4 = pnand %p9014_p3, %p9464_p7 }
  0xa5   : > { %8030 = dma.hbm_to_vmem [thread:$0]  (!%p9454_p6), %s10533_s14, 128, %s722_s29, [#allocation19]  }
  0xa6   : > { %p9017_p0 = pneg %p9016_p4  ;;  %p9023_p8 = por %p9022_p5, %p9021_p2 }
  0xa8   : > { %p9024_p9 = pnand %p9023_p8, %p9017_p0 }
  0xaa   : > { %9027 = shalt.err (!%p9024_p9)
}
  0xab   : > { %s10534_s29 = smov 128   ;;  %s10535_s17 = sld [smem:[#allocation56_spill]] }
  0xac   : > { %s9039_s3 = scalar_lea.vmem %s760_s7, 16  ;;  %s9046_s1 = scalar_lea.vmem %s760_s7, 32 }
  0xad   : > { %p9040_p10 = scmp.ne.s32.totalorder %s760_s7, %s9039_s3  ;;  %p9047_p13 = scmp.lt.s32.totalorder %s760_s7, %s760_s7 }
  0xae   : > { %p9048_p1 = scmp.lt.s32.totalorder %s9046_s1, %s9039_s3 }
  0xaf   : > { %p9042_p11 = pnand %p9040_p10, %p9464_p7 }
  0xb0   : > { %p9049_p3 = por %p9048_p1, %p9047_p13 }
  0xb1   : > { %8036 = dma.hbm_to_vmem [thread:$0]  (!%p9454_p6), %s10535_s17, 2048, %s746_s4, [#allocation22], %s10534_s29, %s10534_s29, %s9270_s22  }
  0xb2   : > { %p9043_p12 = pneg %p9042_p11 }
  0xb4   : > { %p9050_p4 = pnand %p9049_p3, %p9043_p12 }
  0xb6   : > { %9053 = shalt.err (!%p9050_p4)
}
  0xb7   : > { %8039 = dma.hbm_to_vmem [thread:$0]  (!%p9454_p6), %s10475_s18, 16, %s760_s7, [#allocation25]  }
  0xb8   : > { %s10493_s22 = sadd.s32 4294967294, %s9262_s5   ;;  %s9578_s28 = sadd.s32 1, %s9262_s5  }
  0xb9   : > { %s136_s0 = ssub.s32 %s9262_s5, %s9578_s28  ;;  %s139_s4 = sadd.s32 1, %s9258_s16 }
  0xba   : > { %p137_p7 = scmp.eq.s32.totalorder %s136_s0, 0  ;;  %p146_p0 = scmp.ne.s32.totalorder %s9258_s16, %s9254_s25 }
  0xbb   : > { %p147_p2 = scmp.eq.s32.totalorder %s9262_s5, 0  ;;  %p152_p5 = scmp.ne.s32.totalorder %s9254_s25, %s9250_s24 }
  0xbc   : > { %s9589_s21 = scalar_select %p137_p7, %s9258_s16, %s139_s4  }
  0xbd   : > { %p9591_p8 = por %p147_p2, %p146_p0  ;;  %p10537_p9 = scmp.eq.s32.totalorder %s9440_s2, 0 }
  0xbe   : > { %p538_p10 = scmp.eq.s32.totalorder %s9440_s2, 1  ;;  %p544_p11 = scmp.eq.s32.totalorder %s10493_s22, 1 }
  0xbf   : > { %p9597_p6 = por %p10537_p9, %p152_p5  ;;  %p8069_p12 = scmp.lt.s32.totalorder %s9262_s5, 2 }
  0xc0   : > { %s9606_s29 = sand.u32 1, %s9258_s16   ;;  %p9608_p13 = por %p538_p10, %p146_p0 }
  0xc1   : > { %s10538_s7 = scalar_select %p9597_p6, 1, 0 }
  0xc2   : > { %s10539_s23 = scalar_select %p9608_p13, 1, 0 }
  0xc3   : > { %p9612_p1 = por %p544_p11, %p152_p5  ;;  %s6864_s3 = sshll.u32 %s9262_s5, 4 }
  0xc4   : > { %s800_s1 = scalar_lea.vmem [#allocation3], %s9606_s29  ;;  %s10541_s4 = sld [smem:[#allocation44_spill]] }
  0xc5   : > { %s10540_s20 = scalar_select %p9612_p1, 1, 0 }
  0xc6   : > { %s807_s30 = sshll.u32 %s800_s1, 4  ;;  %p9627_p3 = pnand %p8069_p12, %p9591_p8  ;;  %s9623_s30 = int_to_ptr.vmem [resolvable:$true] %s807_s30 }
  0xc7   : > { %s10543_s11 = sld [smem:[#allocation45_spill]]  ;;  %s814_s27 = sand.u32 1, %s9262_s5  }
  0xc8   : > { %s798_s0 = scalar_lea.sflag [#allocation4], %s9606_s29  ;;  %p9056_p7 = pneg %p9627_p3 }
  0xca   : > { %s9621_s22 = scalar_lea.hbm %s10541_s4, %s6864_s3  ;;  %s9059_s15 = scalar_lea.hbm %s10541_s4, 32 }
  0xcb   : > { %s9054_s13 = scalar_lea.hbm %s9621_s22, 16  ;;  %p9060_p5 = scmp.lt.s32.totalorder %s9621_s22, %s10541_s4 }
  0xcc   : > { %p9055_p4 = scmp.ne.s32.totalorder %s9621_s22, %s9054_s13  ;;  %p9061_p8 = scmp.lt.s32.totalorder %s9059_s15, %s9054_s13 }
  0xcd   : > { %s9634_s1 = scalar_lea.hbm %s10543_s11, %s6864_s3 }
  0xce   : > { %p9057_p0 = pnand %p9056_p7, %p9055_p4  ;;  %p9062_p9 = por %p9061_p8, %p9060_p5 }
  0xd0   : > { %p9058_p2 = pneg %p9057_p0 }
  0xd2   : > { %p9063_p10 = pnand %p9062_p9, %p9058_p2 }
  0xd4   : > { %9066 = shalt.err (!%p9063_p10)
}
  0xd5   : > { %s9067_s10 = scalar_lea.vmem %s9623_s30, 16  ;;  %s9284_s14 = smov [#allocation3]  }
  0xd6   : > { %p9068_p11 = scmp.ne.s32.totalorder %s9623_s30, %s9067_s10  ;;  %s9072_s3 = sshll.u32 %s9284_s14, 4  ;;  %s9073_s3 = int_to_ptr.vmem [resolvable:$false] %s9072_s3 }
  0xd7   : > { %s9074_s26 = scalar_lea.vmem %s9073_s3, 32  ;;  %p9075_p0 = scmp.lt.s32.totalorder %s9623_s30, %s9073_s3 }
  0xd8   : > { %p9070_p12 = pnand %p9068_p11, %p9056_p7  ;;  %p9076_p1 = scmp.lt.s32.totalorder %s9074_s26, %s9067_s10 }
  0xda   : > { %p9071_p4 = pneg %p9070_p12  ;;  %p9077_p13 = por %p9076_p1, %p9075_p0 }
  0xdc   : > { %p9078_p5 = pnand %p9077_p13, %p9071_p4 }
  0xde   : > { %9081 = shalt.err (!%p9078_p5)
}
  0xdf   : > { %8043 = dma.hbm_to_vmem [thread:$0]  (!%p9627_p3), %s9621_s22, 16, %s9623_s30, %s798_s0  }
  0xe0   : > { %s817_s13 = scalar_lea.vmem [#allocation6], %s9606_s29  ;;  %s815_s17 = scalar_lea.sflag [#allocation7], %s814_s27 }
  0xe1   : > { %s824_s15 = sshll.u32 %s817_s13, 4  ;;  %s9082_s9 = scalar_lea.hbm %s9634_s1, 16  ;;  %s825_s15 = int_to_ptr.vmem [resolvable:$true] %s824_s15 }
  0xe2   : > { %p9083_p1 = scmp.ne.s32.totalorder %s9634_s1, %s9082_s9  ;;  %s9087_s3 = scalar_lea.hbm %s10543_s11, 32 }
  0xe3   : > { %p9088_p8 = scmp.lt.s32.totalorder %s9634_s1, %s10543_s11  ;;  %p9089_p9 = scmp.lt.s32.totalorder %s9087_s3, %s9082_s9 }
  0xe4   : > { %p9085_p13 = pnand %p9083_p1, %p9056_p7 }
  0xe5   : > { %p9090_p10 = por %p9089_p9, %p9088_p8 }
  0xe6   : > { %p9086_p2 = pneg %p9085_p13 }
  0xe8   : > { %p9091_p11 = pnand %p9090_p10, %p9086_p2 }
  0xea   : > { %9094 = shalt.err (!%p9091_p11)
}
  0xeb   : > { %s9095_s22 = scalar_lea.vmem %s825_s15, 16  ;;  %s9285_s29 = smov [#allocation6]  }
  0xec   : > { %p9096_p12 = scmp.ne.s32.totalorder %s825_s15, %s9095_s22  ;;  %s9100_s30 = sshll.u32 %s9285_s29, 4  ;;  %s9101_s30 = int_to_ptr.vmem [resolvable:$false] %s9100_s30 }
  0xed   : > { %s9102_s27 = scalar_lea.vmem %s9101_s30, 32  ;;  %p9103_p5 = scmp.lt.s32.totalorder %s825_s15, %s9101_s30 }
  0xee   : > { %p9098_p4 = pnand %p9096_p12, %p9056_p7  ;;  %p9104_p1 = scmp.lt.s32.totalorder %s9102_s27, %s9095_s22 }
  0xf0   : > { %p9099_p0 = pneg %p9098_p4  ;;  %p9105_p13 = por %p9104_p1, %p9103_p5 }
  0xf2   : > { %p9106_p6 = pnand %p9105_p13, %p9099_p0 }
  0xf4   : > { %9109 = shalt.err (!%p9106_p6)
}
  0xf5   : > { %8046 = dma.hbm_to_vmem [thread:$0]  (!%p9627_p3), %s9634_s1, 16, %s825_s15, %s815_s17  }
  0xf6   : > { %p10544_p2 = scmp.ne.s32.totalorder %s10519_s6, 0 }
  0xf7   : > { %s9686_s4 = sand.u32 (!%p10544_p2), 1, %s9254_s25   ;;  %p10545_p7 = scmp.ne.s32.totalorder (!%p10544_p2), %s10538_s7, 0 }
  0xf8   : > { %833 = sbr.rel (%p10544_p2) target bundleno = 9150 (0x23be), region = 104  ;;  %s836_s0 = scalar_lea.sflag (!%p10544_p2), [#allocation4], %s9686_s4 }
  0xf9   : > { %s838_s13 = scalar_lea.vmem (!%p10544_p2), [#allocation3], %s9686_s4 }
  0xfd   : > { %9205 = dma.done.wait (%p10545_p7), %s836_s0, 16  }
  0xfe   : > { %9207 = vsyncadd (%p10545_p7), %s836_s0, 4294967280  ;;  %s843_s8 = sand.u32 1, %s9440_s2   ;;  %s846_s1 = scalar_lea.vmem [#allocation6], %s9686_s4 }
  0xff   : > { %s844_s6 = scalar_lea.sflag [#allocation7], %s843_s8 }
 0x100   : > { %9209 = dma.done.wait (%p10545_p7), %s844_s6, 16  }
 0x101   : > { %9211 = vsyncadd (%p10545_p7), %s844_s6, 4294967280  ;;  %p10546_p6 = scmp.eq.s32.totalorder %s9440_s2, 0 }
 0x103   : > { %9213 = dma.done.wait (%p10546_p6), [#allocation7], 1024   ;;  %p10547_p3 = pmov %p10546_p6 }
 0x105   : > { %9215 = vsyncadd (%p10547_p3), [#allocation7], 4294966272  ;;  %p10548_p8 = pmov %p10547_p3 }
 0x106   : > { %p10549_p9 = pmov %p10547_p3 }
 0x107   : > { %9217 = dma.done.wait (%p10548_p8), [#allocation10], 1536  }
 0x108   : > { %9219 = vsyncadd (%p10549_p9), [#allocation10], 4294965760  ;;  %p10550_p10 = pmov %p10547_p3 }
 0x109   : > { %p10551_p11 = pmov %p10547_p3 }
 0x10a   : > { %9221 = dma.done.wait (%p10550_p10), [#allocation13], 8192  }
 0x10b   : > { %9223 = vsyncadd (%p10551_p11), [#allocation13], 4294959104  ;;  %p10552_p12 = pmov %p10547_p3 }
 0x10c   : > { %p10553_p4 = pmov %p10547_p3 }
 0x10d   : > { %9225 = dma.done.wait (%p10552_p12), [#allocation16], 16384  }
 0x10e   : > { %9227 = vsyncadd (%p10553_p4), [#allocation16], 4294950912  ;;  %p10554_p0 = pmov %p10547_p3 }
 0x110   : > { %9229 = dma.done.wait (%p10554_p0), [#allocation19], 224   ;;  %p10555_p5 = pmov %p10554_p0 }
 0x111   : > { %p10556_p1 = pmov %p10554_p0 }
 0x112   : > { %9231 = vsyncadd (%p10555_p5), [#allocation19], 4294967072 }
 0x113   : > { %9233 = dma.done.wait (%p10556_p1), [#allocation22], 2064   ;;  %p10557_p13 = pmov %p10554_p0 }
 0x114   : > { %p10558_p2 = pmov %p10554_p0 }
 0x115   : > { %9235 = vsyncadd (%p10557_p13), [#allocation22], 4294965232 }
 0x116   : > { %9237 = dma.done.wait (%p10558_p2), [#allocation25], 16   ;;  %p10559_p7 = pmov %p10554_p0 }
 0x117   : > { %p981_p6 = scmp.lt.s32.totalorder %s9440_s2, 1  ;;  %v9286_v1 = vmov 0   ;;  %s10560_s10 = sld [smem:[#allocation41_spill]]  ;;  %v8144_v5 = vld [vmem:[#allocation8 + $0x38] sm:$0xff]   ;;  %v8145_v6 = vld [vmem:[#allocation8 + $0x30] sm:$0xff]   ;;  %v8146_v7 = vld [vmem:[#allocation8 + $0x28] sm:$0xff]   ;;  %v997_v13 = vlaneseq }
 0x118   : > { %9239 = vsyncadd (%p10559_p7), [#allocation25], 4294967280  ;;  %8142 = vset.pattern.permute.xlu0 %v9286_v1  ;;  %8143 = vset.pattern.permute.xlu1 %v9286_v1  ;;  %v8147_v8 = vld [vmem:[#allocation8 + $0x20] sm:$0xff]   ;;  %v8148_v9 = vld [vmem:[#allocation8 + $0x18] sm:$0xff]   ;;  %v9287_v18 = vmov 1.0|1.0  }
 0x119   : > { %s9734_s7 = scalar_select %p981_p6, %s9440_s2, 1  ;;  %1371 = vmatprep.mubr.bf16.mxu1 %v9286_v1  ;;  %7626 = vmatprep.subr.bf16.mxu0 %v8144_v5  ;;  %v8149_v10 = vld [vmem:[#allocation8 + $0x10] sm:$0xff]   ;;  %v8150_v11 = vld [vmem:[#allocation8 + $0x8] sm:$0xff]   ;;  %v8151_v12 = vld [vmem:[#allocation8] sm:$0xff]   ;;  %v9742_v14 = vand.u32 127, %v997_v13  ;;  %v9288_v21 = vmov 0.0  }
 0x11a   : > { %7627 = vmatpush3.bf16.msra.mxu0 %v8144_v5  ;;  %v8152_v19 = vld [vmem:[#allocation12 + $0xac] ss:$12 sps:$4 sm:$0xff]   ;;  %v8154_v20 = vld [vmem:[#allocation12 + $0xa8] ss:$12 sps:$4 sm:$0xff]   ;;  %v8155_v22 = vld [vmem:[#allocation12 + $0xb0] ss:$12 sps:$4 sm:$0xff]  }
 0x11b   : > { %s7944_s15 = smul.u32 24, %s9734_s7  ;;  %7628 = vmatprep.subr.bf16.mxu0 %v8145_v6  ;;  %1339 = vmatprep.subr.bf16.mxu1 %v8152_v19  ;;  %v1134_v24 = vld [vmem:[#allocation9] sm:$0xff]  ;;  %v8158_v30 = vld [vmem:[#allocation12 + $0x90] ss:$12 sps:$4 sm:$0xff]   ;;  %v8167_v37 = vld [vmem:[#allocation12 + $0x68] ss:$12 sps:$4 sm:$0xff]  }
 0x11c   : > { %1340 = vmatpush1.bf16.msra.mxu1 %v8154_v20  ;;  %v8156_v29 = vld [vmem:[#allocation12 + $0x94] ss:$12 sps:$4 sm:$0xff]   ;;  %v8159_v31 = vld [vmem:[#allocation12 + $0x98] ss:$12 sps:$4 sm:$0xff]   ;;  %v8160_v32 = vld [vmem:[#allocation12 + $0x7c] ss:$12 sps:$4 sm:$0xff]  }
 0x11d   : > { %s985_s14 = scalar_lea.vmem %s10560_s10, %s7944_s15  ;;  %1341 = vmatprep.subr.bf16.mxu1 %v8156_v29  ;;  %v8162_v33 = vld [vmem:[#allocation12 + $0x78] ss:$12 sps:$4 sm:$0xff]   ;;  %v8163_v34 = vld [vmem:[#allocation12 + $0x80] ss:$12 sps:$4 sm:$0xff]   ;;  %v8170_v39 = vld [vmem:[#allocation12 + $0x48] ss:$12 sps:$4 sm:$0xff]  }
 0x11e   : > { %v994_v2 = vld [vmem:[%s985_s14] sm:$0xff]  ;;  %v995_v3 = vld [vmem:[%s985_s14 + $0x8] sm:$0xff]  ;;  %v996_v4 = vld [vmem:[%s985_s14 + $0x10] sm:$0xff]  ;;  %7629 = vmatpush3.bf16.msra.mxu0 %v8145_v6  ;;  %vm9289_vm5 = vmmov 0   ;;  %v9766_v57 = vshrl.u32 %v997_v13, 7  ;;  %vm1487_vm6 = vcmask 1043456  }
 0x11f   : > { %1000 = vperm.xlu0 %8142, %v994_v2   ;;  %1006 = vperm.xlu1 %8143, %v996_v4   ;;  %v8164_v35 = vld [vmem:[#allocation12 + $0x64] ss:$12 sps:$4 sm:$0xff]   ;;  %v8166_v36 = vld [vmem:[#allocation12 + $0x60] ss:$12 sps:$4 sm:$0xff]   ;;  %v8176_v44 = vld [vmem:[#allocation12 + $0x1c] ss:$12 sps:$4 sm:$0xff]  }
 0x120   : > { %7630 = vmatprep.subr.bf16.mxu0 %v8146_v7  ;;  %1342 = vmatpush1.bf16.msra.mxu1 %v8158_v30  ;;  %v8168_v38 = vld [vmem:[#allocation12 + $0x4c] ss:$12 sps:$4 sm:$0xff]   ;;  %v8171_v40 = vld [vmem:[#allocation12 + $0x50] ss:$12 sps:$4 sm:$0xff]   ;;  %v8172_v41 = vld [vmem:[#allocation12 + $0x34] ss:$12 sps:$4 sm:$0xff]   ;;  %vm3797_vm12 = vcmp.ge.s32.totalorder %v9766_v57, %v9742_v14 }
 0x121   : > { %1343 = vmatprep.subr.bf16.mxu1 %v8160_v32  ;;  %v8174_v42 = vld [vmem:[#allocation12 + $0x30] ss:$12 sps:$4 sm:$0xff]   ;;  %v8175_v43 = vld [vmem:[#allocation12 + $0x38] ss:$12 sps:$4 sm:$0xff]   ;;  %v8179_v46 = vld [vmem:[#allocation12 + $0x20] ss:$12 sps:$4 sm:$0xff]  }
 0x122   : > { %7631 = vmatpush3.bf16.msra.mxu0 %v8146_v7  ;;  %v8178_v45 = vld [vmem:[#allocation12 + $0x18] ss:$12 sps:$4 sm:$0xff]   ;;  %v8182_v48 = vld [vmem:[#allocation12] ss:$12 sps:$4 sm:$0xff]   ;;  %v8183_v49 = vld [vmem:[#allocation12 + $0x8] ss:$12 sps:$4 sm:$0xff]  }
 0x123   : > { %1003 = vperm.xlu0 %8142, %v995_v3   ;;  %7632 = vmatprep.subr.bf16.mxu0 %v8147_v8  ;;  %v8180_v47 = vld [vmem:[#allocation12 + $0x4] ss:$12 sps:$4 sm:$0xff]   ;;  %v9769_v58 = vsub.s32 0, %v9766_v57  ;;  %v9774_v59 = vld [vmem:[%s10469_s12] sm:$0x3f]  ;;  %v9777_v60 = vsub.s32 1, %v9766_v57 }
 0x124   : > { %1344 = vmatpush1.bf16.msra.mxu1 %v8162_v33  ;;  %v9788_v6 = vsub.s32 2, %v9766_v57  ;;  %s10561_s30 = sld [smem:[#allocation42_spill]]  ;;  %v9290_v32 = vmov -1e+09   ;;  %vm1470_vm8 = vcmask 64512   ;;  %s6882_s15 = sshll.u32 %s9734_s7, 3 }
 0x125   : > { %1345 = vmatprep.subr.bf16.mxu1 %v8164_v35  ;;  %v1155_v62 = vrot.slane %v9774_v59, %v9769_v58  ;;  %v1160_v2 = vrot.slane %v9774_v59, %v9777_v60  ;;  %s10562_s10 = sld [smem:[#allocation43_spill]]  ;;  %vm3572_vm9 = vcmask 7168   ;;  %s980_s29 = scalar_lea.vmem [#allocation29], %s9686_s4  ;;  %vm3784_vm10 = vcmp.eq.s32.totalorder %v9766_v57, 0 }
 0x126   : > { %7633 = vmatpush3.bf16.msra.mxu0 %v8147_v8  ;;  %v1137_v8 = vld [vmem:[#allocation18] ss:$2 sm:$0x7]  ;;  %s10563_s0 = sld [smem:[#allocation57_spill]]  ;;  %s6879_s17 = sshll.u32 %s9686_s4, 4 }
 0x127   : > { %7634 = vmatprep.subr.bf16.mxu0 %v8148_v9  ;;  %s974_s9 = scalar_lea.vmem [#allocation27], %s6879_s17  ;;  %s10564_s22 = sld [smem:[#allocation59_spill]] }
 0x128   : > { %1346 = vmatpush1.bf16.msra.mxu1 %v8166_v36  ;;  %p10565_p8 = scmp.ne.s32.totalorder %s10539_s23, 0 }
 0x129   : > { %1347 = vmatprep.subr.bf16.mxu1 %v8168_v38 }
 0x12a   : > { %7635 = vmatpush3.bf16.msra.mxu0 %v8148_v9  ;;  %v1203_v9 = vrot.slane %v1137_v8, %v9777_v60  ;;  %s988_s27 = scalar_lea.vmem %s10561_s30, %s9734_s7  ;;  %s10497_s7 = sshll.u32 %s9440_s2, 8 }
 0x12b   : > { %7636 = vmatprep.subr.bf16.mxu0 %v8149_v10  ;;  %s992_s14 = scalar_lea.vmem %s10562_s10, %s6882_s15  ;;  %s6542_s10 = sshll.u32 %s974_s9, 4  ;;  %s10346_s10 = int_to_ptr.vmem [resolvable:$true] %s6542_s10 }
 0x12c   : > { %1348 = vmatpush1.bf16.msra.mxu1 %v8170_v39 }
 0x12d   : > { %1349 = vmatprep.subr.bf16.mxu1 %v8172_v41  ;;  %s10354_s30 = scalar_lea.hbm %s10564_s22, %s10497_s7 }
 0x12e   : > { %7637 = vmatpush3.bf16.msra.mxu0 %v8149_v10 }
 0x12f   : > { %7638 = vmatprep.subr.bf16.mxu0 %v8150_v11 }
 0x130   : > { %1350 = vmatpush1.bf16.msra.mxu1 %v8174_v42 }
 0x131   : > { %1351 = vmatprep.subr.bf16.mxu1 %v8176_v44 }
 0x132   : > { %7639 = vmatpush3.bf16.msra.mxu0 %v8150_v11 }
 0x133   : > { %7640 = vmatprep.subr.bf16.mxu0 %v8151_v12 }
 0x134   : > { %1352 = vmatpush1.bf16.msra.mxu1 %v8178_v45 }
 0x135   : > { %1353 = vmatprep.subr.bf16.mxu1 %v8180_v47 }
 0x136   : > { %7641 = vmatpush3.bf16.msra.mxu0 %v8151_v12  ;;  %v1207_v12 = vrot.slane %v1137_v8, %v9788_v6 }
 0x137   : > { %7646 = vmatprep.subr.bf16.mxu0 %v9288_v21 }
 0x138   : > { %1354 = vmatpush1.bf16.msra.mxu1 %v8182_v48 }
 0x139   : > { %7666 = vmatprep.subr.bf16.mxu1 %v9288_v21 }
 0x19a   : > { %v1001_v15 = vpop.permute.xlu0 %1000  ;;  %v1007_v16 = vpop.permute.xlu1 %1006 }
 0x19b   : > { %vm1010_vm0 = vcmp.eq.s32.totalorder %v9742_v14, %v1007_v16  ;;  %vm1008_vm2 = vcmp.eq.s32.totalorder %v9742_v14, %v1001_v15 }
 0x19c   : > { %vm6896_vm1 = vmpackc.low %vm1010_vm0, %vm1010_vm0 }
 0x19e   : > { %v1004_v17 = vpop.permute.xlu0 %1003 }
 0x19f   : > { %vm1009_vm3 = vcmp.eq.s32.totalorder %v9742_v14, %v1004_v17  ;;  %v1199_v17 = vrot.slane %v1137_v8, %v9769_v58  ;;  %v8194_v8 = vld [vmem:[#allocation15 + $0xe4] ss:$16 sps:$4 sm:$0xff]  }
 0x1a0   : > { %vm6894_vm4 = vmpackc.low %vm1009_vm3, %vm1008_vm2 }
 0x1a1   : > { %7642 = vmatprep.mubr.msk.bf16.mxu0 %vm6894_vm4, %v9287_v18 }
 0x1a2   : > { %7643 = vmatmul.mubr.msk.bf16.vlgmr.msra.gmra.mxu0 %vm6896_vm1, %v9287_v18  ;;  %vm4159_vm1 = vcmask 130048  }
 0x1a3   : > { %7647 = vmatpush3.bf16.msra.mxu0 %v8155_v22  ;;  %7662 = vmatprep.mubr.msk.bf16.mxu0 %vm9289_vm5, %v9288_v21 }
 0x1a4   : > { %7648 = vmatprep.subr.bf16.mxu0 %v9288_v21 }
 0x1a7   : > { %7649 = vmatpush3.bf16.msra.mxu0 %v8159_v31  ;;  %v1131_v31 = vld [vmem:[%s988_s27] sm:$0x1]  ;;  %s10358_s27 = scalar_lea.sflag [#allocation28], %s843_s8 }
 0x1a8   : > { %7650 = vmatprep.subr.bf16.mxu0 %v9288_v21  ;;  %vm1132_vm7 = vcmp.gt.f32.partialorder %v1131_v31, 0.0  ;;  %v8212_v31 = vld [vmem:[#allocation15 + $0x84] ss:$16 sps:$4 sm:$0xff]  }
 0x1a9   : > { %v1133_v33 = vsel %vm1132_vm7, 0.0, %v9290_v32 }
 0x1ab   : > { %7651 = vmatpush3.bf16.msra.mxu0 %v8163_v34  ;;  %v9806_v34 = vrot.slane %v1133_v33, %v9769_v58  ;;  %v8213_v33 = vld [vmem:[#allocation15 + $0x88] ss:$16 sps:$4 sm:$0xff]  }
 0x1ac   : > { %7652 = vmatprep.subr.bf16.mxu0 %v9288_v21 }
 0x1af   : > { %7653 = vmatpush3.bf16.msra.mxu0 %v8167_v37 }
 0x1b0   : > { %7654 = vmatprep.subr.bf16.mxu0 %v9288_v21 }
 0x1b3   : > { %7655 = vmatpush3.bf16.msra.mxu0 %v8171_v40 }
 0x1b4   : > { %7656 = vmatprep.subr.bf16.mxu0 %v9288_v21 }
 0x1b7   : > { %7657 = vmatpush3.bf16.msra.mxu0 %v8175_v43 }
 0x1b8   : > { %7658 = vmatprep.subr.bf16.mxu0 %v9288_v21 }
 0x1bb   : > { %7659 = vmatpush3.bf16.msra.mxu0 %v8179_v46 }
 0x1bc   : > { %7660 = vmatprep.subr.bf16.mxu0 %v9288_v21 }
 0x1bf   : > { %7661 = vmatpush3.bf16.msra.mxu0 %v8183_v49 }
 0x1c0   : > { %1879 = vmatprep.subr.bf16.mxu0 %v8194_v8 }
 0x262   : > { %v9749_v23 = vpop.f32.mrf.mxu0 }
 0x264   : > { %v1117_v25 = vpop.f32.mrf.mxu0 }
 0x265   : > { %v9751_v26 = vadd.f32 %v1134_v24, %v1117_v25 }
 0x266   : > { %v7645_v27 = vpop.f32.mrf.mxu0 }
 0x267   : > { %1139 = vadd.xlane.f32.xlu1 %v9751_v26  ;;  %v1141_v28 = vmul.f32 %v9751_v26, %v9751_v26 }
 0x268   : > { %v9790_v7 = vpop.f32.mrf.mxu0 }
 0x269   : > { %1142 = vadd.xlane.f32.xlu0 %v1141_v28 }
 0x2f0   : > { %v1140_v50 = vpop.xlane.xlu1 %1139 }
 0x2f1   : > { %v1144_v51 = vmul.f32 0.0078125, %v1140_v50  ;;  %v8184_v50 = vld [vmem:[#allocation14 + $0x38] sm:$0xff]  }
 0x2f2   : > { %v1143_v52 = vpop.xlane.xlu0 %1142 }
 0x2f3   : > { %v1146_v53 = vmul.f32 %v1144_v51, %v1144_v51  ;;  %v1145_v54 = vmul.f32 0.0078125, %v1143_v52  ;;  %v1148_v61 = vsub.f32 %v9751_v26, %v1144_v51  ;;  %v8185_v52 = vld [vmem:[#allocation14 + $0x30] sm:$0xff]  }
 0x2f5   : > { %v1147_v55 = vsub.f32 %v1145_v54, %v1146_v53  ;;  %v8186_v53 = vld [vmem:[#allocation14 + $0x28] sm:$0xff]   ;;  %v8187_v54 = vld [vmem:[#allocation14 + $0x20] sm:$0xff]  }
 0x2f7   : > { %v1149_v56 = vadd.f32 1e-05, %v1147_v55  ;;  %v8188_v55 = vld [vmem:[#allocation14 + $0x18] sm:$0xff]  }
 0x2f9   : > { %8640 = vrsqrt.f32 %v1149_v56  ;;  %v8189_v56 = vld [vmem:[#allocation14 + $0x10] sm:$0xff]  }
 0x306   : > { %v8641_v63 = vpop.eup %8640 }
 0x307   : > { %v1151_v0 = vmul.f32 %v8641_v63, %v1148_v61  ;;  %v8190_v61 = vld [vmem:[#allocation14 + $0x8] sm:$0xff]  }
 0x309   : > { %v1156_v3 = vmul.f32 %v1155_v62, %v1151_v0  ;;  %v8191_v62 = vld [vmem:[#allocation14] sm:$0xff]  }
 0x30b   : > { %v1161_v4 = vadd.f32 %v1160_v2, %v1156_v3 }
 0x30d   : > { %v1162_v5 = vpack.c.bf16 %v1161_v4, %v1161_v4 }
 0x30f   : > { %1372 = vmatmul.mubr.bf16.vlgmr.msra.gmra.mxu1 %v1162_v5  ;;  %7663 = vmatmul.mubr.bf16.vlgmr.msra.gmra.mxu0 %v1162_v5  ;;  %v8192_v5 = vld [vmem:[#allocation15 + $0xe0] ss:$16 sps:$4 sm:$0xff]  }
 0x310   : > { %7668 = vmatprep.mubr.msk.bf16.mxu1 %vm9289_vm5, %v9288_v21  ;;  %1911 = vmatprep.mubr.bf16.mxu0 %v9286_v1 }
 0x311   : > { %1880 = vmatpush1.bf16.msra.mxu0 %v8192_v5 }
 0x3cf   : > { %v1373_v10 = vpop.f32.mrf.mxu1  ;;  %v1414_v11 = vpop.f32.mrf.mxu0 }
 0x3d0   : > { %v1415_v22 = vadd.f32 %v1414_v11, %v1207_v12  ;;  %v1374_v27 = vadd.f32 %v1373_v10, %v1199_v17  ;;  %v8197_v10 = vld [vmem:[#allocation15 + $0xec] ss:$16 sps:$4 sm:$0xff]   ;;  %v1640_v11 = vrot.slane %v9774_v59, %v9788_v6 }
 0x3d1   : > { %v1375_v13 = vpop.f32.mrf.mxu1  ;;  %v7664_v15 = vpop.f32.mrf.mxu0 }
 0x3d2   : > { %v1376_v16 = vadd.f32 %v1375_v13, %v1203_v9  ;;  %v1483_v28 = vpack.c.bf16 %v1415_v22, %v1415_v22  ;;  %v1420_v29 = vpack.c.bf16 %v1374_v27, %v1374_v27  ;;  %v8195_v9 = vld [vmem:[#allocation15 + $0xe8] ss:$16 sps:$4 sm:$0xff]   ;;  %v8203_v22 = vld [vmem:[#allocation15 + $0xcc] ss:$16 sps:$4 sm:$0xff]  }
 0x3d3   : > { %v1377_v18 = vpop.f32.mrf.mxu1  ;;  %v1417_v19 = vpop.f32.mrf.mxu0  ;;  %v8209_v27 = vld [vmem:[#allocation15 + $0xac] ss:$16 sps:$4 sm:$0xff]  }
 0x3d4   : > { %v1421_v20 = vpack.c.bf16 %v1376_v16, %v1376_v16  ;;  %v1489_v30 = vsel %vm1487_vm6, %v1483_v28, 0  ;;  %v8204_v28 = vld [vmem:[#allocation15 + $0xa0] ss:$16 sps:$4 sm:$0xff]  }
 0x3d5   : > { %v1378_v24 = vpop.f32.mrf.mxu1  ;;  %v7665_v25 = vpop.f32.mrf.mxu0 }
 0x3d6   : > { %7667 = vmatpush3.bf16.xpose.msra.mxu1 %v1421_v20  ;;  %v8200_v20 = vld [vmem:[#allocation15 + $0xc4] ss:$16 sps:$4 sm:$0xff]   ;;  %v8198_v24 = vld [vmem:[#allocation15 + $0xc0] ss:$16 sps:$4 sm:$0xff]   ;;  %v8201_v25 = vld [vmem:[#allocation15 + $0xc8] ss:$16 sps:$4 sm:$0xff]  }
 0x3d7   : > { %7672 = vmatprep.subr.bf16.mxu1 %v9288_v21  ;;  %1881 = vmatprep.subr.bf16.mxu0 %v8200_v20  ;;  %v8246_v20 = vld [vmem:[#allocation17 + $0x30] sm:$0xff]  }
 0x3d8   : > { %1882 = vmatpush1.bf16.msra.mxu0 %v8198_v24  ;;  %v8248_v24 = vld [vmem:[#allocation17 + $0x68] sm:$0xff]  }
 0x3dd   : > { %7669 = vmatmul.mubr.bf16.vlgmr.msra.gmra.mxu1 %v1420_v29  ;;  %v8207_v29 = vld [vmem:[#allocation15 + $0xa8] ss:$16 sps:$4 sm:$0xff]  }
 0x3de   : > { %7673 = vmatpush3.bf16.msra.mxu1 %v1489_v30  ;;  %7674 = vmatprep.mubr.msk.bf16.mxu1 %vm9289_vm5, %v9288_v21  ;;  %v8210_v30 = vld [vmem:[#allocation15 + $0x80] ss:$16 sps:$4 sm:$0xff]  }
 0x3df   : > { %7678 = vmatprep.subr.bf16.mxu1 %v9288_v21 }
 0x49d   : > { %v1456_v35 = vpop.f32.mrf.mxu1 }
 0x49e   : > { %v1462_v36 = vmul.f32 0.088388346, %v1456_v35  ;;  %v8215_v35 = vld [vmem:[#allocation15 + $0x8c] ss:$16 sps:$4 sm:$0xff]  }
 0x49f   : > { %v7670_v37 = vpop.f32.mrf.mxu1 }
 0x4a0   : > { %v1469_v38 = vadd.f32 %v9806_v34, %v1462_v36  ;;  %v8218_v36 = vld [vmem:[#allocation15 + $0x64] ss:$16 sps:$4 sm:$0xff]   ;;  %v8221_v37 = vld [vmem:[#allocation15 + $0x6c] ss:$16 sps:$4 sm:$0xff]  }
 0x4a1   : > { %v1459_v39 = vpop.f32.mrf.mxu1 }
 0x4a2   : > { %v1471_v40 = vsel %vm1470_vm8, %v1469_v38, -inf  ;;  %v8219_v39 = vld [vmem:[#allocation15 + $0x68] ss:$16 sps:$4 sm:$0xff]  }
 0x4a3   : > { %1472 = vmax.xlane.f32.xlu0 %v1471_v40  ;;  %v7671_v41 = vpop.f32.mrf.mxu1  ;;  %v8224_v40 = vld [vmem:[#allocation15 + $0x44] ss:$16 sps:$4 sm:$0xff]  }
 0x4a4   : > { %v8227_v41 = vld [vmem:[#allocation15 + $0x4c] ss:$16 sps:$4 sm:$0xff]  }
 0x52c   : > { %v1473_v42 = vpop.xlane.xlu0 %1472 }
 0x52d   : > { %v1474_v43 = vsub.f32 %v1469_v38, %v1473_v42  ;;  %v8216_v38 = vld [vmem:[#allocation15 + $0x60] ss:$16 sps:$4 sm:$0xff]  }
 0x52e   : > { %v8222_v42 = vld [vmem:[#allocation15 + $0x40] ss:$16 sps:$4 sm:$0xff]  }
 0x52f   : > { %v1475_v44 = vmul.f32 1.442695, %v1474_v43  ;;  %v8225_v43 = vld [vmem:[#allocation15 + $0x48] ss:$16 sps:$4 sm:$0xff]  }
 0x531   : > { %8642 = vpow2.f32 %v1475_v44  ;;  %v8230_v44 = vld [vmem:[#allocation15 + $0x24] ss:$16 sps:$4 sm:$0xff]  }
 0x53e   : > { %v8643_v45 = vpop.eup %8642 }
 0x53f   : > { %v1477_v46 = vsel %vm1470_vm8, %v8643_v45, 0.0 }
 0x540   : > { %1478 = vadd.xlane.f32.xlu1 %v1477_v46  ;;  %v8228_v46 = vld [vmem:[#allocation15 + $0x20] ss:$16 sps:$4 sm:$0xff]  }
 0x5c9   : > { %v1479_v47 = vpop.xlane.xlu1 %1478 }
 0x5ca   : > { %8644 = vrcp.f32 %v1479_v47  ;;  %v8231_v47 = vld [vmem:[#allocation15 + $0x28] ss:$16 sps:$4 sm:$0xff]  }
 0x5d7   : > { %v8645_v48 = vpop.eup %8644 }
 0x5d8   : > { %v1481_v49 = vmul.f32 %v8645_v48, %v8643_v45  ;;  %v8233_v45 = vld [vmem:[#allocation15 + $0x2c] ss:$16 sps:$4 sm:$0xff]   ;;  %v8236_v48 = vld [vmem:[#allocation15 + $0x4] ss:$16 sps:$4 sm:$0xff]  }
 0x5da   : > { %v1482_v51 = vpack.c.bf16 %v1481_v49, %v1481_v49  ;;  %v8239_v49 = vld [vmem:[#allocation15 + $0xc] ss:$16 sps:$4 sm:$0xff]  }
 0x5dc   : > { %7675 = vmatmul.mubr.msk.bf16.vlgmr.msra.gmra.mxu1 %vm1470_vm8, %v1482_v51  ;;  %v8237_v51 = vld [vmem:[#allocation15 + $0x8] ss:$16 sps:$4 sm:$0xff]  }
 0x5dd   : > { %7679 = vmatpush3.bf16.msra.mxu1 %v8184_v50  ;;  %7694 = vmatprep.mubr.msk.bf16.mxu1 %vm9289_vm5, %v9288_v21  ;;  %v8234_v50 = vld [vmem:[#allocation15] ss:$16 sps:$4 sm:$0xff]  }
 0x5de   : > { %7680 = vmatprep.subr.bf16.mxu1 %v9288_v21 }
 0x5e1   : > { %7681 = vmatpush3.bf16.msra.mxu1 %v8185_v52 }
 0x5e2   : > { %7682 = vmatprep.subr.bf16.mxu1 %v9288_v21 }
 0x5e5   : > { %7683 = vmatpush3.bf16.msra.mxu1 %v8186_v53 }
 0x5e6   : > { %7684 = vmatprep.subr.bf16.mxu1 %v9288_v21 }
 0x5e9   : > { %7685 = vmatpush3.bf16.msra.mxu1 %v8187_v54 }
 0x5ea   : > { %7686 = vmatprep.subr.bf16.mxu1 %v9288_v21 }
 0x5ed   : > { %7687 = vmatpush3.bf16.msra.mxu1 %v8188_v55 }
 0x5ee   : > { %7688 = vmatprep.subr.bf16.mxu1 %v9288_v21 }
 0x5f1   : > { %7689 = vmatpush3.bf16.msra.mxu1 %v8189_v56 }
 0x5f2   : > { %7690 = vmatprep.subr.bf16.mxu1 %v9288_v21 }
 0x5f5   : > { %7691 = vmatpush3.bf16.msra.mxu1 %v8190_v61 }
 0x5f6   : > { %7692 = vmatprep.subr.bf16.mxu1 %v9288_v21 }
 0x5f9   : > { %7693 = vmatpush3.bf16.msra.mxu1 %v8191_v62 }
 0x5fa   : > { %1920 = vmatprep.subr.bf16.mxu1 %v8197_v10 }
 0x69c   : > { %v1525_v63 = vpop.f32.mrf.mxu1 }
 0x69d   : > { %v1531_v0 = vpack.c.bf16 %v1525_v63, %v1525_v63  ;;  %v9831_v63 = vsub.s32 3, %v9766_v57 }
 0x69e   : > { %v7676_v2 = vpop.f32.mrf.mxu1 }
 0x69f   : > { %7695 = vmatmul.mubr.bf16.vlgmr.msra.gmra.mxu1 %v1531_v0  ;;  %v9834_v0 = vsub.s32 4, %v9766_v57 }
 0x6a0   : > { %v1528_v3 = vpop.f32.mrf.mxu1  ;;  %1952 = vmatprep.mubr.bf16.mxu1 %v9286_v1  ;;  %1921 = vmatpush1.bf16.msra.mxu1 %v8195_v9 }
 0x6a1   : > { %1922 = vmatprep.subr.bf16.mxu1 %v8203_v22  ;;  %v1658_v3 = vrot.slane %v9774_v59, %v9831_v63  ;;  %v1663_v8 = vrot.slane %v9774_v59, %v9834_v0  ;;  %v8247_v22 = vld [vmem:[#allocation17 + $0xb0] sm:$0xff]  }
 0x6a2   : > { %v7677_v4 = vpop.f32.mrf.mxu1 }
 0x6a4   : > { %1923 = vmatpush1.bf16.msra.mxu1 %v8201_v25  ;;  %v8249_v25 = vld [vmem:[#allocation17 + $0xe8] sm:$0xff]  }
 0x6a5   : > { %1924 = vmatprep.subr.bf16.mxu1 %v8209_v27  ;;  %v8251_v27 = vld [vmem:[#allocation17 + $0xa8] sm:$0xff]  }
 0x6a8   : > { %1925 = vmatpush1.bf16.msra.mxu1 %v8207_v29  ;;  %v8253_v29 = vld [vmem:[#allocation17 + $0xe0] sm:$0xff]  }
 0x6a9   : > { %1926 = vmatprep.subr.bf16.mxu1 %v8215_v35  ;;  %v8257_v35 = vld [vmem:[#allocation17 + $0xd8] sm:$0xff]  }
 0x6ac   : > { %1927 = vmatpush1.bf16.msra.mxu1 %v8213_v33  ;;  %v8256_v33 = vld [vmem:[#allocation17 + $0x58] sm:$0xff]  }
 0x6ad   : > { %1928 = vmatprep.subr.bf16.mxu1 %v8221_v37  ;;  %v8259_v37 = vld [vmem:[#allocation17 + $0x98] sm:$0xff]  }
 0x6b0   : > { %1929 = vmatpush1.bf16.msra.mxu1 %v8219_v39  ;;  %v8261_v39 = vld [vmem:[#allocation17 + $0xd0] sm:$0xff]  }
 0x6b1   : > { %1930 = vmatprep.subr.bf16.mxu1 %v8227_v41  ;;  %v8263_v41 = vld [vmem:[#allocation17 + $0x90] sm:$0xff]  }
 0x6b4   : > { %1931 = vmatpush1.bf16.msra.mxu1 %v8225_v43  ;;  %v8265_v43 = vld [vmem:[#allocation17 + $0xc8] sm:$0xff]  }
 0x6b5   : > { %1932 = vmatprep.subr.bf16.mxu1 %v8233_v45  ;;  %v8267_v45 = vld [vmem:[#allocation17 + $0x88] sm:$0xff]  }
 0x6b8   : > { %1933 = vmatpush1.bf16.msra.mxu1 %v8231_v47  ;;  %v8269_v47 = vld [vmem:[#allocation17 + $0xc0] sm:$0xff]  }
 0x6b9   : > { %1934 = vmatprep.subr.bf16.mxu1 %v8239_v49  ;;  %v8271_v49 = vld [vmem:[#allocation17 + $0x80] sm:$0xff]  }
 0x6bc   : > { %1935 = vmatpush1.bf16.msra.mxu1 %v8237_v51 }
 0x75f   : > { %v1630_v12 = vpop.f32.mrf.mxu1 }
 0x760   : > { %v1636_v13 = vadd.f32 %v1630_v12, %v9751_v26  ;;  %v8206_v26 = vld [vmem:[#allocation15 + $0xa4] ss:$16 sps:$4 sm:$0xff]   ;;  %v8240_v12 = vld [vmem:[#allocation17 + $0x78] sm:$0xff]  }
 0x761   : > { %v7696_v15 = vpop.f32.mrf.mxu1  ;;  %1883 = vmatprep.subr.bf16.mxu0 %v8206_v26  ;;  %v8250_v26 = vld [vmem:[#allocation17 + $0x28] sm:$0xff]  }
 0x762   : > { %v9825_v16 = vadd.f32 %v1640_v11, %v1636_v13  ;;  %1884 = vmatpush1.bf16.msra.mxu0 %v8204_v28  ;;  %v8241_v13 = vld [vmem:[#allocation17 + $0xf8] sm:$0xff]   ;;  %v8252_v28 = vld [vmem:[#allocation17 + $0x60] sm:$0xff]  }
 0x763   : > { %v1633_v17 = vpop.f32.mrf.mxu1  ;;  %1885 = vmatprep.subr.bf16.mxu0 %v8212_v31  ;;  %v8242_v15 = vld [vmem:[#allocation17 + $0x38] sm:$0xff]   ;;  %7363 = vmatprep.subr.bf16.mxu1 %v8241_v13  ;;  %v8255_v31 = vld [vmem:[#allocation17 + $0xa0] sm:$0xff]  }
 0x764   : > { %1642 = vadd.xlane.f32.xlu0 %v9825_v16  ;;  %v1644_v18 = vmul.f32 %v9825_v16, %v9825_v16  ;;  %v8243_v17 = vld [vmem:[#allocation17 + $0xb8] sm:$0xff]  }
 0x765   : > { %v7697_v19 = vpop.f32.mrf.mxu1 }
 0x766   : > { %1645 = vadd.xlane.f32.xlu1 %v1644_v18  ;;  %1886 = vmatpush1.bf16.msra.mxu0 %v8210_v30  ;;  %v8244_v18 = vld [vmem:[#allocation17 + $0x70] sm:$0xff]   ;;  %v8254_v30 = vld [vmem:[#allocation17 + $0x20] sm:$0xff]  }
 0x767   : > { %1887 = vmatprep.subr.bf16.mxu0 %v8218_v36  ;;  %v8245_v19 = vld [vmem:[#allocation17 + $0xf0] sm:$0xff]   ;;  %v8258_v36 = vld [vmem:[#allocation17 + $0x18] sm:$0xff]  }
 0x76a   : > { %1888 = vmatpush1.bf16.msra.mxu0 %v8216_v38  ;;  %v8260_v38 = vld [vmem:[#allocation17 + $0x50] sm:$0xff]  }
 0x76b   : > { %1889 = vmatprep.subr.bf16.mxu0 %v8224_v40  ;;  %v8262_v40 = vld [vmem:[#allocation17 + $0x10] sm:$0xff]  }
 0x76e   : > { %1890 = vmatpush1.bf16.msra.mxu0 %v8222_v42  ;;  %v8264_v42 = vld [vmem:[#allocation17 + $0x48] sm:$0xff]  }
 0x76f   : > { %1891 = vmatprep.subr.bf16.mxu0 %v8230_v44  ;;  %v8266_v44 = vld [vmem:[#allocation17 + $0x8] sm:$0xff]  }
 0x772   : > { %1892 = vmatpush1.bf16.msra.mxu0 %v8228_v46  ;;  %v8268_v46 = vld [vmem:[#allocation17 + $0x40] sm:$0xff]  }
 0x773   : > { %1893 = vmatprep.subr.bf16.mxu0 %v8236_v48  ;;  %v8270_v48 = vld [vmem:[#allocation17] sm:$0xff]  }
 0x776   : > { %1894 = vmatpush1.bf16.msra.mxu0 %v8234_v50  ;;  %v1138_v50 = vld [vmem:[#allocation20] ss:$2 sm:$0xf] }
 0x777   : > { %7341 = vmatprep.subr.bf16.mxu0 %v8240_v12  ;;  %v1702_v51 = vrot.slane %v1138_v50, %v9769_v58 }
 0x7ed   : > { %v1643_v52 = vpop.xlane.xlu0 %1642 }
 0x7ee   : > { %v1647_v53 = vmul.f32 0.0078125, %v1643_v52  ;;  %v1710_v52 = vrot.slane %v1138_v50, %v9788_v6 }
 0x7ef   : > { %v1646_v54 = vpop.xlane.xlu1 %1645 }
 0x7f0   : > { %v1649_v55 = vmul.f32 %v1647_v53, %v1647_v53  ;;  %v1648_v56 = vmul.f32 0.0078125, %v1646_v54  ;;  %v1651_v2 = vsub.f32 %v9825_v16, %v1647_v53  ;;  %v1706_v53 = vrot.slane %v1138_v50, %v9777_v60 }
 0x7f1   : > { %v1714_v54 = vrot.slane %v1138_v50, %v9831_v63 }
 0x7f2   : > { %v1650_v61 = vsub.f32 %v1648_v56, %v1649_v55 }
 0x7f4   : > { %v1652_v62 = vadd.f32 1e-05, %v1650_v61 }
 0x7f6   : > { %8646 = vrsqrt.f32 %v1652_v62 }
 0x803   : > { %v8647_v4 = vpop.eup %8646 }
 0x804   : > { %v1654_v5 = vmul.f32 %v8647_v4, %v1651_v2 }
 0x806   : > { %v1659_v9 = vmul.f32 %v1658_v3, %v1654_v5 }
 0x808   : > { %v1664_v10 = vadd.f32 %v1663_v8, %v1659_v9 }
 0x80a   : > { %v1665_v11 = vpack.c.bf16 %v1664_v10, %v1664_v10 }
 0x80c   : > { %1912 = vmatmul.mubr.bf16.vlgmr.msra.gmra.mxu0 %v1665_v11  ;;  %1953 = vmatmul.mubr.bf16.vlgmr.msra.gmra.mxu1 %v1665_v11 }
 0x80d   : > { %7342 = vmatpush3.bf16.msra.mxu0 %v8242_v15  ;;  %7364 = vmatpush3.bf16.msra.mxu1 %v8243_v17 }
 0x80e   : > { %7343 = vmatprep.subr.bf16.mxu0 %v8244_v18  ;;  %7365 = vmatprep.subr.bf16.mxu1 %v8245_v19 }
 0x811   : > { %7344 = vmatpush3.bf16.msra.mxu0 %v8246_v20  ;;  %7366 = vmatpush3.bf16.msra.mxu1 %v8247_v22 }
 0x812   : > { %7345 = vmatprep.subr.bf16.mxu0 %v8248_v24  ;;  %7367 = vmatprep.subr.bf16.mxu1 %v8249_v25 }
 0x815   : > { %7346 = vmatpush3.bf16.msra.mxu0 %v8250_v26  ;;  %7368 = vmatpush3.bf16.msra.mxu1 %v8251_v27 }
 0x816   : > { %7347 = vmatprep.subr.bf16.mxu0 %v8252_v28  ;;  %7369 = vmatprep.subr.bf16.mxu1 %v8253_v29 }
 0x819   : > { %7348 = vmatpush3.bf16.msra.mxu0 %v8254_v30  ;;  %7370 = vmatpush3.bf16.msra.mxu1 %v8255_v31 }
 0x81a   : > { %7349 = vmatprep.subr.bf16.mxu0 %v8256_v33  ;;  %7371 = vmatprep.subr.bf16.mxu1 %v8257_v35 }
 0x81d   : > { %7350 = vmatpush3.bf16.msra.mxu0 %v8258_v36  ;;  %7372 = vmatpush3.bf16.msra.mxu1 %v8259_v37 }
 0x81e   : > { %7351 = vmatprep.subr.bf16.mxu0 %v8260_v38  ;;  %7373 = vmatprep.subr.bf16.mxu1 %v8261_v39 }
 0x821   : > { %7352 = vmatpush3.bf16.msra.mxu0 %v8262_v40  ;;  %7374 = vmatpush3.bf16.msra.mxu1 %v8263_v41 }
 0x822   : > { %7353 = vmatprep.subr.bf16.mxu0 %v8264_v42  ;;  %7375 = vmatprep.subr.bf16.mxu1 %v8265_v43 }
 0x825   : > { %7354 = vmatpush3.bf16.msra.mxu0 %v8266_v44  ;;  %7376 = vmatpush3.bf16.msra.mxu1 %v8267_v45 }
 0x826   : > { %7355 = vmatprep.subr.bf16.mxu0 %v8268_v46  ;;  %7377 = vmatprep.subr.bf16.mxu1 %v8269_v47 }
 0x829   : > { %7356 = vmatpush3.bf16.msra.mxu0 %v8270_v48  ;;  %7378 = vmatpush3.bf16.msra.mxu1 %v8271_v49 }
 0x82a   : > { %7698 = vmatprep.subr.bf16.mxu1 %v9288_v21 }
 0x8cc   : > { %v1913_v55 = vpop.f32.mrf.mxu0  ;;  %v1954_v56 = vpop.f32.mrf.mxu1 }
 0x8cd   : > { %v1914_v61 = vadd.f32 %v1913_v55, %v1702_v51  ;;  %v1955_v62 = vadd.f32 %v1954_v56, %v1710_v52 }
 0x8ce   : > { %v1915_v2 = vpop.f32.mrf.mxu0  ;;  %v1956_v3 = vpop.f32.mrf.mxu1 }
 0x8cf   : > { %v1961_v4 = vmul.f32 %v1914_v61, %v1914_v61  ;;  %v1963_v5 = vmul.f32 %v1955_v62, %v1955_v62  ;;  %v1916_v8 = vadd.f32 %v1915_v2, %v1706_v53  ;;  %v1957_v9 = vadd.f32 %v1956_v3, %v1714_v54  ;;  %v8272_v3 = vld [vmem:[#allocation12 + $0x168] ss:$12 sps:$4 sm:$0xff]  }
 0x8d0   : > { %v1917_v10 = vpop.f32.mrf.mxu0  ;;  %v1958_v11 = vpop.f32.mrf.mxu1 }
 0x8d1   : > { %v1965_v12 = vmul.f32 %v1961_v4, %v1914_v61  ;;  %v1967_v13 = vmul.f32 %v1963_v5, %v1955_v62  ;;  %v1962_v15 = vmul.f32 %v1916_v8, %v1916_v8  ;;  %v1964_v17 = vmul.f32 %v1957_v9, %v1957_v9  ;;  %v8274_v4 = vld [vmem:[#allocation12 + $0x16c] ss:$12 sps:$4 sm:$0xff]   ;;  %v8275_v5 = vld [vmem:[#allocation12 + $0x170] ss:$12 sps:$4 sm:$0xff]  }
 0x8d2   : > { %v1918_v18 = vpop.f32.mrf.mxu0  ;;  %v1959_v19 = vpop.f32.mrf.mxu1  ;;  %2550 = vmatprep.subr.bf16.mxu0 %v8274_v4 }
 0x8d3   : > { %v1969_v20 = vmul.f32 0.044715, %v1965_v12  ;;  %v1971_v22 = vmul.f32 0.044715, %v1967_v13  ;;  %v1966_v24 = vmul.f32 %v1962_v15, %v1916_v8  ;;  %v1968_v25 = vmul.f32 %v1964_v17, %v1957_v9 }
 0x8d5   : > { %v1973_v26 = vadd.f32 %v1969_v20, %v1914_v61  ;;  %v1975_v27 = vadd.f32 %v1971_v22, %v1955_v62  ;;  %v1970_v28 = vmul.f32 0.044715, %v1966_v24  ;;  %v1972_v29 = vmul.f32 0.044715, %v1968_v25 }
 0x8d7   : > { %v1977_v30 = vmul.f32 0.7978846, %v1973_v26  ;;  %v1979_v31 = vmul.f32 0.7978846, %v1975_v27  ;;  %v1974_v33 = vadd.f32 %v1970_v28, %v1916_v8  ;;  %v1976_v35 = vadd.f32 %v1972_v29, %v1957_v9  ;;  %v8278_v26 = vld [vmem:[#allocation12 + $0x154] ss:$12 sps:$4 sm:$0xff]  }
 0x8d8   : > { %v8276_v27 = vld [vmem:[#allocation12 + $0x150] ss:$12 sps:$4 sm:$0xff]   ;;  %v8279_v28 = vld [vmem:[#allocation12 + $0x158] ss:$12 sps:$4 sm:$0xff]  }
 0x8d9   : > { %8648 = vtanh.f32 %v1977_v30  ;;  %v1978_v36 = vmul.f32 0.7978846, %v1974_v33  ;;  %v1980_v37 = vmul.f32 0.7978846, %v1976_v35  ;;  %v8282_v29 = vld [vmem:[#allocation12 + $0x13c] ss:$12 sps:$4 sm:$0xff]  }
 0x8da   : > { %8650 = vtanh.f32 %v1979_v31  ;;  %v8283_v30 = vld [vmem:[#allocation12 + $0x140] ss:$12 sps:$4 sm:$0xff]   ;;  %v8286_v31 = vld [vmem:[#allocation12 + $0x124] ss:$12 sps:$4 sm:$0xff]   ;;  %v8287_v33 = vld [vmem:[#allocation12 + $0x128] ss:$12 sps:$4 sm:$0xff]  }
 0x8db   : > { %8652 = vtanh.f32 %v1978_v36  ;;  %v8290_v35 = vld [vmem:[#allocation12 + $0x10c] ss:$12 sps:$4 sm:$0xff]   ;;  %v8288_v36 = vld [vmem:[#allocation12 + $0x108] ss:$12 sps:$4 sm:$0xff]  }
 0x8dc   : > { %8654 = vtanh.f32 %v1980_v37  ;;  %v8291_v37 = vld [vmem:[#allocation12 + $0x110] ss:$12 sps:$4 sm:$0xff]  }
 0x8e6   : > { %v8649_v38 = vpop.eup %8648 }
 0x8e7   : > { %v8651_v39 = vpop.eup %8650  ;;  %v1985_v40 = vadd.f32 1.0, %v8649_v38  ;;  %v8294_v38 = vld [vmem:[#allocation12 + $0xf4] ss:$12 sps:$4 sm:$0xff]  }
 0x8e8   : > { %v8653_v41 = vpop.eup %8652  ;;  %v1987_v42 = vadd.f32 1.0, %v8651_v39  ;;  %v8292_v39 = vld [vmem:[#allocation12 + $0xf0] ss:$12 sps:$4 sm:$0xff]  }
 0x8e9   : > { %v8655_v43 = vpop.eup %8654  ;;  %v1986_v44 = vadd.f32 1.0, %v8653_v41  ;;  %v1989_v45 = vmul.f32 0.5, %v1985_v40  ;;  %v8295_v40 = vld [vmem:[#allocation12 + $0xf8] ss:$12 sps:$4 sm:$0xff]   ;;  %v8298_v41 = vld [vmem:[#allocation12 + $0xdc] ss:$12 sps:$4 sm:$0xff]  }
 0x8ea   : > { %v1988_v46 = vadd.f32 1.0, %v8655_v43  ;;  %v1991_v47 = vmul.f32 0.5, %v1987_v42  ;;  %v8296_v42 = vld [vmem:[#allocation12 + $0xd8] ss:$12 sps:$4 sm:$0xff]   ;;  %v8299_v43 = vld [vmem:[#allocation12 + $0xe0] ss:$12 sps:$4 sm:$0xff]  }
 0x8eb   : > { %v1990_v48 = vmul.f32 0.5, %v1986_v44  ;;  %v1993_v50 = vmul.f32 %v1989_v45, %v1914_v61  ;;  %v8302_v44 = vld [vmem:[#allocation12 + $0xc4] ss:$12 sps:$4 sm:$0xff]   ;;  %v8300_v45 = vld [vmem:[#allocation12 + $0xc0] ss:$12 sps:$4 sm:$0xff]  }
 0x8ec   : > { %v1992_v49 = vmul.f32 0.5, %v1988_v46  ;;  %v1995_v52 = vmul.f32 %v1991_v47, %v1955_v62  ;;  %v8303_v46 = vld [vmem:[#allocation12 + $0xc8] ss:$12 sps:$4 sm:$0xff]  }
 0x8ed   : > { %v1994_v51 = vmul.f32 %v1990_v48, %v1916_v8  ;;  %v1997_v56 = vpack.c.bf16 %v1993_v50, %v1993_v50 }
 0x8ee   : > { %v1996_v53 = vmul.f32 %v1992_v49, %v1957_v9  ;;  %v1999_v2 = vpack.c.bf16 %v1995_v52, %v1995_v52  ;;  %v9851_v9 = vsub.s32 5, %v9766_v57 }
 0x8ef   : > { %v1998_v54 = vpack.c.bf16 %v1994_v51, %v1994_v51 }
 0x8f0   : > { %v2000_v55 = vpack.c.bf16 %v1996_v53, %v1996_v53  ;;  %v2341_v18 = vrot.slane %v9774_v59, %v9851_v9  ;;  %v8280_v59 = vld [vmem:[#allocation12 + $0x138] ss:$12 sps:$4 sm:$0xff]  }
 0x8f1   : > { %2289 = vmatprep.mubr.bf16.mxu0 %v1998_v54  ;;  %v9871_v54 = vld [vmem:[%s10469_s12 + $0x8] sm:$0x3f] }
 0x8f2   : > { %2329 = vmatprep.mubr.bf16.mxu1 %v2000_v55  ;;  %2290 = vmatmul.mubr.bf16.vlgmr.msra.gmra.mxu0 %v1997_v56  ;;  %v2365_v56 = vrot.slane %v9871_v54, %v9769_v58  ;;  %v2370_v4 = vrot.slane %v9871_v54, %v9777_v60 }
 0x8f3   : > { %2330 = vmatmul.mubr.bf16.vlgmr.msra.gmra.mxu1 %v1999_v2  ;;  %2582 = vmatprep.mubr.bf16.mxu0 %v9286_v1 }
 0x8f4   : > { %7714 = vmatprep.mubr.msk.bf16.mxu1 %vm9289_vm5, %v9288_v21  ;;  %7699 = vmatpush3.bf16.msra.mxu1 %v8275_v5 }
 0x8f5   : > { %2551 = vmatpush1.bf16.msra.mxu0 %v8272_v3  ;;  %7700 = vmatprep.subr.bf16.mxu1 %v9288_v21 }
 0x8f6   : > { %2552 = vmatprep.subr.bf16.mxu0 %v8278_v26 }
 0x8f8   : > { %7701 = vmatpush3.bf16.msra.mxu1 %v8279_v28 }
 0x8f9   : > { %2553 = vmatpush1.bf16.msra.mxu0 %v8276_v27  ;;  %7702 = vmatprep.subr.bf16.mxu1 %v9288_v21 }
 0x8fa   : > { %2554 = vmatprep.subr.bf16.mxu0 %v8282_v29 }
 0x8fc   : > { %7703 = vmatpush3.bf16.msra.mxu1 %v8283_v30 }
 0x8fd   : > { %2555 = vmatpush1.bf16.msra.mxu0 %v8280_v59  ;;  %7704 = vmatprep.subr.bf16.mxu1 %v9288_v21 }
 0x8fe   : > { %2556 = vmatprep.subr.bf16.mxu0 %v8286_v31 }
 0x900   : > { %7705 = vmatpush3.bf16.msra.mxu1 %v8287_v33 }
 0x901   : > { %7706 = vmatprep.subr.bf16.mxu1 %v9288_v21 }
 0x904   : > { %7707 = vmatpush3.bf16.msra.mxu1 %v8291_v37 }
 0x905   : > { %7708 = vmatprep.subr.bf16.mxu1 %v9288_v21 }
 0x908   : > { %7709 = vmatpush3.bf16.msra.mxu1 %v8295_v40 }
 0x909   : > { %7710 = vmatprep.subr.bf16.mxu1 %v9288_v21 }
 0x90c   : > { %7711 = vmatpush3.bf16.msra.mxu1 %v8299_v43 }
 0x90d   : > { %7712 = vmatprep.subr.bf16.mxu1 %v9288_v21 }
 0x910   : > { %7713 = vmatpush3.bf16.msra.mxu1 %v8303_v46 }
 0x9b2   : > { %v7357_v61 = vpop.f32.mrf.mxu0 }
 0x9b3   : > { %v7379_v62 = vpop.f32.mrf.mxu1 }
 0x9b4   : > { %v7358_v8 = vpop.f32.mrf.mxu0 }
 0x9b5   : > { %v7359_v10 = vadd.f32 %v7358_v8, %v7357_v61  ;;  %v7380_v11 = vpop.f32.mrf.mxu1  ;;  %v2346_v8 = vld [vmem:[#allocation18 + $0x1] ss:$2 sm:$0x7] }
 0x9b6   : > { %v7381_v12 = vadd.f32 %v7380_v11, %v7379_v62  ;;  %v7360_v13 = vpop.f32.mrf.mxu0 }
 0x9b7   : > { %v7382_v15 = vpop.f32.mrf.mxu1  ;;  %v2418_v13 = vrot.slane %v2346_v8, %v9788_v6 }
 0x9b8   : > { %v2332_v17 = vadd.f32 %v7381_v12, %v7359_v10  ;;  %v7361_v19 = vpop.f32.mrf.mxu0  ;;  %v2414_v10 = vrot.slane %v2346_v8, %v9777_v60 }
 0x9b9   : > { %v7383_v20 = vpop.f32.mrf.mxu1  ;;  %v2410_v19 = vrot.slane %v2346_v8, %v9769_v58  ;;  %v8314_v8 = vld [vmem:[#allocation15 + $0x1e4] ss:$16 sps:$4 sm:$0xff]  }
 0x9ba   : > { %v2337_v22 = vadd.f32 %v2332_v17, %v9825_v16  ;;  %v8284_v16 = vld [vmem:[#allocation12 + $0x120] ss:$12 sps:$4 sm:$0xff]   ;;  %3084 = vmatprep.subr.bf16.mxu1 %v8314_v8  ;;  %v2867_v8 = vrot.slane %v9871_v54, %v9834_v0 }
 0x9bb   : > { %2557 = vmatpush1.bf16.msra.mxu0 %v8284_v16 }
 0x9bc   : > { %v9856_v24 = vadd.f32 %v2341_v18, %v2337_v22  ;;  %2558 = vmatprep.subr.bf16.mxu0 %v8290_v35 }
 0x9be   : > { %2349 = vadd.xlane.f32.xlu0 %v9856_v24  ;;  %v2351_v25 = vmul.f32 %v9856_v24, %v9856_v24 }
 0x9bf   : > { %2559 = vmatpush1.bf16.msra.mxu0 %v8288_v36 }
 0x9c0   : > { %2352 = vadd.xlane.f32.xlu1 %v2351_v25  ;;  %2560 = vmatprep.subr.bf16.mxu0 %v8294_v38 }
 0x9c3   : > { %2561 = vmatpush1.bf16.msra.mxu0 %v8292_v39 }
 0x9c4   : > { %2562 = vmatprep.subr.bf16.mxu0 %v8298_v41 }
 0x9c7   : > { %2563 = vmatpush1.bf16.msra.mxu0 %v8296_v42 }
 0x9c8   : > { %2564 = vmatprep.subr.bf16.mxu0 %v8302_v44 }
 0x9cb   : > { %2565 = vmatpush1.bf16.msra.mxu0 %v8300_v45 }
 0x9cc   : > { %7718 = vmatprep.subr.bf16.mxu0 %v9288_v21 }
 0xa47   : > { %v2350_v47 = vpop.xlane.xlu0 %2349 }
 0xa48   : > { %v2354_v48 = vmul.f32 0.0078125, %v2350_v47 }
 0xa49   : > { %v2353_v49 = vpop.xlane.xlu1 %2352 }
 0xa4a   : > { %v2356_v50 = vmul.f32 %v2354_v48, %v2354_v48  ;;  %v2355_v51 = vmul.f32 0.0078125, %v2353_v49  ;;  %v2358_v55 = vsub.f32 %v9856_v24, %v2354_v48  ;;  %v8304_v48 = vld [vmem:[#allocation14 + $0x78] sm:$0xff]  }
 0xa4c   : > { %v2357_v52 = vsub.f32 %v2355_v51, %v2356_v50  ;;  %v8306_v50 = vld [vmem:[#allocation14 + $0x68] sm:$0xff]   ;;  %v8307_v51 = vld [vmem:[#allocation14 + $0x60] sm:$0xff]  }
 0xa4e   : > { %v2359_v53 = vadd.f32 1e-05, %v2357_v52  ;;  %v8308_v52 = vld [vmem:[#allocation14 + $0x58] sm:$0xff]  }
 0xa50   : > { %8656 = vrsqrt.f32 %v2359_v53  ;;  %v8309_v53 = vld [vmem:[#allocation14 + $0x50] sm:$0xff]  }
 0xa5d   : > { %v8657_v2 = vpop.eup %8656 }
 0xa5e   : > { %v2361_v3 = vmul.f32 %v8657_v2, %v2358_v55  ;;  %v8310_v55 = vld [vmem:[#allocation14 + $0x48] sm:$0xff]  }
 0xa60   : > { %v2366_v5 = vmul.f32 %v2365_v56, %v2361_v3  ;;  %v8311_v56 = vld [vmem:[#allocation14 + $0x40] sm:$0xff]  }
 0xa62   : > { %v2371_v61 = vadd.f32 %v2370_v4, %v2366_v5 }
 0xa64   : > { %v2372_v62 = vpack.c.bf16 %v2371_v61, %v2371_v61 }
 0xa66   : > { %2583 = vmatmul.mubr.bf16.vlgmr.msra.gmra.mxu0 %v2372_v62  ;;  %7715 = vmatmul.mubr.bf16.vlgmr.msra.gmra.mxu1 %v2372_v62  ;;  %v8312_v62 = vld [vmem:[#allocation15 + $0x1e0] ss:$16 sps:$4 sm:$0xff]  }
 0xa67   : > { %7720 = vmatprep.mubr.msk.bf16.mxu0 %vm9289_vm5, %v9288_v21  ;;  %3116 = vmatprep.mubr.bf16.mxu1 %v9286_v1 }
 0xa68   : > { %3085 = vmatpush1.bf16.msra.mxu1 %v8312_v62 }
 0xb26   : > { %v2584_v11 = vpop.f32.mrf.mxu0  ;;  %v2625_v12 = vpop.f32.mrf.mxu1 }
 0xb27   : > { %v2626_v26 = vadd.f32 %v2625_v12, %v2418_v13  ;;  %v2585_v29 = vadd.f32 %v2584_v11, %v2410_v19  ;;  %v8317_v11 = vld [vmem:[#allocation15 + $0x1ec] ss:$16 sps:$4 sm:$0xff]   ;;  %v2844_v12 = vrot.slane %v9871_v54, %v9788_v6 }
 0xb28   : > { %v2586_v15 = vpop.f32.mrf.mxu0  ;;  %v7716_v17 = vpop.f32.mrf.mxu1 }
 0xb29   : > { %v2587_v18 = vadd.f32 %v2586_v15, %v2414_v10  ;;  %v2687_v59 = vpack.c.bf16 %v2626_v26, %v2626_v26  ;;  %v2631_v30 = vpack.c.bf16 %v2585_v29, %v2585_v29  ;;  %v8315_v10 = vld [vmem:[#allocation15 + $0x1e8] ss:$16 sps:$4 sm:$0xff]   ;;  %v8323_v26 = vld [vmem:[#allocation15 + $0x1cc] ss:$16 sps:$4 sm:$0xff]  }
 0xb2a   : > { %v2588_v20 = vpop.f32.mrf.mxu0  ;;  %v2628_v22 = vpop.f32.mrf.mxu1  ;;  %v8329_v29 = vld [vmem:[#allocation15 + $0x1ac] ss:$16 sps:$4 sm:$0xff]  }
 0xb2b   : > { %v2632_v25 = vpack.c.bf16 %v2587_v18, %v2587_v18  ;;  %v2692_v16 = vsel %vm1487_vm6, %v2687_v59, 0  ;;  %v8324_v59 = vld [vmem:[#allocation15 + $0x1a0] ss:$16 sps:$4 sm:$0xff]  }
 0xb2c   : > { %v2589_v27 = vpop.f32.mrf.mxu0  ;;  %v7717_v28 = vpop.f32.mrf.mxu1 }
 0xb2d   : > { %7719 = vmatpush3.bf16.xpose.msra.mxu0 %v2632_v25  ;;  %v8320_v25 = vld [vmem:[#allocation15 + $0x1c4] ss:$16 sps:$4 sm:$0xff]   ;;  %v8318_v27 = vld [vmem:[#allocation15 + $0x1c0] ss:$16 sps:$4 sm:$0xff]   ;;  %v8321_v28 = vld [vmem:[#allocation15 + $0x1c8] ss:$16 sps:$4 sm:$0xff]  }
 0xb2e   : > { %7724 = vmatprep.subr.bf16.mxu0 %v9288_v21  ;;  %3086 = vmatprep.subr.bf16.mxu1 %v8320_v25  ;;  %v8366_v25 = vld [vmem:[#allocation17 + $0x130] sm:$0xff]  }
 0xb2f   : > { %3087 = vmatpush1.bf16.msra.mxu1 %v8318_v27  ;;  %v8368_v27 = vld [vmem:[#allocation17 + $0x168] sm:$0xff]  }
 0xb34   : > { %7721 = vmatmul.mubr.bf16.vlgmr.msra.gmra.mxu0 %v2631_v30  ;;  %v8327_v30 = vld [vmem:[#allocation15 + $0x1a8] ss:$16 sps:$4 sm:$0xff]  }
 0xb35   : > { %7725 = vmatpush3.bf16.msra.mxu0 %v2692_v16  ;;  %7726 = vmatprep.mubr.msk.bf16.mxu0 %vm9289_vm5, %v9288_v21  ;;  %v8330_v16 = vld [vmem:[#allocation15 + $0x180] ss:$16 sps:$4 sm:$0xff]  }
 0xb36   : > { %7730 = vmatprep.subr.bf16.mxu0 %v9288_v21 }
 0xbf4   : > { %v2667_v31 = vpop.f32.mrf.mxu0 }
 0xbf5   : > { %v2673_v33 = vmul.f32 0.088388346, %v2667_v31  ;;  %v8332_v31 = vld [vmem:[#allocation15 + $0x184] ss:$16 sps:$4 sm:$0xff]  }
 0xbf6   : > { %v7722_v35 = vpop.f32.mrf.mxu0 }
 0xbf7   : > { %v2674_v36 = vadd.f32 %v2673_v33, %v9806_v34  ;;  %v8305_v34 = vld [vmem:[#allocation14 + $0x70] sm:$0xff]   ;;  %v8333_v33 = vld [vmem:[#allocation15 + $0x188] ss:$16 sps:$4 sm:$0xff]   ;;  %v8335_v35 = vld [vmem:[#allocation15 + $0x18c] ss:$16 sps:$4 sm:$0xff]  }
 0xbf8   : > { %v2670_v37 = vpop.f32.mrf.mxu0 }
 0xbf9   : > { %v2675_v38 = vsel %vm1470_vm8, %v2674_v36, -inf  ;;  %v8341_v37 = vld [vmem:[#allocation15 + $0x16c] ss:$16 sps:$4 sm:$0xff]  }
 0xbfa   : > { %2676 = vmax.xlane.f32.xlu0 %v2675_v38  ;;  %v7723_v39 = vpop.f32.mrf.mxu0  ;;  %v8336_v38 = vld [vmem:[#allocation15 + $0x160] ss:$16 sps:$4 sm:$0xff]  }
 0xbfb   : > { %v8339_v39 = vld [vmem:[#allocation15 + $0x168] ss:$16 sps:$4 sm:$0xff]  }
 0xc83   : > { %v2677_v40 = vpop.xlane.xlu0 %2676 }
 0xc84   : > { %v2678_v41 = vsub.f32 %v2674_v36, %v2677_v40  ;;  %v8338_v36 = vld [vmem:[#allocation15 + $0x164] ss:$16 sps:$4 sm:$0xff]  }
 0xc85   : > { %v8344_v40 = vld [vmem:[#allocation15 + $0x144] ss:$16 sps:$4 sm:$0xff]  }
 0xc86   : > { %v2679_v42 = vmul.f32 1.442695, %v2678_v41  ;;  %v8347_v41 = vld [vmem:[#allocation15 + $0x14c] ss:$16 sps:$4 sm:$0xff]  }
 0xc88   : > { %8658 = vpow2.f32 %v2679_v42  ;;  %v8342_v42 = vld [vmem:[#allocation15 + $0x140] ss:$16 sps:$4 sm:$0xff]  }
 0xc95   : > { %v8659_v43 = vpop.eup %8658 }
 0xc96   : > { %v2681_v44 = vsel %vm1470_vm8, %v8659_v43, 0.0 }
 0xc97   : > { %2682 = vadd.xlane.f32.xlu1 %v2681_v44  ;;  %v8350_v44 = vld [vmem:[#allocation15 + $0x124] ss:$16 sps:$4 sm:$0xff]  }
 0xd20   : > { %v2683_v45 = vpop.xlane.xlu1 %2682 }
 0xd21   : > { %8660 = vrcp.f32 %v2683_v45  ;;  %v8353_v45 = vld [vmem:[#allocation15 + $0x12c] ss:$16 sps:$4 sm:$0xff]  }
 0xd2e   : > { %v8661_v46 = vpop.eup %8660 }
 0xd2f   : > { %v2685_v47 = vmul.f32 %v8661_v46, %v8659_v43  ;;  %v8345_v43 = vld [vmem:[#allocation15 + $0x148] ss:$16 sps:$4 sm:$0xff]   ;;  %v8348_v46 = vld [vmem:[#allocation15 + $0x120] ss:$16 sps:$4 sm:$0xff]  }
 0xd31   : > { %v2686_v49 = vpack.c.bf16 %v2685_v47, %v2685_v47  ;;  %v8351_v47 = vld [vmem:[#allocation15 + $0x128] ss:$16 sps:$4 sm:$0xff]  }
 0xd33   : > { %7727 = vmatmul.mubr.msk.bf16.vlgmr.msra.gmra.mxu0 %vm1470_vm8, %v2686_v49  ;;  %v8359_v49 = vld [vmem:[#allocation15 + $0x10c] ss:$16 sps:$4 sm:$0xff]  }
 0xd34   : > { %7731 = vmatpush3.bf16.msra.mxu0 %v8304_v48  ;;  %7746 = vmatprep.mubr.msk.bf16.mxu0 %vm9289_vm5, %v9288_v21  ;;  %v8356_v48 = vld [vmem:[#allocation15 + $0x104] ss:$16 sps:$4 sm:$0xff]  }
 0xd35   : > { %7732 = vmatprep.subr.bf16.mxu0 %v9288_v21 }
 0xd38   : > { %7733 = vmatpush3.bf16.msra.mxu0 %v8305_v34  ;;  %v8354_v34 = vld [vmem:[#allocation15 + $0x100] ss:$16 sps:$4 sm:$0xff]  }
 0xd39   : > { %7734 = vmatprep.subr.bf16.mxu0 %v9288_v21 }
 0xd3c   : > { %7735 = vmatpush3.bf16.msra.mxu0 %v8306_v50  ;;  %v8357_v50 = vld [vmem:[#allocation15 + $0x108] ss:$16 sps:$4 sm:$0xff]  }
 0xd3d   : > { %7736 = vmatprep.subr.bf16.mxu0 %v9288_v21 }
 0xd40   : > { %7737 = vmatpush3.bf16.msra.mxu0 %v8307_v51 }
 0xd41   : > { %7738 = vmatprep.subr.bf16.mxu0 %v9288_v21 }
 0xd44   : > { %7739 = vmatpush3.bf16.msra.mxu0 %v8308_v52 }
 0xd45   : > { %7740 = vmatprep.subr.bf16.mxu0 %v9288_v21 }
 0xd48   : > { %7741 = vmatpush3.bf16.msra.mxu0 %v8309_v53 }
 0xd49   : > { %7742 = vmatprep.subr.bf16.mxu0 %v9288_v21 }
 0xd4c   : > { %7743 = vmatpush3.bf16.msra.mxu0 %v8310_v55 }
 0xd4d   : > { %7744 = vmatprep.subr.bf16.mxu0 %v9288_v21 }
 0xd50   : > { %7745 = vmatpush3.bf16.msra.mxu0 %v8311_v56 }
 0xd51   : > { %3125 = vmatprep.subr.bf16.mxu0 %v8317_v11 }
 0xdf3   : > { %v2728_v2 = vpop.f32.mrf.mxu0 }
 0xdf4   : > { %v2734_v3 = vpack.c.bf16 %v2728_v2, %v2728_v2 }
 0xdf5   : > { %v7728_v4 = vpop.f32.mrf.mxu0 }
 0xdf6   : > { %7747 = vmatmul.mubr.bf16.vlgmr.msra.gmra.mxu0 %v2734_v3 }
 0xdf7   : > { %v2731_v5 = vpop.f32.mrf.mxu0  ;;  %3157 = vmatprep.mubr.bf16.mxu0 %v9286_v1  ;;  %3126 = vmatpush1.bf16.msra.mxu0 %v8315_v10 }
 0xdf8   : > { %3127 = vmatprep.subr.bf16.mxu0 %v8323_v26  ;;  %v2862_v5 = vrot.slane %v9871_v54, %v9831_v63  ;;  %v8367_v26 = vld [vmem:[#allocation17 + $0x1b0] sm:$0xff]  }
 0xdf9   : > { %v7729_v61 = vpop.f32.mrf.mxu0 }
 0xdfb   : > { %3128 = vmatpush1.bf16.msra.mxu0 %v8321_v28  ;;  %v8369_v28 = vld [vmem:[#allocation17 + $0x1e8] sm:$0xff]  }
 0xdfc   : > { %3129 = vmatprep.subr.bf16.mxu0 %v8329_v29  ;;  %v8371_v29 = vld [vmem:[#allocation17 + $0x1a8] sm:$0xff]  }
 0xdff   : > { %3130 = vmatpush1.bf16.msra.mxu0 %v8327_v30  ;;  %v8373_v30 = vld [vmem:[#allocation17 + $0x1e0] sm:$0xff]  }
 0xe00   : > { %3131 = vmatprep.subr.bf16.mxu0 %v8335_v35  ;;  %v8377_v35 = vld [vmem:[#allocation17 + $0x1d8] sm:$0xff]  }
 0xe03   : > { %3132 = vmatpush1.bf16.msra.mxu0 %v8333_v33  ;;  %v8376_v33 = vld [vmem:[#allocation17 + $0x158] sm:$0xff]  }
 0xe04   : > { %3133 = vmatprep.subr.bf16.mxu0 %v8341_v37  ;;  %v8379_v37 = vld [vmem:[#allocation17 + $0x198] sm:$0xff]  }
 0xe07   : > { %3134 = vmatpush1.bf16.msra.mxu0 %v8339_v39  ;;  %v8381_v39 = vld [vmem:[#allocation17 + $0x1d0] sm:$0xff]  }
 0xe08   : > { %3135 = vmatprep.subr.bf16.mxu0 %v8347_v41  ;;  %v8383_v41 = vld [vmem:[#allocation17 + $0x190] sm:$0xff]  }
 0xe0b   : > { %3136 = vmatpush1.bf16.msra.mxu0 %v8345_v43  ;;  %v8385_v43 = vld [vmem:[#allocation17 + $0x1c8] sm:$0xff]  }
 0xe0c   : > { %3137 = vmatprep.subr.bf16.mxu0 %v8353_v45  ;;  %v8387_v45 = vld [vmem:[#allocation17 + $0x188] sm:$0xff]  }
 0xe0f   : > { %3138 = vmatpush1.bf16.msra.mxu0 %v8351_v47  ;;  %v8389_v47 = vld [vmem:[#allocation17 + $0x1c0] sm:$0xff]  }
 0xe10   : > { %3139 = vmatprep.subr.bf16.mxu0 %v8359_v49  ;;  %v8391_v49 = vld [vmem:[#allocation17 + $0x180] sm:$0xff]  }
 0xe13   : > { %3140 = vmatpush1.bf16.msra.mxu0 %v8357_v50 }
 0xeb6   : > { %v2834_v13 = vpop.f32.mrf.mxu0 }
 0xeb7   : > { %v2840_v15 = vadd.f32 %v2834_v13, %v9856_v24  ;;  %v8326_v24 = vld [vmem:[#allocation15 + $0x1a4] ss:$16 sps:$4 sm:$0xff]   ;;  %v8360_v13 = vld [vmem:[#allocation17 + $0x178] sm:$0xff]  }
 0xeb8   : > { %v7748_v17 = vpop.f32.mrf.mxu0  ;;  %3088 = vmatprep.subr.bf16.mxu1 %v8326_v24  ;;  %v8370_v24 = vld [vmem:[#allocation17 + $0x128] sm:$0xff]  }
 0xeb9   : > { %v9906_v18 = vadd.f32 %v2844_v12, %v2840_v15  ;;  %3089 = vmatpush1.bf16.msra.mxu1 %v8324_v59  ;;  %v8361_v15 = vld [vmem:[#allocation17 + $0x1f8] sm:$0xff]   ;;  %v8372_v59 = vld [vmem:[#allocation17 + $0x160] sm:$0xff]  }
 0xeba   : > { %v2837_v19 = vpop.f32.mrf.mxu0  ;;  %3090 = vmatprep.subr.bf16.mxu1 %v8332_v31  ;;  %v8362_v17 = vld [vmem:[#allocation17 + $0x138] sm:$0xff]   ;;  %7429 = vmatprep.subr.bf16.mxu0 %v8361_v15  ;;  %v8375_v31 = vld [vmem:[#allocation17 + $0x1a0] sm:$0xff]  }
 0xebb   : > { %2846 = vadd.xlane.f32.xlu0 %v9906_v18  ;;  %v2848_v20 = vmul.f32 %v9906_v18, %v9906_v18  ;;  %v8363_v19 = vld [vmem:[#allocation17 + $0x1b8] sm:$0xff]  }
 0xebc   : > { %v7749_v22 = vpop.f32.mrf.mxu0 }
 0xebd   : > { %2849 = vadd.xlane.f32.xlu1 %v2848_v20  ;;  %3091 = vmatpush1.bf16.msra.mxu1 %v8330_v16  ;;  %v8364_v20 = vld [vmem:[#allocation17 + $0x170] sm:$0xff]   ;;  %v8374_v16 = vld [vmem:[#allocation17 + $0x120] sm:$0xff]  }
 0xebe   : > { %3092 = vmatprep.subr.bf16.mxu1 %v8338_v36  ;;  %v8365_v22 = vld [vmem:[#allocation17 + $0x1f0] sm:$0xff]   ;;  %v8378_v36 = vld [vmem:[#allocation17 + $0x118] sm:$0xff]  }
 0xec1   : > { %3093 = vmatpush1.bf16.msra.mxu1 %v8336_v38  ;;  %v8380_v38 = vld [vmem:[#allocation17 + $0x150] sm:$0xff]  }
 0xec2   : > { %3094 = vmatprep.subr.bf16.mxu1 %v8344_v40  ;;  %v8382_v40 = vld [vmem:[#allocation17 + $0x110] sm:$0xff]  }
 0xec5   : > { %3095 = vmatpush1.bf16.msra.mxu1 %v8342_v42  ;;  %v8384_v42 = vld [vmem:[#allocation17 + $0x148] sm:$0xff]  }
 0xec6   : > { %3096 = vmatprep.subr.bf16.mxu1 %v8350_v44  ;;  %v8386_v44 = vld [vmem:[#allocation17 + $0x108] sm:$0xff]  }
 0xec9   : > { %3097 = vmatpush1.bf16.msra.mxu1 %v8348_v46  ;;  %v8388_v46 = vld [vmem:[#allocation17 + $0x140] sm:$0xff]  }
 0xeca   : > { %3098 = vmatprep.subr.bf16.mxu1 %v8356_v48  ;;  %v8390_v48 = vld [vmem:[#allocation17 + $0x100] sm:$0xff]  }
 0xecd   : > { %3099 = vmatpush1.bf16.msra.mxu1 %v8354_v34  ;;  %v2348_v34 = vld [vmem:[#allocation20 + $0x1] ss:$2 sm:$0xf] }
 0xece   : > { %7407 = vmatprep.subr.bf16.mxu1 %v8360_v13  ;;  %v2907_v50 = vrot.slane %v2348_v34, %v9769_v58 }
 0xf44   : > { %v2847_v51 = vpop.xlane.xlu0 %2846 }
 0xf45   : > { %v2851_v52 = vmul.f32 0.0078125, %v2847_v51  ;;  %v2915_v51 = vrot.slane %v2348_v34, %v9788_v6 }
 0xf46   : > { %v2850_v53 = vpop.xlane.xlu1 %2849 }
 0xf47   : > { %v2853_v55 = vmul.f32 %v2851_v52, %v2851_v52  ;;  %v2852_v56 = vmul.f32 0.0078125, %v2850_v53  ;;  %v2855_v4 = vsub.f32 %v9906_v18, %v2851_v52  ;;  %v2911_v52 = vrot.slane %v2348_v34, %v9777_v60 }
 0xf48   : > { %v2919_v53 = vrot.slane %v2348_v34, %v9831_v63 }
 0xf49   : > { %v2854_v2 = vsub.f32 %v2852_v56, %v2853_v55 }
 0xf4b   : > { %v2856_v3 = vadd.f32 1e-05, %v2854_v2 }
 0xf4d   : > { %8662 = vrsqrt.f32 %v2856_v3 }
 0xf5a   : > { %v8663_v61 = vpop.eup %8662 }
 0xf5b   : > { %v2858_v62 = vmul.f32 %v8663_v61, %v2855_v4 }
 0xf5d   : > { %v2863_v10 = vmul.f32 %v2862_v5, %v2858_v62 }
 0xf5f   : > { %v2868_v11 = vadd.f32 %v2867_v8, %v2863_v10 }
 0xf61   : > { %v2869_v12 = vpack.c.bf16 %v2868_v11, %v2868_v11 }
 0xf63   : > { %3117 = vmatmul.mubr.bf16.vlgmr.msra.gmra.mxu1 %v2869_v12  ;;  %3158 = vmatmul.mubr.bf16.vlgmr.msra.gmra.mxu0 %v2869_v12 }
 0xf64   : > { %7408 = vmatpush3.bf16.msra.mxu1 %v8362_v17  ;;  %7430 = vmatpush3.bf16.msra.mxu0 %v8363_v19 }
 0xf65   : > { %7409 = vmatprep.subr.bf16.mxu1 %v8364_v20  ;;  %7431 = vmatprep.subr.bf16.mxu0 %v8365_v22 }
 0xf68   : > { %7410 = vmatpush3.bf16.msra.mxu1 %v8366_v25  ;;  %7432 = vmatpush3.bf16.msra.mxu0 %v8367_v26 }
 0xf69   : > { %7411 = vmatprep.subr.bf16.mxu1 %v8368_v27  ;;  %7433 = vmatprep.subr.bf16.mxu0 %v8369_v28 }
 0xf6c   : > { %7412 = vmatpush3.bf16.msra.mxu1 %v8370_v24  ;;  %7434 = vmatpush3.bf16.msra.mxu0 %v8371_v29 }
 0xf6d   : > { %7413 = vmatprep.subr.bf16.mxu1 %v8372_v59  ;;  %7435 = vmatprep.subr.bf16.mxu0 %v8373_v30 }
 0xf70   : > { %7414 = vmatpush3.bf16.msra.mxu1 %v8374_v16  ;;  %7436 = vmatpush3.bf16.msra.mxu0 %v8375_v31 }
 0xf71   : > { %7415 = vmatprep.subr.bf16.mxu1 %v8376_v33  ;;  %7437 = vmatprep.subr.bf16.mxu0 %v8377_v35 }
 0xf74   : > { %7416 = vmatpush3.bf16.msra.mxu1 %v8378_v36  ;;  %7438 = vmatpush3.bf16.msra.mxu0 %v8379_v37 }
 0xf75   : > { %7417 = vmatprep.subr.bf16.mxu1 %v8380_v38  ;;  %7439 = vmatprep.subr.bf16.mxu0 %v8381_v39 }
 0xf78   : > { %7418 = vmatpush3.bf16.msra.mxu1 %v8382_v40  ;;  %7440 = vmatpush3.bf16.msra.mxu0 %v8383_v41 }
 0xf79   : > { %7419 = vmatprep.subr.bf16.mxu1 %v8384_v42  ;;  %7441 = vmatprep.subr.bf16.mxu0 %v8385_v43 }
 0xf7c   : > { %7420 = vmatpush3.bf16.msra.mxu1 %v8386_v44  ;;  %7442 = vmatpush3.bf16.msra.mxu0 %v8387_v45 }
 0xf7d   : > { %7421 = vmatprep.subr.bf16.mxu1 %v8388_v46  ;;  %7443 = vmatprep.subr.bf16.mxu0 %v8389_v47 }
 0xf80   : > { %7422 = vmatpush3.bf16.msra.mxu1 %v8390_v48  ;;  %7444 = vmatpush3.bf16.msra.mxu0 %v8391_v49 }
 0xf81   : > { %7750 = vmatprep.subr.mxu1 %v9288_v21  ;;  %7785 = vmatprep.subr.mxu0 %v9288_v21 }
0x1023   : > { %v3118_v55 = vpop.f32.mrf.mxu1  ;;  %v3159_v56 = vpop.f32.mrf.mxu0 }
0x1024   : > { %v3119_v2 = vadd.f32 %v3118_v55, %v2907_v50  ;;  %v3160_v3 = vadd.f32 %v3159_v56, %v2915_v51 }
0x1025   : > { %v3120_v4 = vpop.f32.mrf.mxu1  ;;  %v3161_v5 = vpop.f32.mrf.mxu0 }
0x1026   : > { %v3166_v61 = vmul.f32 %v3119_v2, %v3119_v2  ;;  %v3168_v62 = vmul.f32 %v3160_v3, %v3160_v3  ;;  %v3121_v8 = vadd.f32 %v3120_v4, %v2911_v52  ;;  %v3162_v10 = vadd.f32 %v3161_v5, %v2919_v53 }
0x1027   : > { %v3122_v11 = vpop.f32.mrf.mxu1  ;;  %v3163_v12 = vpop.f32.mrf.mxu0 }
0x1028   : > { %v3170_v13 = vmul.f32 %v3166_v61, %v3119_v2  ;;  %v3172_v15 = vmul.f32 %v3168_v62, %v3160_v3  ;;  %v3167_v17 = vmul.f32 %v3121_v8, %v3121_v8  ;;  %v3169_v19 = vmul.f32 %v3162_v10, %v3162_v10 }
0x1029   : > { %v3123_v20 = vpop.f32.mrf.mxu1  ;;  %v3164_v22 = vpop.f32.mrf.mxu0 }
0x102a   : > { %v3174_v25 = vmul.f32 0.044715, %v3170_v13  ;;  %v3176_v26 = vmul.f32 0.044715, %v3172_v15  ;;  %v3171_v27 = vmul.f32 %v3167_v17, %v3121_v8  ;;  %v3173_v28 = vmul.f32 %v3169_v19, %v3162_v10  ;;  %v7093_v20 = vld [vmem:[#allocation21] ss:$0 sm:$0xff] }
0x102b   : > { %v3547_v15 = vrot.slane %v9871_v54, %v9851_v9  ;;  %v3617_v54 = vld [vmem:[#allocation23 + $0x68] sm:$0xff] }
0x102c   : > { %v3178_v24 = vadd.f32 %v3174_v25, %v3119_v2  ;;  %v3180_v29 = vadd.f32 %v3176_v26, %v3160_v3  ;;  %v3175_v59 = vmul.f32 0.044715, %v3171_v27  ;;  %v3177_v30 = vmul.f32 0.044715, %v3173_v28  ;;  %v3793_v26 = vld [vmem:[#allocation9 + $0x8] sm:$0xff] }
0x102d   : > { %v9933_v27 = vadd.f32 %v9749_v23, %v3793_v26  ;;  %v3619_v28 = vld [vmem:[#allocation23 + $0x78] sm:$0xff]  ;;  %v3614_v23 = vld [vmem:[#allocation23 + $0x50] sm:$0xff] }
0x102e   : > { %v3182_v16 = vmul.f32 0.7978846, %v3178_v24  ;;  %v3184_v31 = vmul.f32 0.7978846, %v3180_v29  ;;  %v3179_v33 = vadd.f32 %v3175_v59, %v3121_v8  ;;  %v3181_v35 = vadd.f32 %v3177_v30, %v3162_v10  ;;  %v3618_v24 = vld [vmem:[#allocation23 + $0x70] sm:$0xff]  ;;  %v3615_v29 = vld [vmem:[#allocation23 + $0x58] sm:$0xff] }
0x102f   : > { %v3613_v59 = vld [vmem:[#allocation23 + $0x48] sm:$0xff]  ;;  %v3612_v30 = vld [vmem:[#allocation23 + $0x40] sm:$0xff]  ;;  %v3703_v26 = vld [vmem:[%s10476_s19 + $0x48] sm:$0xff] }
0x1030   : > { %8664 = vtanh.f32 %v3182_v16  ;;  %v3183_v36 = vmul.f32 0.7978846, %v3179_v33  ;;  %v3185_v37 = vmul.f32 0.7978846, %v3181_v35  ;;  %v3611_v16 = vld [vmem:[#allocation23 + $0x38] sm:$0xff] }
0x1031   : > { %8666 = vtanh.f32 %v3184_v31  ;;  %v3567_v31 = vld [vmem:[%s992_s14] sm:$0xff]  ;;  %s10344_s14 = sshll.u32 %s980_s29, 4  ;;  %s6559_s14 = int_to_ptr.vmem [resolvable:$true] %s10344_s14 }
0x1032   : > { %8668 = vtanh.f32 %v3183_v36  ;;  %v7094_v36 = vld [vmem:[#allocation2] ss:$0 sm:$0xff] }
0x1033   : > { %8670 = vtanh.f32 %v3185_v37 }
0x1034   : > { %8672 = vlog2.f32 %v3567_v31 }
0x103d   : > { %v8665_v38 = vpop.eup %8664 }
0x103e   : > { %v8667_v39 = vpop.eup %8666  ;;  %v3190_v40 = vadd.f32 1.0, %v8665_v38 }
0x103f   : > { %v8669_v41 = vpop.eup %8668  ;;  %v3192_v42 = vadd.f32 1.0, %v8667_v39 }
0x1040   : > { %v8671_v43 = vpop.eup %8670  ;;  %v3191_v44 = vadd.f32 1.0, %v8669_v41  ;;  %v3194_v45 = vmul.f32 0.5, %v3190_v40 }
0x1041   : > { %v3193_v46 = vadd.f32 1.0, %v8671_v43  ;;  %v3196_v47 = vmul.f32 0.5, %v3192_v42  ;;  %v8673_v33 = vpop.eup %8672 }
0x1042   : > { %v3195_v48 = vmul.f32 0.5, %v3191_v44  ;;  %v3198_v34 = vmul.f32 %v3194_v45, %v3119_v2  ;;  %v3569_v35 = vmul.f32 0.6931472, %v8673_v33 }
0x1043   : > { %v3197_v49 = vmul.f32 0.5, %v3193_v46  ;;  %v3200_v51 = vmul.f32 %v3196_v47, %v3160_v3 }
0x1044   : > { %v3199_v50 = vmul.f32 %v3195_v48, %v3121_v8  ;;  %v3202_v56 = vpack.c.bf16 %v3198_v34, %v3198_v34  ;;  %v3570_v37 = vmax.f32 %v3569_v35, -3.4028235e+38 }
0x1045   : > { %v3201_v52 = vmul.f32 %v3197_v49, %v3162_v10  ;;  %v3204_v4 = vpack.c.bf16 %v3200_v51, %v3200_v51 }
0x1046   : > { %v3203_v53 = vpack.c.bf16 %v3199_v50, %v3199_v50 }
0x1047   : > { %v3205_v55 = vpack.c.bf16 %v3201_v52, %v3201_v52 }
0x1048   : > { %3495 = vmatprep.mubr.bf16.mxu1 %v3203_v53 }
0x1049   : > { %3535 = vmatprep.mubr.bf16.mxu0 %v3205_v55  ;;  %3496 = vmatmul.mubr.bf16.vlgmr.msra.gmra.mxu1 %v3202_v56 }
0x104a   : > { %3536 = vmatmul.mubr.bf16.vlgmr.msra.gmra.mxu0 %v3204_v4  ;;  %7782 = vmatprep.mubr.msk.f32.mxu1 %vm9289_vm5, %v9288_v21 }
0x104b   : > { %7817 = vmatprep.mubr.msk.f32.mxu0 %vm9289_vm5, %v9288_v21  ;;  %7751 = vmatpush3.msra.mxu1 %v3619_v28  ;;  %v3702_v28 = vld [vmem:[%s10476_s19 + $0x40] sm:$0xff] }
0x104c   : > { %7752 = vmatprep.subr.mxu1 %v9288_v21 }
0x104d   : > { %7753 = vmatpush3.msra.mxu1 %v3618_v24  ;;  %v3701_v24 = vld [vmem:[%s10476_s19 + $0x38] sm:$0xff] }
0x104e   : > { %7754 = vmatprep.subr.mxu1 %v9288_v21 }
0x104f   : > { %7755 = vmatpush3.msra.mxu1 %v3617_v54  ;;  %v3700_v54 = vld [vmem:[%s10476_s19 + $0x30] sm:$0xff] }
0x1050   : > { %7756 = vmatprep.subr.mxu1 %v9288_v21 }
0x1109   : > { %v7423_v5 = vpop.f32.mrf.mxu1 }
0x110a   : > { %v7445_v61 = vpop.f32.mrf.mxu0 }
0x110b   : > { %v7424_v2 = vpop.f32.mrf.mxu1 }
0x110c   : > { %v7425_v62 = vadd.f32 %v7424_v2, %v7423_v5  ;;  %v7446_v3 = vpop.f32.mrf.mxu0  ;;  %v3610_v5 = vld [vmem:[#allocation23 + $0x30] sm:$0xff] }
0x110d   : > { %v7447_v8 = vadd.f32 %v7446_v3, %v7445_v61  ;;  %v7426_v10 = vpop.f32.mrf.mxu1  ;;  %v3608_v3 = vld [vmem:[#allocation23 + $0x20] sm:$0xff] }
0x110e   : > { %v7448_v11 = vpop.f32.mrf.mxu0  ;;  %v3606_v10 = vld [vmem:[#allocation23 + $0x10] sm:$0xff] }
0x110f   : > { %v3538_v12 = vadd.f32 %v7447_v8, %v7425_v62  ;;  %v7427_v13 = vpop.f32.mrf.mxu1  ;;  %v3609_v62 = vld [vmem:[#allocation23 + $0x28] sm:$0xff]  ;;  %v3607_v8 = vld [vmem:[#allocation23 + $0x18] sm:$0xff] }
0x1110   : > { %v7449_v17 = vpop.f32.mrf.mxu0  ;;  %v3605_v11 = vld [vmem:[#allocation23 + $0x8] sm:$0xff] }
0x1111   : > { %v3543_v19 = vadd.f32 %v3538_v12, %v9906_v18  ;;  %v3616_v18 = vld [vmem:[#allocation23 + $0x60] sm:$0xff]  ;;  %v3707_v17 = vld [vmem:[%s10476_s19 + $0x68] sm:$0xff] }
0x1112   : > { %7757 = vmatpush3.msra.mxu1 %v3616_v18  ;;  %v3604_v12 = vld [vmem:[#allocation23] sm:$0xff]  ;;  %v3699_v18 = vld [vmem:[%s10476_s19 + $0x28] sm:$0xff] }
0x1113   : > { %v9929_v22 = vadd.f32 %v3547_v15, %v3543_v19  ;;  %7758 = vmatprep.subr.mxu1 %v9288_v21  ;;  %v3709_v13 = vld [vmem:[%s10476_s19 + $0x78] sm:$0xff]  ;;  %v3708_v15 = vld [vmem:[%s10476_s19 + $0x70] sm:$0xff]  ;;  %v3706_v19 = vld [vmem:[%s10476_s19 + $0x60] sm:$0xff] }
0x1114   : > { %7759 = vmatpush3.msra.mxu1 %v3615_v29  ;;  %7786 = vmatpush3.msra.mxu0 %v3709_v13  ;;  %v3698_v29 = vld [vmem:[%s10476_s19 + $0x20] sm:$0xff] }
0x1115   : > { %v3556_v25 = vmul.f32 %v7093_v20, %v9929_v22  ;;  %7760 = vmatprep.subr.mxu1 %v9288_v21  ;;  %7787 = vmatprep.subr.mxu0 %v9288_v21  ;;  %v3705_v20 = vld [vmem:[%s10476_s19 + $0x58] sm:$0xff] }
0x1116   : > { %7761 = vmatpush3.msra.mxu1 %v3614_v23  ;;  %7788 = vmatpush3.msra.mxu0 %v3708_v15  ;;  %v3697_v23 = vld [vmem:[%s10476_s19 + $0x18] sm:$0xff] }
0x1117   : > { %3557 = vadd.xlane.f32.xlu0 %v3556_v25  ;;  %7762 = vmatprep.subr.mxu1 %v9288_v21  ;;  %v3704_v25 = vld [vmem:[%s10476_s19 + $0x50] sm:$0xff] }
0x1118   : > { %7763 = vmatpush3.msra.mxu1 %v3613_v59  ;;  %7789 = vmatprep.subr.mxu0 %v9288_v21  ;;  %v8410_v13 = vld [vmem:[#allocation12 + $0x4c] ss:$12 sps:$4 sm:$0xff]   ;;  %v8408_v15 = vld [vmem:[#allocation12 + $0x48] ss:$12 sps:$4 sm:$0xff]  }
0x1119   : > { %7764 = vmatprep.subr.mxu1 %v9288_v21  ;;  %7790 = vmatpush3.msra.mxu0 %v3707_v17  ;;  %v8411_v17 = vld [vmem:[#allocation12 + $0x50] ss:$12 sps:$4 sm:$0xff]  }
0x111a   : > { %7765 = vmatpush3.msra.mxu1 %v3612_v30  ;;  %7791 = vmatprep.subr.mxu0 %v9288_v21 }
0x111b   : > { %3815 = vadd.xlane.f32.xlu0 %v9933_v27  ;;  %7766 = vmatprep.subr.mxu1 %v9288_v21 }
0x111c   : > { %7767 = vmatpush3.msra.mxu1 %v3611_v16  ;;  %7792 = vmatpush3.msra.mxu0 %v3706_v19  ;;  %v8414_v19 = vld [vmem:[#allocation12 + $0x34] ss:$12 sps:$4 sm:$0xff]  }
0x111d   : > { %7768 = vmatprep.subr.mxu1 %v9288_v21  ;;  %7793 = vmatprep.subr.mxu0 %v9288_v21 }
0x111e   : > { %7769 = vmatpush3.msra.mxu1 %v3610_v5  ;;  %7794 = vmatpush3.msra.mxu0 %v3705_v20  ;;  %v8395_v5 = vld [vmem:[#allocation12 + $0xb0] ss:$12 sps:$4 sm:$0xff]  }
0x111f   : > { %7770 = vmatprep.subr.mxu1 %v9288_v21  ;;  %7795 = vmatprep.subr.mxu0 %v9288_v21  ;;  %v8412_v20 = vld [vmem:[#allocation12 + $0x30] ss:$12 sps:$4 sm:$0xff]  }
0x1120   : > { %7771 = vmatpush3.msra.mxu1 %v3609_v62  ;;  %7796 = vmatpush3.msra.mxu0 %v3704_v25  ;;  %v8402_v62 = vld [vmem:[#allocation12 + $0x7c] ss:$12 sps:$4 sm:$0xff]   ;;  %v8415_v25 = vld [vmem:[#allocation12 + $0x38] ss:$12 sps:$4 sm:$0xff]  }
0x1121   : > { %7772 = vmatprep.subr.mxu1 %v9288_v21  ;;  %7797 = vmatprep.subr.mxu0 %v9288_v21 }
0x1122   : > { %7773 = vmatpush3.msra.mxu1 %v3608_v3  ;;  %7798 = vmatpush3.msra.mxu0 %v3703_v26  ;;  %v8400_v3 = vld [vmem:[#allocation12 + $0x78] ss:$12 sps:$4 sm:$0xff]   ;;  %v8418_v26 = vld [vmem:[#allocation12 + $0x1c] ss:$12 sps:$4 sm:$0xff]  }
0x1123   : > { %7774 = vmatprep.subr.mxu1 %v9288_v21  ;;  %7799 = vmatprep.subr.mxu0 %v9288_v21 }
0x1124   : > { %7775 = vmatpush3.msra.mxu1 %v3607_v8  ;;  %7800 = vmatpush3.msra.mxu0 %v3702_v28  ;;  %v8403_v8 = vld [vmem:[#allocation12 + $0x80] ss:$12 sps:$4 sm:$0xff]   ;;  %v8416_v28 = vld [vmem:[#allocation12 + $0x18] ss:$12 sps:$4 sm:$0xff]  }
0x1125   : > { %7776 = vmatprep.subr.mxu1 %v9288_v21  ;;  %7801 = vmatprep.subr.mxu0 %v9288_v21 }
0x1126   : > { %7777 = vmatpush3.msra.mxu1 %v3606_v10  ;;  %7802 = vmatpush3.msra.mxu0 %v3701_v24  ;;  %v8404_v10 = vld [vmem:[#allocation12 + $0x60] ss:$12 sps:$4 sm:$0xff]  }
0x1127   : > { %7778 = vmatprep.subr.mxu1 %v9288_v21  ;;  %7803 = vmatprep.subr.mxu0 %v9288_v21  ;;  %v8419_v24 = vld [vmem:[#allocation12 + $0x20] ss:$12 sps:$4 sm:$0xff]  }
0x1128   : > { %7779 = vmatpush3.msra.mxu1 %v3605_v11  ;;  %7804 = vmatpush3.msra.mxu0 %v3700_v54  ;;  %v8406_v11 = vld [vmem:[#allocation12 + $0x64] ss:$12 sps:$4 sm:$0xff]  }
0x1129   : > { %7780 = vmatprep.subr.mxu1 %v9288_v21  ;;  %7805 = vmatprep.subr.mxu0 %v9288_v21  ;;  %v8422_v54 = vld [vmem:[#allocation12 + $0x4] ss:$12 sps:$4 sm:$0xff]  }
0x112a   : > { %7781 = vmatpush3.msra.mxu1 %v3604_v12  ;;  %7806 = vmatpush3.msra.mxu0 %v3699_v18  ;;  %v8407_v12 = vld [vmem:[#allocation12 + $0x68] ss:$12 sps:$4 sm:$0xff]   ;;  %v8420_v18 = vld [vmem:[#allocation12] ss:$12 sps:$4 sm:$0xff]  }
0x112b   : > { %7807 = vmatprep.subr.mxu0 %v9288_v21 }
0x112c   : > { %7808 = vmatpush3.msra.mxu0 %v3698_v29  ;;  %v8423_v29 = vld [vmem:[#allocation12 + $0x8] ss:$12 sps:$4 sm:$0xff]  }
0x112d   : > { %7809 = vmatprep.subr.mxu0 %v9288_v21 }
0x112e   : > { %7810 = vmatpush3.msra.mxu0 %v3697_v23 }
0x112f   : > { %7811 = vmatprep.subr.mxu0 %v9288_v21 }
0x11a0   : > { %v3558_v38 = vpop.xlane.xlu0 %3557 }
0x11a1   : > { %v3566_v39 = vadd.f32 %v7094_v36, %v3558_v38  ;;  %v3696_v38 = vld [vmem:[%s10476_s19 + $0x10] sm:$0xff] }
0x11a2   : > { %7812 = vmatpush3.msra.mxu0 %v3696_v38 }
0x11a3   : > { %v3571_v40 = vadd.f32 %v3570_v37, %v3566_v39  ;;  %7813 = vmatprep.subr.mxu0 %v9288_v21  ;;  %v3694_v39 = vld [vmem:[%s10476_s19] sm:$0xff] }
0x11a4   : > { %v3816_v23 = vpop.xlane.xlu0 %3815 }
0x11a5   : > { %v3573_v41 = vsel %vm3572_vm9, %v3571_v40, -inf }
0x11a6   : > { %v3574_v42 = vrot.slane %v3573_v41, 4 }
0x11a8   : > { %v3575_v43 = vmax.f32 %v3573_v41, %v3574_v42  ;;  %v3692_v42 = vld [vmem:[%s846_s1] sm:$0x1] }
0x11aa   : > { %v3576_v44 = vrot.slane %v3575_v43, 2 }
0x11ac   : > { %v3577_v45 = vmax.f32 %v3575_v43, %v3576_v44 }
0x11ae   : > { %v3578_v46 = vrot.slane %v3577_v45, 1 }
0x11b0   : > { %v3579_v47 = vmax.f32 %v3577_v45, %v3578_v46  ;;  %v3710_v46 = vld [vmem:[%s10563_s0] sm:$0x1]  ;;  %s9110_s0 = scalar_lea.vmem %s10346_s10, 256 }
0x11b1   : > { %p9111_p3 = scmp.ne.s32.totalorder %s10346_s10, %s9110_s0 }
0x11b2   : > { %v3580_v48 = vsub.f32 %v3571_v40, %v3579_v47  ;;  %v3620_v40 = vld [vmem:[#allocation24] sm:$0x1] }
0x11b3   : > { %p9112_p9 = pnand %p9111_p3, %p10565_p8 }
0x11b4   : > { %v3581_v49 = vmul.f32 1.442695, %v3580_v48 }
0x11b5   : > { %p9113_p10 = pneg %p9112_p9 }
0x11b6   : > { %8674 = vpow2.f32 %v3581_v49 }
0x11c3   : > { %v8675_v34 = vpop.eup %8674 }
0x11c4   : > { %v3583_v50 = vsel %vm3572_vm9, %v8675_v34, 0.0 }
0x11c5   : > { %v3584_v51 = vrot.slane %v3583_v50, 4 }
0x11c7   : > { %v3585_v52 = vadd.f32 %v3584_v51, %v3583_v50  ;;  %v3792_v50 = vld [vmem:[#allocation9] sm:$0xff] }
0x11c9   : > { %v3586_v53 = vrot.slane %v3585_v52, 2 }
0x11cb   : > { %v3587_v55 = vadd.f32 %v3586_v53, %v3585_v52 }
0x11cd   : > { %v3588_v56 = vrot.slane %v3587_v55, 1 }
0x11cf   : > { %v3589_v4 = vadd.f32 %v3588_v56, %v3587_v55  ;;  %v3818_v55 = vmul.f32 %v9933_v27, %v9933_v27  ;;  %v8394_v56 = vld [vmem:[#allocation12 + $0xac] ss:$12 sps:$4 sm:$0xff]  }
0x11d0   : > { %4028 = vmatprep.subr.bf16.mxu1 %v8394_v56 }
0x11d1   : > { %8676 = vrcp.f32 %v3589_v4  ;;  %v8392_v4 = vld [vmem:[#allocation12 + $0xa8] ss:$12 sps:$4 sm:$0xff]  }
0x11de   : > { %v8677_v61 = vpop.eup %8676 }
0x11df   : > { %v3591_v2 = vmul.f32 %v8677_v61, %v8675_v34  ;;  %v8398_v61 = vld [vmem:[#allocation12 + $0x94] ss:$12 sps:$4 sm:$0xff]  }
0x11e1   : > { %3594 = vperm.xlu1 %8143, %v3591_v2   ;;  %v8399_v2 = vld [vmem:[#allocation12 + $0x98] ss:$12 sps:$4 sm:$0xff]  }
0x125c   : > { %v3595_v59 = vpop.permute.xlu1 %3594 }
0x125d   : > { %v3597_v30 = vmul.f32 %v3595_v59, %v9929_v22  ;;  %v3695_v22 = vld [vmem:[%s10476_s19 + $0x8] sm:$0xff] }
0x125e   : > { %7814 = vmatpush3.msra.mxu0 %v3695_v22 }
0x125f   : > { %v3598_v16 = vrot.slane %v3597_v30, 4  ;;  %7815 = vmatprep.subr.mxu0 %v9288_v21 }
0x1260   : > { %7816 = vmatpush3.msra.mxu0 %v3694_v39 }
0x1261   : > { %v3599_v31 = vadd.f32 %v3598_v16, %v3597_v30  ;;  %7820 = vmatprep.subr.bf16.mxu0 %v9288_v21 }
0x1263   : > { %v3600_v33 = vrot.slane %v3599_v31, 2 }
0x1265   : > { %v3601_v35 = vadd.f32 %v3600_v33, %v3599_v31  ;;  %v3824_v31 = vmul.f32 0.0078125, %v3816_v23 }
0x1267   : > { %v3602_v36 = vrot.slane %v3601_v35, 1  ;;  %v3828_v38 = vmul.f32 %v3824_v31, %v3824_v31 }
0x1269   : > { %v3603_v37 = vadd.f32 %v3602_v36, %v3601_v35 }
0x126b   : > { %7783 = vmatmul.mubr.f32.vlgmr.msra.gmra.mxu1 %v3603_v37 }
0x126c   : > { %4060 = vmatprep.mubr.bf16.mxu1 %v9286_v1  ;;  %4029 = vmatpush1.bf16.msra.mxu1 %v8392_v4 }
0x126d   : > { %4030 = vmatprep.subr.bf16.mxu1 %v8398_v61  ;;  %v3811_v61 = vld [vmem:[#allocation18] ss:$2 sm:$0x7] }
0x132b   : > { %v3687_v41 = vpop.f32.mrf.mxu1 }
0x132c   : > { %v3688_v43 = vadd.f32 %v3687_v41, %v3620_v40 }
0x132d   : > { %v7784_v44 = vpop.f32.mrf.mxu1 }
0x132e   : > { %3691 = vst [vmem:[%s980_s29] sm:$0x1] %v3688_v43  ;;  %v3693_v45 = vadd.f32 %v3692_v42, %v3688_v43  ;;  %v10052_v42 = vld [vmem:[%s10469_s12] sm:$0x3f]  ;;  %s9291_s29 = smov [#allocation27]  }
0x132f   : > { %s9114_s1 = sshll.u32 %s9291_s29, 4  ;;  %s9115_s1 = int_to_ptr.vmem [resolvable:$false] %s9114_s1 }
0x1330   : > { %7818 = vmatmul.mubr.f32.vlgmr.msra.gmra.mxu0 %v3693_v45  ;;  %s9116_s6 = scalar_lea.vmem %s9115_s1, 512  ;;  %p9117_p11 = scmp.lt.s32.totalorder %s10346_s10, %s9115_s1 }
0x1331   : > { %7836 = vmatprep.mubr.msk.bf16.mxu0 %vm9289_vm5, %v9288_v21  ;;  %7821 = vmatpush3.bf16.msra.mxu0 %v8395_v5  ;;  %p9118_p12 = scmp.lt.s32.totalorder %s9116_s6, %s9110_s0 }
0x1332   : > { %7822 = vmatprep.subr.bf16.mxu0 %v9288_v21 }
0x1333   : > { %p9119_p4 = por %p9118_p12, %p9117_p11 }
0x1335   : > { %7823 = vmatpush3.bf16.msra.mxu0 %v8399_v2  ;;  %p9120_p0 = pnand %p9119_p4, %p9113_p10 }
0x1336   : > { %7824 = vmatprep.subr.bf16.mxu0 %v9288_v21 }
0x1339   : > { %7825 = vmatpush3.bf16.msra.mxu0 %v8403_v8 }
0x133a   : > { %7826 = vmatprep.subr.bf16.mxu0 %v9288_v21 }
0x133d   : > { %7827 = vmatpush3.bf16.msra.mxu0 %v8407_v12 }
0x133e   : > { %7828 = vmatprep.subr.bf16.mxu0 %v9288_v21 }
0x1341   : > { %7829 = vmatpush3.bf16.msra.mxu0 %v8411_v17  ;;  %v3888_v17 = vrot.slane %v3811_v61, %v9769_v58 }
0x1342   : > { %7830 = vmatprep.subr.bf16.mxu0 %v9288_v21 }
0x1345   : > { %7831 = vmatpush3.bf16.msra.mxu0 %v8415_v25 }
0x1346   : > { %7832 = vmatprep.subr.bf16.mxu0 %v9288_v21 }
0x1349   : > { %7833 = vmatpush3.bf16.msra.mxu0 %v8419_v24 }
0x134a   : > { %7834 = vmatprep.subr.bf16.mxu0 %v9288_v21 }
0x134d   : > { %7835 = vmatpush3.bf16.msra.mxu0 %v8423_v29 }
0x13f0   : > { %v3777_v47 = vpop.f32.mrf.mxu0 }
0x13f1   : > { %v3778_v48 = vadd.f32 %v3777_v47, %v3710_v46  ;;  %v3842_v46 = vrot.slane %v10052_v42, %v9769_v58  ;;  %v3832_v47 = vsub.f32 %v9933_v27, %v3824_v31 }
0x13f2   : > { %v7819_v49 = vpop.f32.mrf.mxu0 }
0x13f3   : > { %v3789_v34 = vrot.slane %v3778_v48, %v9769_v58 }
0x13f5   : > { %v3790_v51 = vsel %vm3784_vm10, %v3789_v34, %v9790_v7  ;;  %v8396_v7 = vld [vmem:[#allocation12 + $0x90] ss:$12 sps:$4 sm:$0xff]  }
0x13f6   : > { %v10034_v52 = vadd.f32 %v3792_v50, %v3790_v51  ;;  %4031 = vmatpush1.bf16.msra.mxu1 %v8396_v7  ;;  %v3848_v50 = vrot.slane %v10052_v42, %v9777_v60 }
0x13f7   : > { %4032 = vmatprep.subr.bf16.mxu1 %v8402_v62  ;;  %v3892_v62 = vrot.slane %v3811_v61, %v9777_v60 }
0x13f8   : > { %3813 = vadd.xlane.f32.xlu0 %v10034_v52  ;;  %v3817_v53 = vmul.f32 %v10034_v52, %v10034_v52 }
0x13fa   : > { %4033 = vmatpush1.bf16.msra.mxu1 %v8400_v3 }
0x13fb   : > { %4034 = vmatprep.subr.bf16.mxu1 %v8406_v11 }
0x13fc   : > { %3819 = vadd.xlane.f32.xlu0 %v3817_v53 }
0x13fe   : > { %4035 = vmatpush1.bf16.msra.mxu1 %v8404_v10 }
0x13ff   : > { %4036 = vmatprep.subr.bf16.mxu1 %v8410_v13 }
0x1400   : > { %3821 = vadd.xlane.f32.xlu0 %v3818_v55 }
0x1402   : > { %4037 = vmatpush1.bf16.msra.mxu1 %v8408_v15 }
0x1403   : > { %4038 = vmatprep.subr.bf16.mxu1 %v8414_v19  ;;  %v3896_v19 = vrot.slane %v3811_v61, %v9788_v6  ;;  %v8425_v61 = vld [vmem:[#allocation14 + $0x30] sm:$0xff]  }
0x1406   : > { %4039 = vmatpush1.bf16.msra.mxu1 %v8412_v20 }
0x1407   : > { %4040 = vmatprep.subr.bf16.mxu1 %v8418_v26 }
0x140a   : > { %4041 = vmatpush1.bf16.msra.mxu1 %v8416_v28 }
0x140b   : > { %4042 = vmatprep.subr.bf16.mxu1 %v8422_v54 }
0x140e   : > { %4043 = vmatpush1.bf16.msra.mxu1 %v8420_v18  ;;  %v3796_v18 = vld [vmem:[%s838_s13] sm:$0x1] }
0x140f   : > { %7840 = vmatprep.subr.bf16.mxu1 %v9288_v21  ;;  %vm3799_vm11 = vcmp.gt.f32.partialorder %v3796_v18, 0.0 }
0x1410   : > { %v3800_v29 = vsel %vm3799_vm11, 1, %v9286_v1 }
0x1411   : > { %v3804_v23 = vrot.slane %v3800_v29, %v9769_v58 }
0x1413   : > { %vm3805_vm13 = vcmp.eq.s32.totalorder %v3804_v23, 1 }
0x1414   : > { %vm3806_vm14 = vmand %vm3797_vm12, %vm3805_vm13 }
0x1481   : > { %v3814_v59 = vpop.xlane.xlu0 %3813 }
0x1482   : > { %v3823_v30 = vmul.f32 0.0078125, %v3814_v59  ;;  %v3783_v59 = vadd.s32 8, %v9766_v57 }
0x1484   : > { %v3827_v33 = vmul.f32 %v3823_v30, %v3823_v30  ;;  %v3831_v43 = vsub.f32 %v10034_v52, %v3823_v30  ;;  %vm3798_vm15 = vcmp.ge.s32.totalorder %v3783_v59, %v9742_v14  ;;  %v8434_v59 = vld [vmem:[#allocation15 + $0xe4] ss:$16 sps:$4 sm:$0xff]  }
0x1485   : > { %v3820_v16 = vpop.xlane.xlu0 %3819  ;;  %vm3807_vm0 = vmand %vm3798_vm15, %vm3805_vm13  ;;  %4594 = vmatprep.subr.bf16.mxu0 %v8434_v59 }
0x1486   : > { %v3825_v35 = vmul.f32 0.0078125, %v3820_v16  ;;  %v10079_v16 = vsel %vm3806_vm14, 0.0, %v9290_v32 }
0x1488   : > { %v3829_v36 = vsub.f32 %v3825_v35, %v3827_v33 }
0x1489   : > { %v3822_v37 = vpop.xlane.xlu0 %3821 }
0x148a   : > { %v3833_v22 = vadd.f32 1e-05, %v3829_v36  ;;  %v3826_v39 = vmul.f32 0.0078125, %v3822_v37  ;;  %v10083_v37 = vsel %vm3807_vm0, 0.0, %v9290_v32 }
0x148c   : > { %8678 = vrsqrt.f32 %v3833_v22  ;;  %v3830_v40 = vsub.f32 %v3826_v39, %v3828_v38 }
0x148e   : > { %v3834_v41 = vadd.f32 1e-05, %v3830_v40 }
0x1490   : > { %8680 = vrsqrt.f32 %v3834_v41 }
0x1499   : > { %v8679_v44 = vpop.eup %8678 }
0x149a   : > { %v3837_v45 = vmul.f32 %v8679_v44, %v3831_v43 }
0x149c   : > { %v3843_v34 = vmul.f32 %v3842_v46, %v3837_v45 }
0x149d   : > { %v8681_v48 = vpop.eup %8680 }
0x149e   : > { %v3838_v49 = vmul.f32 %v8681_v48, %v3832_v47  ;;  %v3849_v53 = vadd.f32 %v3848_v50, %v3843_v34 }
0x14a0   : > { %v3844_v51 = vmul.f32 %v3842_v46, %v3838_v49 }
0x14a2   : > { %v3850_v55 = vadd.f32 %v3848_v50, %v3844_v51 }
0x14a4   : > { %v3851_v56 = vpack.c.bf16 %v3850_v55, %v3849_v53 }
0x14a6   : > { %4061 = vmatmul.mubr.bf16.vlgmr.msra.gmra.mxu1 %v3851_v56  ;;  %7837 = vmatmul.mubr.bf16.vlgmr.msra.gmra.mxu0 %v3851_v56 }
0x14a7   : > { %7842 = vmatprep.mubr.msk.bf16.mxu1 %vm9289_vm5, %v9288_v21  ;;  %4626 = vmatprep.mubr.bf16.mxu0 %v9286_v1 }
0x1566   : > { %v4062_v4 = vpop.f32.mrf.mxu1  ;;  %v4105_v5 = vpop.f32.mrf.mxu0 }
0x1567   : > { %v4063_v26 = vadd.f32 %v4062_v4, %v3888_v17  ;;  %v4106_v28 = vadd.f32 %v4105_v5, %v3896_v19  ;;  %v8424_v4 = vld [vmem:[#allocation14 + $0x38] sm:$0xff]  }
0x1568   : > { %v4064_v7 = vpop.f32.mrf.mxu1  ;;  %v7838_v2 = vpop.f32.mrf.mxu0 }
0x1569   : > { %v4065_v12 = vadd.f32 %v4064_v7, %v3892_v62  ;;  %v8426_v7 = vld [vmem:[#allocation14 + $0x28] sm:$0xff]   ;;  %v8427_v2 = vld [vmem:[#allocation14 + $0x20] sm:$0xff]  }
0x156a   : > { %v4066_v3 = vpop.f32.mrf.mxu1  ;;  %v4108_v8 = vpop.f32.mrf.mxu0 }
0x156b   : > { %v4067_v20 = vadd.f32 %v4066_v3, %v3888_v17  ;;  %v4109_v25 = vadd.f32 %v4108_v8, %v3896_v19  ;;  %v8429_v3 = vld [vmem:[#allocation14 + $0x10] sm:$0xff]   ;;  %v8430_v8 = vld [vmem:[#allocation14 + $0x8] sm:$0xff]   ;;  %v4339_v19 = vrot.slane %v10052_v42, %v9788_v6 }
0x156c   : > { %v4068_v10 = vpop.f32.mrf.mxu1  ;;  %v7839_v11 = vpop.f32.mrf.mxu0 }
0x156d   : > { %v4069_v13 = vadd.f32 %v4068_v10, %v3892_v62  ;;  %v4112_v24 = vpack.c.bf16 %v4067_v20, %v4063_v26  ;;  %v4183_v54 = vpack.c.bf16 %v4109_v25, %v4106_v28  ;;  %v8428_v62 = vld [vmem:[#allocation14 + $0x18] sm:$0xff]   ;;  %v8431_v10 = vld [vmem:[#allocation14] sm:$0xff]  }
0x156f   : > { %v4113_v15 = vpack.c.bf16 %v4069_v13, %v4065_v12 }
0x1571   : > { %7841 = vmatpush3.bf16.xpose.msra.mxu1 %v4113_v15 }
0x1572   : > { %7846 = vmatprep.subr.bf16.mxu1 %v9288_v21 }
0x1578   : > { %7843 = vmatmul.mubr.bf16.vlgmr.msra.gmra.mxu1 %v4112_v24 }
0x1579   : > { %7847 = vmatpush3.bf16.msra.mxu1 %v4183_v54  ;;  %7848 = vmatprep.mubr.msk.bf16.mxu1 %vm9289_vm5, %v9288_v21 }
0x157a   : > { %7852 = vmatprep.subr.bf16.mxu1 %v9288_v21 }
0x1638   : > { %v4148_v30 = vpop.f32.mrf.mxu1 }
0x1639   : > { %v4155_v31 = vmul.f32 0.088388346, %v4148_v30  ;;  %v8437_v30 = vld [vmem:[#allocation15 + $0xec] ss:$16 sps:$4 sm:$0xff]  }
0x163a   : > { %v7844_v33 = vpop.f32.mrf.mxu1 }
0x163b   : > { %v4157_v35 = vadd.f32 %v4155_v31, %v10079_v16  ;;  %v8432_v31 = vld [vmem:[#allocation15 + $0xe0] ss:$16 sps:$4 sm:$0xff]   ;;  %v8435_v33 = vld [vmem:[#allocation15 + $0xe8] ss:$16 sps:$4 sm:$0xff]  }
0x163c   : > { %v4151_v36 = vpop.f32.mrf.mxu1  ;;  %4595 = vmatpush1.bf16.msra.mxu0 %v8432_v31 }
0x163d   : > { %v4156_v38 = vmul.f32 0.088388346, %v4151_v36  ;;  %v4160_v57 = vsel %vm4159_vm1, %v4157_v35, -inf  ;;  %v8438_v36 = vld [vmem:[#allocation15 + $0xc0] ss:$16 sps:$4 sm:$0xff]  }
0x163e   : > { %4161 = vmax.xlane.f32.xlu1 %v4160_v57  ;;  %v7845_v22 = vpop.f32.mrf.mxu1  ;;  %v8446_v57 = vld [vmem:[#allocation15 + $0xa4] ss:$16 sps:$4 sm:$0xff]  }
0x163f   : > { %v4158_v14 = vadd.f32 %v4156_v38, %v10083_v37  ;;  %v8441_v38 = vld [vmem:[#allocation15 + $0xc8] ss:$16 sps:$4 sm:$0xff]   ;;  %v8449_v22 = vld [vmem:[#allocation15 + $0xac] ss:$16 sps:$4 sm:$0xff]  }
0x1641   : > { %v4163_v39 = vsel %vm4159_vm1, %v4158_v14, -inf }
0x1642   : > { %4164 = vmax.xlane.f32.xlu0 %v4163_v39  ;;  %v8447_v39 = vld [vmem:[#allocation15 + $0xa8] ss:$16 sps:$4 sm:$0xff]  }
0x16c7   : > { %v4162_v40 = vpop.xlane.xlu1 %4161 }
0x16c8   : > { %v4166_v41 = vsub.f32 %v4157_v35, %v4162_v40  ;;  %v8443_v35 = vld [vmem:[#allocation15 + $0xcc] ss:$16 sps:$4 sm:$0xff]   ;;  %v8450_v40 = vld [vmem:[#allocation15 + $0x80] ss:$16 sps:$4 sm:$0xff]  }
0x16ca   : > { %v4168_v43 = vmul.f32 1.442695, %v4166_v41  ;;  %v8452_v41 = vld [vmem:[#allocation15 + $0x84] ss:$16 sps:$4 sm:$0xff]  }
0x16cb   : > { %v4165_v44 = vpop.xlane.xlu0 %4164 }
0x16cc   : > { %8682 = vpow2.f32 %v4168_v43  ;;  %v4167_v45 = vsub.f32 %v4158_v14, %v4165_v44  ;;  %v8444_v14 = vld [vmem:[#allocation15 + $0xa0] ss:$16 sps:$4 sm:$0xff]   ;;  %v8453_v43 = vld [vmem:[#allocation15 + $0x88] ss:$16 sps:$4 sm:$0xff]   ;;  %v8455_v44 = vld [vmem:[#allocation15 + $0x8c] ss:$16 sps:$4 sm:$0xff]  }
0x16ce   : > { %v4170_v46 = vmul.f32 1.442695, %v4167_v45  ;;  %v8458_v45 = vld [vmem:[#allocation15 + $0x64] ss:$16 sps:$4 sm:$0xff]  }
0x16d0   : > { %8684 = vpow2.f32 %v4170_v46  ;;  %v8461_v46 = vld [vmem:[#allocation15 + $0x6c] ss:$16 sps:$4 sm:$0xff]  }
0x16d9   : > { %v8683_v32 = vpop.eup %8682 }
0x16da   : > { %v4172_v47 = vsel %vm4159_vm1, %v8683_v32, 0.0 }
0x16db   : > { %4173 = vadd.xlane.f32.xlu0 %v4172_v47  ;;  %v8459_v47 = vld [vmem:[#allocation15 + $0x68] ss:$16 sps:$4 sm:$0xff]  }
0x16dd   : > { %v8685_v48 = vpop.eup %8684 }
0x16de   : > { %v4175_v49 = vsel %vm4159_vm1, %v8685_v48, 0.0 }
0x16df   : > { %4176 = vadd.xlane.f32.xlu0 %v4175_v49  ;;  %v8467_v49 = vld [vmem:[#allocation15 + $0x4c] ss:$16 sps:$4 sm:$0xff]  }
0x1764   : > { %v4174_v34 = vpop.xlane.xlu0 %4173 }
0x1765   : > { %8686 = vrcp.f32 %v4174_v34  ;;  %v8462_v34 = vld [vmem:[#allocation15 + $0x40] ss:$16 sps:$4 sm:$0xff]  }
0x1768   : > { %v4177_v50 = vpop.xlane.xlu0 %4176 }
0x1769   : > { %8688 = vrcp.f32 %v4177_v50  ;;  %v8465_v50 = vld [vmem:[#allocation15 + $0x48] ss:$16 sps:$4 sm:$0xff]  }
0x1772   : > { %v8687_v51 = vpop.eup %8686 }
0x1773   : > { %v4180_v55 = vmul.f32 %v8687_v51, %v8683_v32  ;;  %v8456_v32 = vld [vmem:[#allocation15 + $0x60] ss:$16 sps:$4 sm:$0xff]   ;;  %v8470_v51 = vld [vmem:[#allocation15 + $0x24] ss:$16 sps:$4 sm:$0xff]  }
0x1776   : > { %v8689_v53 = vpop.eup %8688 }
0x1777   : > { %v4181_v56 = vmul.f32 %v8689_v53, %v8685_v48  ;;  %v8464_v48 = vld [vmem:[#allocation15 + $0x44] ss:$16 sps:$4 sm:$0xff]   ;;  %v8473_v53 = vld [vmem:[#allocation15 + $0x2c] ss:$16 sps:$4 sm:$0xff]  }
0x1779   : > { %v4182_v5 = vpack.c.bf16 %v4181_v56, %v4180_v55  ;;  %v8468_v55 = vld [vmem:[#allocation15 + $0x20] ss:$16 sps:$4 sm:$0xff]   ;;  %v8471_v56 = vld [vmem:[#allocation15 + $0x28] ss:$16 sps:$4 sm:$0xff]  }
0x177b   : > { %7849 = vmatmul.mubr.msk.bf16.vlgmr.msra.gmra.mxu1 %vm4159_vm1, %v4182_v5  ;;  %v8479_v5 = vld [vmem:[#allocation15 + $0xc] ss:$16 sps:$4 sm:$0xff]  }
0x177c   : > { %7853 = vmatpush3.bf16.msra.mxu1 %v8424_v4  ;;  %7868 = vmatprep.mubr.msk.bf16.mxu1 %vm9289_vm5, %v9288_v21  ;;  %v8476_v4 = vld [vmem:[#allocation15 + $0x4] ss:$16 sps:$4 sm:$0xff]  }
0x177d   : > { %7854 = vmatprep.subr.bf16.mxu1 %v9288_v21 }
0x1780   : > { %7855 = vmatpush3.bf16.msra.mxu1 %v8425_v61  ;;  %v8474_v61 = vld [vmem:[#allocation15] ss:$16 sps:$4 sm:$0xff]  }
0x1781   : > { %7856 = vmatprep.subr.bf16.mxu1 %v9288_v21 }
0x1784   : > { %7857 = vmatpush3.bf16.msra.mxu1 %v8426_v7  ;;  %v8477_v7 = vld [vmem:[#allocation15 + $0x8] ss:$16 sps:$4 sm:$0xff]  }
0x1785   : > { %7858 = vmatprep.subr.bf16.mxu1 %v9288_v21 }
0x1788   : > { %7859 = vmatpush3.bf16.msra.mxu1 %v8427_v2 }
0x1789   : > { %7860 = vmatprep.subr.bf16.mxu1 %v9288_v21 }
0x178c   : > { %7861 = vmatpush3.bf16.msra.mxu1 %v8428_v62 }
0x178d   : > { %7862 = vmatprep.subr.bf16.mxu1 %v9288_v21 }
0x1790   : > { %7863 = vmatpush3.bf16.msra.mxu1 %v8429_v3 }
0x1791   : > { %7864 = vmatprep.subr.bf16.mxu1 %v9288_v21 }
0x1794   : > { %7865 = vmatpush3.bf16.msra.mxu1 %v8430_v8 }
0x1795   : > { %7866 = vmatprep.subr.bf16.mxu1 %v9288_v21 }
0x1798   : > { %7867 = vmatpush3.bf16.msra.mxu1 %v8431_v10 }
0x1799   : > { %4637 = vmatprep.subr.bf16.mxu1 %v8437_v30 }
0x183b   : > { %v4221_v11 = vpop.f32.mrf.mxu1 }
0x183d   : > { %v7850_v12 = vpop.f32.mrf.mxu1 }
0x183f   : > { %v4224_v13 = vpop.f32.mrf.mxu1 }
0x1840   : > { %v4228_v15 = vpack.c.bf16 %v4224_v13, %v4221_v11 }
0x1841   : > { %v7851_v17 = vpop.f32.mrf.mxu1 }
0x1842   : > { %7869 = vmatmul.mubr.bf16.vlgmr.msra.gmra.mxu1 %v4228_v15 }
0x1843   : > { %4669 = vmatprep.mubr.bf16.mxu1 %v9286_v1  ;;  %4638 = vmatpush1.bf16.msra.mxu1 %v8435_v33  ;;  %v4377_v33 = vrot.slane %v10052_v42, %v9834_v0 }
0x1844   : > { %4639 = vmatprep.subr.bf16.mxu1 %v8443_v35 }
0x1847   : > { %4640 = vmatpush1.bf16.msra.mxu1 %v8441_v38 }
0x1848   : > { %4641 = vmatprep.subr.bf16.mxu1 %v8449_v22  ;;  %v8481_v22 = vld [vmem:[#allocation17 + $0xf8] sm:$0xff]  }
0x184b   : > { %4642 = vmatpush1.bf16.msra.mxu1 %v8447_v39  ;;  %v8483_v39 = vld [vmem:[#allocation17 + $0xb8] sm:$0xff]  }
0x184c   : > { %4643 = vmatprep.subr.bf16.mxu1 %v8455_v44  ;;  %v8487_v44 = vld [vmem:[#allocation17 + $0xb0] sm:$0xff]  }
0x184f   : > { %4644 = vmatpush1.bf16.msra.mxu1 %v8453_v43  ;;  %v8486_v43 = vld [vmem:[#allocation17 + $0x30] sm:$0xff]  }
0x1850   : > { %4645 = vmatprep.subr.bf16.mxu1 %v8461_v46  ;;  %v8489_v46 = vld [vmem:[#allocation17 + $0xe8] sm:$0xff]  }
0x1853   : > { %4646 = vmatpush1.bf16.msra.mxu1 %v8459_v47  ;;  %v8491_v47 = vld [vmem:[#allocation17 + $0xa8] sm:$0xff]  }
0x1854   : > { %4647 = vmatprep.subr.bf16.mxu1 %v8467_v49  ;;  %v8493_v49 = vld [vmem:[#allocation17 + $0xe0] sm:$0xff]  }
0x1857   : > { %4648 = vmatpush1.bf16.msra.mxu1 %v8465_v50  ;;  %v8495_v50 = vld [vmem:[#allocation17 + $0xa0] sm:$0xff]  }
0x1858   : > { %4649 = vmatprep.subr.bf16.mxu1 %v8473_v53  ;;  %v8497_v53 = vld [vmem:[#allocation17 + $0xd8] sm:$0xff]  }
0x185b   : > { %4650 = vmatpush1.bf16.msra.mxu1 %v8471_v56  ;;  %v8499_v56 = vld [vmem:[#allocation17 + $0x98] sm:$0xff]  }
0x185c   : > { %4651 = vmatprep.subr.bf16.mxu1 %v8479_v5  ;;  %v8501_v5 = vld [vmem:[#allocation17 + $0xd0] sm:$0xff]  }
0x185f   : > { %4652 = vmatpush1.bf16.msra.mxu1 %v8477_v7  ;;  %v8503_v7 = vld [vmem:[#allocation17 + $0x90] sm:$0xff]  }
0x1860   : > { %7529 = vmatprep.subr.bf16.mxu1 %v8481_v22 }
0x1902   : > { %v4327_v20 = vpop.f32.mrf.mxu1 }
0x1903   : > { %v4334_v25 = vadd.f32 %v4327_v20, %v10034_v52 }
0x1904   : > { %v7870_v26 = vpop.f32.mrf.mxu1 }
0x1905   : > { %v10104_v28 = vadd.f32 %v4339_v19, %v4334_v25 }
0x1906   : > { %v4330_v24 = vpop.f32.mrf.mxu1 }
0x1907   : > { %4342 = vadd.xlane.f32.xlu0 %v10104_v28  ;;  %v4335_v18 = vadd.f32 %v4330_v24, %v9933_v27  ;;  %v4346_v29 = vmul.f32 %v10104_v28, %v10104_v28  ;;  %v8440_v27 = vld [vmem:[#allocation15 + $0xc4] ss:$16 sps:$4 sm:$0xff]  }
0x1908   : > { %v7871_v54 = vpop.f32.mrf.mxu1  ;;  %4596 = vmatprep.subr.bf16.mxu0 %v8440_v27 }
0x1909   : > { %v10110_v23 = vadd.f32 %v4339_v19, %v4335_v18  ;;  %4597 = vmatpush1.bf16.msra.mxu0 %v8438_v36 }
0x190a   : > { %4598 = vmatprep.subr.bf16.mxu0 %v8446_v57  ;;  %v8480_v57 = vld [vmem:[#allocation17 + $0x78] sm:$0xff]  }
0x190b   : > { %4348 = vadd.xlane.f32.xlu0 %v4346_v29  ;;  %v4347_v52 = vmul.f32 %v10110_v23, %v10110_v23  ;;  %v4371_v29 = vrot.slane %v10052_v42, %v9831_v63 }
0x190d   : > { %4599 = vmatpush1.bf16.msra.mxu0 %v8444_v14  ;;  %v8482_v14 = vld [vmem:[#allocation17 + $0x38] sm:$0xff]  }
0x190e   : > { %4600 = vmatprep.subr.bf16.mxu0 %v8452_v41  ;;  %v8485_v41 = vld [vmem:[#allocation17 + $0xf0] sm:$0xff]  }
0x190f   : > { %4344 = vadd.xlane.f32.xlu0 %v10110_v23 }
0x1911   : > { %4601 = vmatpush1.bf16.msra.mxu0 %v8450_v40  ;;  %v8484_v40 = vld [vmem:[#allocation17 + $0x70] sm:$0xff]  }
0x1912   : > { %4602 = vmatprep.subr.bf16.mxu0 %v8458_v45  ;;  %v8488_v45 = vld [vmem:[#allocation17 + $0x68] sm:$0xff]  }
0x1913   : > { %4350 = vadd.xlane.f32.xlu0 %v4347_v52 }
0x1915   : > { %4603 = vmatpush1.bf16.msra.mxu0 %v8456_v32  ;;  %v8490_v32 = vld [vmem:[#allocation17 + $0x28] sm:$0xff]  }
0x1916   : > { %4604 = vmatprep.subr.bf16.mxu0 %v8464_v48  ;;  %v8492_v48 = vld [vmem:[#allocation17 + $0x60] sm:$0xff]  }
0x1919   : > { %4605 = vmatpush1.bf16.msra.mxu0 %v8462_v34  ;;  %v8494_v34 = vld [vmem:[#allocation17 + $0x20] sm:$0xff]  }
0x191a   : > { %4606 = vmatprep.subr.bf16.mxu0 %v8470_v51  ;;  %v8496_v51 = vld [vmem:[#allocation17 + $0x58] sm:$0xff]  }
0x191d   : > { %4607 = vmatpush1.bf16.msra.mxu0 %v8468_v55  ;;  %v8498_v55 = vld [vmem:[#allocation17 + $0x18] sm:$0xff]  }
0x191e   : > { %4608 = vmatprep.subr.bf16.mxu0 %v8476_v4  ;;  %v8500_v4 = vld [vmem:[#allocation17 + $0x50] sm:$0xff]  }
0x1921   : > { %4609 = vmatpush1.bf16.msra.mxu0 %v8474_v61  ;;  %v8502_v61 = vld [vmem:[#allocation17 + $0x10] sm:$0xff]  }
0x1922   : > { %7507 = vmatprep.subr.bf16.mxu0 %v8480_v57 }
0x1990   : > { %v4343_v2 = vpop.xlane.xlu0 %4342 }
0x1991   : > { %v4352_v62 = vmul.f32 0.0078125, %v4343_v2  ;;  %v8504_v2 = vld [vmem:[#allocation17 + $0x48] sm:$0xff]  }
0x1993   : > { %v4356_v8 = vmul.f32 %v4352_v62, %v4352_v62  ;;  %v4360_v54 = vsub.f32 %v10104_v28, %v4352_v62  ;;  %v8505_v62 = vld [vmem:[#allocation17 + $0xc8] sm:$0xff]  }
0x1994   : > { %v4349_v3 = vpop.xlane.xlu0 %4348 }
0x1995   : > { %v4354_v10 = vmul.f32 0.0078125, %v4349_v3  ;;  %v8506_v3 = vld [vmem:[#allocation17 + $0x8] sm:$0xff]  }
0x1997   : > { %v4358_v11 = vsub.f32 %v4354_v10, %v4356_v8  ;;  %v8507_v8 = vld [vmem:[#allocation17 + $0x88] sm:$0xff]   ;;  %v8508_v10 = vld [vmem:[#allocation17 + $0x40] sm:$0xff]  }
0x1998   : > { %v4345_v12 = vpop.xlane.xlu0 %4344 }
0x1999   : > { %v4362_v13 = vadd.f32 1e-05, %v4358_v11  ;;  %v4353_v15 = vmul.f32 0.0078125, %v4345_v12  ;;  %v8509_v11 = vld [vmem:[#allocation17 + $0xc0] sm:$0xff]  }
0x199a   : > { %v8510_v12 = vld [vmem:[#allocation17] sm:$0xff]  }
0x199b   : > { %8690 = vrsqrt.f32 %v4362_v13  ;;  %v4357_v19 = vmul.f32 %v4353_v15, %v4353_v15  ;;  %v4361_v52 = vsub.f32 %v10110_v23, %v4353_v15  ;;  %v8511_v13 = vld [vmem:[#allocation17 + $0x80] sm:$0xff]  }
0x199c   : > { %v4351_v17 = vpop.xlane.xlu0 %4350  ;;  %v3812_v15 = vld [vmem:[#allocation20] ss:$2 sm:$0xf] }
0x199d   : > { %v4355_v20 = vmul.f32 0.0078125, %v4351_v17  ;;  %v4417_v17 = vrot.slane %v3812_v15, %v9769_v58 }
0x199f   : > { %v4359_v25 = vsub.f32 %v4355_v20, %v4357_v19  ;;  %v4425_v19 = vrot.slane %v3812_v15, %v9788_v6  ;;  %v4421_v20 = vrot.slane %v3812_v15, %v9777_v60 }
0x19a1   : > { %v4363_v26 = vadd.f32 1e-05, %v4359_v25  ;;  %v4429_v25 = vrot.slane %v3812_v15, %v9831_v63 }
0x19a3   : > { %8692 = vrsqrt.f32 %v4363_v26 }
0x19a8   : > { %v8691_v24 = vpop.eup %8690 }
0x19a9   : > { %v4366_v18 = vmul.f32 %v8691_v24, %v4360_v54 }
0x19ab   : > { %v4372_v31 = vmul.f32 %v4371_v29, %v4366_v18 }
0x19ad   : > { %v4378_v35 = vadd.f32 %v4377_v33, %v4372_v31 }
0x19b0   : > { %v8693_v59 = vpop.eup %8692 }
0x19b1   : > { %v4367_v30 = vmul.f32 %v8693_v59, %v4361_v52 }
0x19b3   : > { %v4373_v27 = vmul.f32 %v4371_v29, %v4367_v30 }
0x19b5   : > { %v4379_v36 = vadd.f32 %v4377_v33, %v4373_v27 }
0x19b7   : > { %v4380_v38 = vpack.c.bf16 %v4379_v36, %v4378_v35 }
0x19b9   : > { %4627 = vmatmul.mubr.bf16.vlgmr.msra.gmra.mxu0 %v4380_v38  ;;  %4670 = vmatmul.mubr.bf16.vlgmr.msra.gmra.mxu1 %v4380_v38 }
0x19ba   : > { %7508 = vmatpush3.bf16.msra.mxu0 %v8482_v14  ;;  %7530 = vmatpush3.bf16.msra.mxu1 %v8483_v39 }
0x19bb   : > { %7509 = vmatprep.subr.bf16.mxu0 %v8484_v40  ;;  %7531 = vmatprep.subr.bf16.mxu1 %v8485_v41 }
0x19be   : > { %7510 = vmatpush3.bf16.msra.mxu0 %v8486_v43  ;;  %7532 = vmatpush3.bf16.msra.mxu1 %v8487_v44 }
0x19bf   : > { %7511 = vmatprep.subr.bf16.mxu0 %v8488_v45  ;;  %7533 = vmatprep.subr.bf16.mxu1 %v8489_v46 }
0x19c2   : > { %7512 = vmatpush3.bf16.msra.mxu0 %v8490_v32  ;;  %7534 = vmatpush3.bf16.msra.mxu1 %v8491_v47 }
0x19c3   : > { %7513 = vmatprep.subr.bf16.mxu0 %v8492_v48  ;;  %7535 = vmatprep.subr.bf16.mxu1 %v8493_v49 }
0x19c6   : > { %7514 = vmatpush3.bf16.msra.mxu0 %v8494_v34  ;;  %7536 = vmatpush3.bf16.msra.mxu1 %v8495_v50 }
0x19c7   : > { %7515 = vmatprep.subr.bf16.mxu0 %v8496_v51  ;;  %7537 = vmatprep.subr.bf16.mxu1 %v8497_v53 }
0x19ca   : > { %7516 = vmatpush3.bf16.msra.mxu0 %v8498_v55  ;;  %7538 = vmatpush3.bf16.msra.mxu1 %v8499_v56 }
0x19cb   : > { %7517 = vmatprep.subr.bf16.mxu0 %v8500_v4  ;;  %7539 = vmatprep.subr.bf16.mxu1 %v8501_v5 }
0x19ce   : > { %7518 = vmatpush3.bf16.msra.mxu0 %v8502_v61  ;;  %7540 = vmatpush3.bf16.msra.mxu1 %v8503_v7 }
0x19cf   : > { %7519 = vmatprep.subr.bf16.mxu0 %v8504_v2  ;;  %7541 = vmatprep.subr.bf16.mxu1 %v8505_v62 }
0x19d2   : > { %7520 = vmatpush3.bf16.msra.mxu0 %v8506_v3  ;;  %7542 = vmatpush3.bf16.msra.mxu1 %v8507_v8 }
0x19d3   : > { %7521 = vmatprep.subr.bf16.mxu0 %v8508_v10  ;;  %7543 = vmatprep.subr.bf16.mxu1 %v8509_v11 }
0x19d6   : > { %7522 = vmatpush3.bf16.msra.mxu0 %v8510_v12  ;;  %7544 = vmatpush3.bf16.msra.mxu1 %v8511_v13 }
0x19d7   : > { %7872 = vmatprep.subr.bf16.mxu1 %v9288_v21 }
0x1a79   : > { %v4628_v26 = vpop.f32.mrf.mxu0  ;;  %v4671_v24 = vpop.f32.mrf.mxu1 }
0x1a7a   : > { %v10126_v54 = vadd.f32 %v4628_v26, %v4417_v17  ;;  %v10128_v18 = vadd.f32 %v4671_v24, %v4425_v19 }
0x1a7b   : > { %v4630_v29 = vpop.f32.mrf.mxu0  ;;  %v4673_v52 = vpop.f32.mrf.mxu1 }
0x1a7c   : > { %v4680_v59 = vmul.f32 %v10126_v54, %v10126_v54  ;;  %v4682_v30 = vmul.f32 %v10128_v18, %v10128_v18  ;;  %v10134_v31 = vadd.f32 %v4630_v29, %v4421_v20  ;;  %v10136_v33 = vadd.f32 %v4673_v52, %v4429_v25 }
0x1a7d   : > { %v4632_v27 = vpop.f32.mrf.mxu0  ;;  %v4675_v35 = vpop.f32.mrf.mxu1 }
0x1a7e   : > { %v4688_v36 = vmul.f32 %v4680_v59, %v10126_v54  ;;  %v4690_v38 = vmul.f32 %v4682_v30, %v10128_v18  ;;  %v4681_v57 = vmul.f32 %v10134_v31, %v10134_v31  ;;  %v4683_v22 = vmul.f32 %v10136_v33, %v10136_v33 }
0x1a7f   : > { %v10144_v14 = vadd.f32 %v4632_v27, %v4417_v17  ;;  %v10146_v39 = vadd.f32 %v4675_v35, %v4425_v19  ;;  %v4634_v40 = vpop.f32.mrf.mxu0  ;;  %v4677_v41 = vpop.f32.mrf.mxu1 }
0x1a80   : > { %v4696_v43 = vmul.f32 0.044715, %v4688_v36  ;;  %v4698_v44 = vmul.f32 0.044715, %v4690_v38  ;;  %v4689_v45 = vmul.f32 %v4681_v57, %v10134_v31  ;;  %v4691_v46 = vmul.f32 %v4683_v22, %v10136_v33 }
0x1a81   : > { %v4684_v32 = vmul.f32 %v10144_v14, %v10144_v14  ;;  %v4686_v47 = vmul.f32 %v10146_v39, %v10146_v39  ;;  %v10154_v48 = vadd.f32 %v4634_v40, %v4421_v20  ;;  %v10156_v49 = vadd.f32 %v4677_v41, %v4429_v25 }
0x1a82   : > { %v4704_v34 = vadd.f32 %v4696_v43, %v10126_v54  ;;  %v4706_v50 = vadd.f32 %v4698_v44, %v10128_v18  ;;  %v4697_v51 = vmul.f32 0.044715, %v4689_v45  ;;  %v4699_v53 = vmul.f32 0.044715, %v4691_v46 }
0x1a83   : > { %v4692_v55 = vmul.f32 %v4684_v32, %v10144_v14  ;;  %v4694_v56 = vmul.f32 %v4686_v47, %v10146_v39  ;;  %v4685_v4 = vmul.f32 %v10154_v48, %v10154_v48  ;;  %v4687_v5 = vmul.f32 %v10156_v49, %v10156_v49 }
0x1a84   : > { %v4712_v61 = vmul.f32 0.7978846, %v4704_v34  ;;  %v4714_v7 = vmul.f32 0.7978846, %v4706_v50  ;;  %v4705_v2 = vadd.f32 %v4697_v51, %v10134_v31  ;;  %v4707_v62 = vadd.f32 %v4699_v53, %v10136_v33 }
0x1a85   : > { %v4700_v3 = vmul.f32 0.044715, %v4692_v55  ;;  %v4702_v8 = vmul.f32 0.044715, %v4694_v56  ;;  %v4693_v10 = vmul.f32 %v4685_v4, %v10154_v48  ;;  %v4695_v11 = vmul.f32 %v4687_v5, %v10156_v49 }
0x1a86   : > { %8694 = vtanh.f32 %v4712_v61  ;;  %v4713_v12 = vmul.f32 0.7978846, %v4705_v2  ;;  %v4715_v13 = vmul.f32 0.7978846, %v4707_v62 }
0x1a87   : > { %8696 = vtanh.f32 %v4714_v7  ;;  %v4708_v15 = vadd.f32 %v4700_v3, %v10144_v14  ;;  %v4710_v17 = vadd.f32 %v4702_v8, %v10146_v39  ;;  %v4701_v19 = vmul.f32 0.044715, %v4693_v10 }
0x1a88   : > { %8698 = vtanh.f32 %v4713_v12  ;;  %v4703_v20 = vmul.f32 0.044715, %v4695_v11 }
0x1a89   : > { %8700 = vtanh.f32 %v4715_v13  ;;  %v4716_v25 = vmul.f32 0.7978846, %v4708_v15  ;;  %v4718_v26 = vmul.f32 0.7978846, %v4710_v17  ;;  %v4709_v24 = vadd.f32 %v4701_v19, %v10154_v48 }
0x1a8a   : > { %v4711_v29 = vadd.f32 %v4703_v20, %v10156_v49 }
0x1a8b   : > { %8702 = vtanh.f32 %v4716_v25  ;;  %v4717_v52 = vmul.f32 0.7978846, %v4709_v24  ;;  %v5099_v25 = vrot.slane %v10052_v42, %v9851_v9 }
0x1a8c   : > { %8704 = vtanh.f32 %v4718_v26  ;;  %v4719_v59 = vmul.f32 0.7978846, %v4711_v29 }
0x1a8d   : > { %8706 = vtanh.f32 %v4717_v52 }
0x1a8e   : > { %8708 = vtanh.f32 %v4719_v59 }
0x1a93   : > { %v8695_v30 = vpop.eup %8694 }
0x1a94   : > { %v8697_v27 = vpop.eup %8696  ;;  %v4728_v22 = vadd.f32 1.0, %v8695_v30 }
0x1a95   : > { %v8699_v35 = vpop.eup %8698  ;;  %v4730_v43 = vadd.f32 1.0, %v8697_v27 }
0x1a96   : > { %v8701_v36 = vpop.eup %8700  ;;  %v4729_v38 = vadd.f32 1.0, %v8699_v35  ;;  %v4736_v51 = vmul.f32 0.5, %v4728_v22  ;;  %v8515_v22 = vld [vmem:[#allocation12 + $0x170] ss:$12 sps:$4 sm:$0xff]  }
0x1a97   : > { %v4731_v40 = vadd.f32 1.0, %v8701_v36  ;;  %v4738_v4 = vmul.f32 0.5, %v4730_v43  ;;  %v8522_v43 = vld [vmem:[#allocation12 + $0x13c] ss:$12 sps:$4 sm:$0xff]  }
0x1a98   : > { %v8703_v57 = vpop.eup %8702  ;;  %v4737_v50 = vmul.f32 0.5, %v4729_v38  ;;  %v4744_v8 = vmul.f32 %v4736_v51, %v10126_v54  ;;  %v8531_v51 = vld [vmem:[#allocation12 + $0x110] ss:$12 sps:$4 sm:$0xff]  }
0x1a99   : > { %v8705_v41 = vpop.eup %8704  ;;  %v4732_v44 = vadd.f32 1.0, %v8703_v57  ;;  %v4739_v56 = vmul.f32 0.5, %v4731_v40  ;;  %v4746_v12 = vmul.f32 %v4738_v4, %v10128_v18  ;;  %v8512_v57 = vld [vmem:[#allocation12 + $0x168] ss:$12 sps:$4 sm:$0xff]   ;;  %v8516_v40 = vld [vmem:[#allocation12 + $0x150] ss:$12 sps:$4 sm:$0xff]  }
0x1a9a   : > { %v8707_v45 = vpop.eup %8706  ;;  %v4734_v46 = vadd.f32 1.0, %v8705_v41  ;;  %v4745_v62 = vmul.f32 %v4737_v50, %v10134_v31  ;;  %v8519_v41 = vld [vmem:[#allocation12 + $0x158] ss:$12 sps:$4 sm:$0xff]   ;;  %v8528_v50 = vld [vmem:[#allocation12 + $0x108] ss:$12 sps:$4 sm:$0xff]  }
0x1a9b   : > { %v8709_v32 = vpop.eup %8708  ;;  %v4740_v47 = vmul.f32 0.5, %v4732_v44  ;;  %v4733_v34 = vadd.f32 1.0, %v8707_v45  ;;  %v4747_v10 = vmul.f32 %v4739_v56, %v10136_v33  ;;  %v8520_v44 = vld [vmem:[#allocation12 + $0x138] ss:$12 sps:$4 sm:$0xff]   ;;  %v8523_v45 = vld [vmem:[#allocation12 + $0x140] ss:$12 sps:$4 sm:$0xff]  }
0x1a9c   : > { %v4742_v53 = vmul.f32 0.5, %v4734_v46  ;;  %v4735_v55 = vadd.f32 1.0, %v8709_v32  ;;  %v8524_v46 = vld [vmem:[#allocation12 + $0x120] ss:$12 sps:$4 sm:$0xff]   ;;  %v8526_v32 = vld [vmem:[#allocation12 + $0x124] ss:$12 sps:$4 sm:$0xff]  }
0x1a9d   : > { %v4741_v5 = vmul.f32 0.5, %v4733_v34  ;;  %v4748_v61 = vmul.f32 %v4740_v47, %v10144_v14  ;;  %v8527_v47 = vld [vmem:[#allocation12 + $0x128] ss:$12 sps:$4 sm:$0xff]   ;;  %v8530_v34 = vld [vmem:[#allocation12 + $0x10c] ss:$12 sps:$4 sm:$0xff]  }
0x1a9e   : > { %v4743_v7 = vmul.f32 0.5, %v4735_v55  ;;  %v4750_v2 = vmul.f32 %v4742_v53, %v10146_v39  ;;  %v8534_v53 = vld [vmem:[#allocation12 + $0xf4] ss:$12 sps:$4 sm:$0xff]   ;;  %v8532_v55 = vld [vmem:[#allocation12 + $0xf0] ss:$12 sps:$4 sm:$0xff]  }
0x1a9f   : > { %v4749_v3 = vmul.f32 %v4741_v5, %v10154_v48  ;;  %v4752_v17 = vpack.c.bf16 %v4748_v61, %v4744_v8  ;;  %v8535_v56 = vld [vmem:[#allocation12 + $0xf8] ss:$12 sps:$4 sm:$0xff]   ;;  %v8538_v4 = vld [vmem:[#allocation12 + $0xdc] ss:$12 sps:$4 sm:$0xff]   ;;  %v8539_v61 = vld [vmem:[#allocation12 + $0xe0] ss:$12 sps:$4 sm:$0xff]  }
0x1aa0   : > { %v4751_v11 = vmul.f32 %v4743_v7, %v10156_v49  ;;  %v4754_v14 = vpack.c.bf16 %v4750_v2, %v4746_v12  ;;  %v8536_v5 = vld [vmem:[#allocation12 + $0xd8] ss:$12 sps:$4 sm:$0xff]   ;;  %v8540_v2 = vld [vmem:[#allocation12 + $0xc0] ss:$12 sps:$4 sm:$0xff]  }
0x1aa1   : > { %v4753_v13 = vpack.c.bf16 %v4749_v3, %v4745_v62  ;;  %v8542_v7 = vld [vmem:[#allocation12 + $0xc4] ss:$12 sps:$4 sm:$0xff]   ;;  %v8543_v62 = vld [vmem:[#allocation12 + $0xc8] ss:$12 sps:$4 sm:$0xff]  }
0x1aa2   : > { %v4755_v15 = vpack.c.bf16 %v4751_v11, %v4747_v10 }
0x1aa3   : > { %5044 = vmatprep.mubr.bf16.mxu0 %v4753_v13 }
0x1aa4   : > { %5085 = vmatprep.mubr.bf16.mxu1 %v4755_v15  ;;  %5045 = vmatmul.mubr.bf16.vlgmr.msra.gmra.mxu0 %v4752_v17 }
0x1aa5   : > { %5086 = vmatmul.mubr.bf16.vlgmr.msra.gmra.mxu1 %v4754_v14  ;;  %5352 = vmatprep.mubr.bf16.mxu0 %v9286_v1 }
0x1aa6   : > { %7888 = vmatprep.mubr.msk.bf16.mxu1 %vm9289_vm5, %v9288_v21  ;;  %7873 = vmatpush3.bf16.msra.mxu1 %v8515_v22  ;;  %v5103_v22 = vld [vmem:[#allocation18 + $0x1] ss:$2 sm:$0x7] }
0x1aa7   : > { %7874 = vmatprep.subr.bf16.mxu1 %v9288_v21 }
0x1aaa   : > { %7875 = vmatpush3.bf16.msra.mxu1 %v8519_v41  ;;  %v5184_v41 = vrot.slane %v5103_v22, %v9777_v60 }
0x1aab   : > { %7876 = vmatprep.subr.bf16.mxu1 %v9288_v21 }
0x1aae   : > { %7877 = vmatpush3.bf16.msra.mxu1 %v8523_v45 }
0x1aaf   : > { %7878 = vmatprep.subr.bf16.mxu1 %v9288_v21 }
0x1ab2   : > { %7879 = vmatpush3.bf16.msra.mxu1 %v8527_v47 }
0x1ab3   : > { %7880 = vmatprep.subr.bf16.mxu1 %v9288_v21 }
0x1ab6   : > { %7881 = vmatpush3.bf16.msra.mxu1 %v8531_v51  ;;  %v5188_v51 = vrot.slane %v5103_v22, %v9788_v6 }
0x1ab7   : > { %7882 = vmatprep.subr.bf16.mxu1 %v9288_v21 }
0x1aba   : > { %7883 = vmatpush3.bf16.msra.mxu1 %v8535_v56 }
0x1abb   : > { %7884 = vmatprep.subr.bf16.mxu1 %v9288_v21 }
0x1abe   : > { %7885 = vmatpush3.bf16.msra.mxu1 %v8539_v61 }
0x1abf   : > { %7886 = vmatprep.subr.bf16.mxu1 %v9288_v21 }
0x1ac2   : > { %7887 = vmatpush3.bf16.msra.mxu1 %v8543_v62 }
0x1b64   : > { %v7523_v54 = vpop.f32.mrf.mxu0 }
0x1b65   : > { %v7545_v31 = vpop.f32.mrf.mxu1 }
0x1b66   : > { %v7524_v33 = vpop.f32.mrf.mxu0 }
0x1b67   : > { %v7525_v39 = vadd.f32 %v7524_v33, %v7523_v54  ;;  %v7546_v48 = vpop.f32.mrf.mxu1 }
0x1b68   : > { %v7547_v49 = vadd.f32 %v7546_v48, %v7545_v31  ;;  %v7526_v18 = vpop.f32.mrf.mxu0 }
0x1b69   : > { %v7548_v19 = vpop.f32.mrf.mxu1 }
0x1b6a   : > { %v5088_v20 = vadd.f32 %v7547_v49, %v7525_v39  ;;  %v7527_v26 = vpop.f32.mrf.mxu0 }
0x1b6b   : > { %v7528_v24 = vadd.f32 %v7527_v26, %v7526_v18  ;;  %v7549_v29 = vpop.f32.mrf.mxu1  ;;  %v10210_v18 = vld [vmem:[%s10469_s12 + $0x8] sm:$0x3f] }
0x1b6c   : > { %v5094_v52 = vadd.f32 %v5088_v20, %v10104_v28  ;;  %v7550_v59 = vadd.f32 %v7549_v29, %v7548_v19  ;;  %v8514_v28 = vld [vmem:[#allocation12 + $0x16c] ss:$12 sps:$4 sm:$0xff]  }
0x1b6d   : > { %5320 = vmatprep.subr.bf16.mxu0 %v8514_v28 }
0x1b6e   : > { %v10188_v30 = vadd.f32 %v5099_v25, %v5094_v52  ;;  %v5091_v27 = vadd.f32 %v7550_v59, %v7528_v24  ;;  %5321 = vmatpush1.bf16.msra.mxu0 %v8512_v57  ;;  %v5140_v59 = vrot.slane %v10210_v18, %v9777_v60 }
0x1b70   : > { %v5095_v35 = vadd.f32 %v5091_v27, %v10110_v23  ;;  %5105 = vadd.xlane.f32.xlu0 %v10188_v30  ;;  %v5109_v36 = vmul.f32 %v10188_v30, %v10188_v30  ;;  %v8518_v23 = vld [vmem:[#allocation12 + $0x154] ss:$12 sps:$4 sm:$0xff]  }
0x1b71   : > { %5322 = vmatprep.subr.bf16.mxu0 %v8518_v23 }
0x1b72   : > { %v10194_v38 = vadd.f32 %v5099_v25, %v5095_v35  ;;  %5111 = vadd.xlane.f32.xlu1 %v5109_v36  ;;  %5323 = vmatpush1.bf16.msra.mxu0 %v8516_v40  ;;  %v5134_v25 = vrot.slane %v10210_v18, %v9769_v58 }
0x1b73   : > { %5324 = vmatprep.subr.bf16.mxu0 %v8522_v43 }
0x1b74   : > { %5107 = vadd.xlane.f32.xlu0 %v10194_v38  ;;  %v5110_v42 = vmul.f32 %v10194_v38, %v10194_v38 }
0x1b76   : > { %5325 = vmatpush1.bf16.msra.mxu0 %v8520_v44 }
0x1b77   : > { %5326 = vmatprep.subr.bf16.mxu0 %v8526_v32 }
0x1b78   : > { %5113 = vadd.xlane.f32.xlu0 %v5110_v42 }
0x1b7a   : > { %5327 = vmatpush1.bf16.msra.mxu0 %v8524_v46 }
0x1b7b   : > { %5328 = vmatprep.subr.bf16.mxu0 %v8530_v34 }
0x1b7e   : > { %5329 = vmatpush1.bf16.msra.mxu0 %v8528_v50  ;;  %v5180_v50 = vrot.slane %v5103_v22, %v9769_v58  ;;  %v8551_v22 = vld [vmem:[#allocation14 + $0x40] sm:$0xff]  }
0x1b7f   : > { %5330 = vmatprep.subr.bf16.mxu0 %v8534_v53 }
0x1b82   : > { %5331 = vmatpush1.bf16.msra.mxu0 %v8532_v55 }
0x1b83   : > { %5332 = vmatprep.subr.bf16.mxu0 %v8538_v4 }
0x1b86   : > { %5333 = vmatpush1.bf16.msra.mxu0 %v8536_v5 }
0x1b87   : > { %5334 = vmatprep.subr.bf16.mxu0 %v8542_v7 }
0x1b8a   : > { %5335 = vmatpush1.bf16.msra.mxu0 %v8540_v2 }
0x1b8b   : > { %7892 = vmatprep.subr.bf16.mxu0 %v9288_v21 }
0x1bf9   : > { %v5106_v3 = vpop.xlane.xlu0 %5105 }
0x1bfa   : > { %v5115_v8 = vmul.f32 0.0078125, %v5106_v3 }
0x1bfb   : > { %v5112_v10 = vpop.xlane.xlu1 %5111 }
0x1bfc   : > { %v5119_v11 = vmul.f32 %v5115_v8, %v5115_v8  ;;  %v5117_v12 = vmul.f32 0.0078125, %v5112_v10  ;;  %v5123_v19 = vsub.f32 %v10188_v30, %v5115_v8 }
0x1bfd   : > { %v5108_v13 = vpop.xlane.xlu0 %5107 }
0x1bfe   : > { %v5121_v15 = vsub.f32 %v5117_v12, %v5119_v11  ;;  %v5116_v17 = vmul.f32 0.0078125, %v5108_v13 }
0x1c00   : > { %v5125_v14 = vadd.f32 1e-05, %v5121_v15  ;;  %v5120_v31 = vmul.f32 %v5116_v17, %v5116_v17  ;;  %v5124_v26 = vsub.f32 %v10194_v38, %v5116_v17 }
0x1c01   : > { %v5114_v54 = vpop.xlane.xlu0 %5113 }
0x1c02   : > { %8710 = vrsqrt.f32 %v5125_v14  ;;  %v5118_v33 = vmul.f32 0.0078125, %v5114_v54 }
0x1c04   : > { %v5122_v39 = vsub.f32 %v5118_v33, %v5120_v31 }
0x1c06   : > { %v5126_v48 = vadd.f32 1e-05, %v5122_v39 }
0x1c08   : > { %8712 = vrsqrt.f32 %v5126_v48 }
0x1c0f   : > { %v8711_v49 = vpop.eup %8710 }
0x1c10   : > { %v5129_v20 = vmul.f32 %v8711_v49, %v5123_v19 }
0x1c12   : > { %v5135_v52 = vmul.f32 %v5134_v25, %v5129_v20 }
0x1c14   : > { %v5141_v35 = vadd.f32 %v5140_v59, %v5135_v52  ;;  %v8544_v52 = vld [vmem:[#allocation14 + $0x78] sm:$0xff]  }
0x1c15   : > { %v8713_v24 = vpop.eup %8712 }
0x1c16   : > { %v5130_v29 = vmul.f32 %v8713_v24, %v5124_v26 }
0x1c18   : > { %v5136_v27 = vmul.f32 %v5134_v25, %v5130_v29 }
0x1c1a   : > { %v5142_v36 = vadd.f32 %v5140_v59, %v5136_v27  ;;  %v8545_v27 = vld [vmem:[#allocation14 + $0x70] sm:$0xff]  }
0x1c1c   : > { %v5143_v42 = vpack.c.bf16 %v5142_v36, %v5141_v35  ;;  %v8546_v35 = vld [vmem:[#allocation14 + $0x68] sm:$0xff]   ;;  %v8547_v36 = vld [vmem:[#allocation14 + $0x60] sm:$0xff]  }
0x1c1e   : > { %5353 = vmatmul.mubr.bf16.vlgmr.msra.gmra.mxu0 %v5143_v42  ;;  %7889 = vmatmul.mubr.bf16.vlgmr.msra.gmra.mxu1 %v5143_v42  ;;  %v8548_v42 = vld [vmem:[#allocation14 + $0x58] sm:$0xff]  }
0x1c1f   : > { %7894 = vmatprep.mubr.msk.bf16.mxu0 %vm9289_vm5, %v9288_v21  ;;  %5917 = vmatprep.mubr.bf16.mxu1 %v9286_v1 }
0x1cde   : > { %v5354_v28 = vpop.f32.mrf.mxu0  ;;  %v5397_v57 = vpop.f32.mrf.mxu1 }
0x1cdf   : > { %v5355_v56 = vadd.f32 %v5354_v28, %v5180_v50  ;;  %v5398_v4 = vadd.f32 %v5397_v57, %v5188_v51  ;;  %v8549_v28 = vld [vmem:[#allocation14 + $0x50] sm:$0xff]   ;;  %v8550_v57 = vld [vmem:[#allocation14 + $0x48] sm:$0xff]  }
0x1ce0   : > { %v5356_v23 = vpop.f32.mrf.mxu0  ;;  %v7890_v40 = vpop.f32.mrf.mxu1 }
0x1ce1   : > { %v5357_v32 = vadd.f32 %v5356_v23, %v5184_v41 }
0x1ce2   : > { %v5358_v43 = vpop.f32.mrf.mxu0  ;;  %v5400_v44 = vpop.f32.mrf.mxu1 }
0x1ce3   : > { %v5359_v53 = vadd.f32 %v5358_v43, %v5180_v50  ;;  %v5401_v55 = vadd.f32 %v5400_v44, %v5188_v51 }
0x1ce4   : > { %v5360_v45 = vpop.f32.mrf.mxu0  ;;  %v7891_v46 = vpop.f32.mrf.mxu1 }
0x1ce5   : > { %v5361_v47 = vadd.f32 %v5360_v45, %v5184_v41  ;;  %v5404_v5 = vpack.c.bf16 %v5359_v53, %v5355_v56  ;;  %v5474_v61 = vpack.c.bf16 %v5401_v55, %v5398_v4  ;;  %v5630_v45 = vrot.slane %v10210_v18, %v9788_v6  ;;  %v8554_v56 = vld [vmem:[#allocation15 + $0x1e4] ss:$16 sps:$4 sm:$0xff]   ;;  %v8557_v4 = vld [vmem:[#allocation15 + $0x1ec] ss:$16 sps:$4 sm:$0xff]  }
0x1ce6   : > { %5885 = vmatprep.subr.bf16.mxu1 %v8554_v56  ;;  %v5668_v56 = vrot.slane %v10210_v18, %v9834_v0  ;;  %v8608_v0 = vld [vmem:[#allocation17 + $0x168] sm:$0xff]  }
0x1ce7   : > { %v5405_v34 = vpack.c.bf16 %v5361_v47, %v5357_v32 }
0x1ce9   : > { %7893 = vmatpush3.bf16.xpose.msra.mxu0 %v5405_v34 }
0x1cea   : > { %7898 = vmatprep.subr.bf16.mxu0 %v9288_v21 }
0x1cf0   : > { %7895 = vmatmul.mubr.bf16.vlgmr.msra.gmra.mxu0 %v5404_v5  ;;  %v8552_v5 = vld [vmem:[#allocation15 + $0x1e0] ss:$16 sps:$4 sm:$0xff]  }
0x1cf1   : > { %7899 = vmatpush3.bf16.msra.mxu0 %v5474_v61  ;;  %7900 = vmatprep.mubr.msk.bf16.mxu0 %vm9289_vm5, %v9288_v21  ;;  %v8555_v61 = vld [vmem:[#allocation15 + $0x1e8] ss:$16 sps:$4 sm:$0xff]  }
0x1cf2   : > { %7904 = vmatprep.subr.bf16.mxu0 %v9288_v21  ;;  %5886 = vmatpush1.bf16.msra.mxu1 %v8552_v5 }
0x1db0   : > { %v5440_v7 = vpop.f32.mrf.mxu0 }
0x1db1   : > { %v5447_v2 = vmul.f32 0.088388346, %v5440_v7  ;;  %v8563_v7 = vld [vmem:[#allocation15 + $0x1cc] ss:$16 sps:$4 sm:$0xff]  }
0x1db2   : > { %v7896_v62 = vpop.f32.mrf.mxu0 }
0x1db3   : > { %v5449_v3 = vadd.f32 %v5447_v2, %v10079_v16  ;;  %v8558_v2 = vld [vmem:[#allocation15 + $0x1c0] ss:$16 sps:$4 sm:$0xff]   ;;  %v8561_v62 = vld [vmem:[#allocation15 + $0x1c8] ss:$16 sps:$4 sm:$0xff]  }
0x1db4   : > { %v5443_v8 = vpop.f32.mrf.mxu0 }
0x1db5   : > { %v5448_v10 = vmul.f32 0.088388346, %v5443_v8  ;;  %v5451_v11 = vsel %vm4159_vm1, %v5449_v3, -inf  ;;  %v8569_v8 = vld [vmem:[#allocation15 + $0x1ac] ss:$16 sps:$4 sm:$0xff]  }
0x1db6   : > { %5452 = vmax.xlane.f32.xlu1 %v5451_v11  ;;  %v7897_v12 = vpop.f32.mrf.mxu0  ;;  %v8567_v11 = vld [vmem:[#allocation15 + $0x1a8] ss:$16 sps:$4 sm:$0xff]  }
0x1db7   : > { %v5450_v13 = vadd.f32 %v5448_v10, %v10083_v37  ;;  %v8564_v10 = vld [vmem:[#allocation15 + $0x1a0] ss:$16 sps:$4 sm:$0xff]  }
0x1db8   : > { %v8570_v12 = vld [vmem:[#allocation15 + $0x180] ss:$16 sps:$4 sm:$0xff]  }
0x1db9   : > { %v5454_v15 = vsel %vm4159_vm1, %v5450_v13, -inf }
0x1dba   : > { %5455 = vmax.xlane.f32.xlu0 %v5454_v15  ;;  %v8573_v15 = vld [vmem:[#allocation15 + $0x188] ss:$16 sps:$4 sm:$0xff]  }
0x1e3f   : > { %v5453_v17 = vpop.xlane.xlu1 %5452 }
0x1e40   : > { %v5457_v14 = vsub.f32 %v5449_v3, %v5453_v17  ;;  %v8566_v3 = vld [vmem:[#allocation15 + $0x1a4] ss:$16 sps:$4 sm:$0xff]   ;;  %v8575_v17 = vld [vmem:[#allocation15 + $0x18c] ss:$16 sps:$4 sm:$0xff]  }
0x1e42   : > { %v5459_v54 = vmul.f32 1.442695, %v5457_v14  ;;  %v8578_v14 = vld [vmem:[#allocation15 + $0x164] ss:$16 sps:$4 sm:$0xff]  }
0x1e43   : > { %v5456_v31 = vpop.xlane.xlu0 %5455 }
0x1e44   : > { %8714 = vpow2.f32 %v5459_v54  ;;  %v5458_v33 = vsub.f32 %v5450_v13, %v5456_v31  ;;  %v8572_v13 = vld [vmem:[#allocation15 + $0x184] ss:$16 sps:$4 sm:$0xff]   ;;  %v8581_v54 = vld [vmem:[#allocation15 + $0x16c] ss:$16 sps:$4 sm:$0xff]   ;;  %v8576_v31 = vld [vmem:[#allocation15 + $0x160] ss:$16 sps:$4 sm:$0xff]  }
0x1e46   : > { %v5461_v39 = vmul.f32 1.442695, %v5458_v33  ;;  %v8579_v33 = vld [vmem:[#allocation15 + $0x168] ss:$16 sps:$4 sm:$0xff]  }
0x1e48   : > { %8716 = vpow2.f32 %v5461_v39  ;;  %v8584_v39 = vld [vmem:[#allocation15 + $0x144] ss:$16 sps:$4 sm:$0xff]  }
0x1e51   : > { %v8715_v16 = vpop.eup %8714 }
0x1e52   : > { %v5463_v48 = vsel %vm4159_vm1, %v8715_v16, 0.0 }
0x1e53   : > { %5464 = vadd.xlane.f32.xlu1 %v5463_v48  ;;  %v8582_v48 = vld [vmem:[#allocation15 + $0x140] ss:$16 sps:$4 sm:$0xff]  }
0x1e55   : > { %v8717_v49 = vpop.eup %8716 }
0x1e56   : > { %v5466_v19 = vsel %vm4159_vm1, %v8717_v49, 0.0 }
0x1e57   : > { %5467 = vadd.xlane.f32.xlu0 %v5466_v19  ;;  %v8590_v19 = vld [vmem:[#allocation15 + $0x124] ss:$16 sps:$4 sm:$0xff]  }
0x1edc   : > { %v5465_v37 = vpop.xlane.xlu1 %5464 }
0x1edd   : > { %8718 = vrcp.f32 %v5465_v37  ;;  %v8593_v37 = vld [vmem:[#allocation15 + $0x12c] ss:$16 sps:$4 sm:$0xff]  }
0x1ee0   : > { %v5468_v20 = vpop.xlane.xlu0 %5467 }
0x1ee1   : > { %8720 = vrcp.f32 %v5468_v20  ;;  %v8588_v20 = vld [vmem:[#allocation15 + $0x120] ss:$16 sps:$4 sm:$0xff]  }
0x1eea   : > { %v8719_v25 = vpop.eup %8718 }
0x1eeb   : > { %v5471_v24 = vmul.f32 %v8719_v25, %v8715_v16  ;;  %v8587_v16 = vld [vmem:[#allocation15 + $0x14c] ss:$16 sps:$4 sm:$0xff]   ;;  %v8591_v25 = vld [vmem:[#allocation15 + $0x128] ss:$16 sps:$4 sm:$0xff]  }
0x1eee   : > { %v8721_v26 = vpop.eup %8720 }
0x1eef   : > { %v5472_v29 = vmul.f32 %v8721_v26, %v8717_v49  ;;  %v8585_v49 = vld [vmem:[#allocation15 + $0x148] ss:$16 sps:$4 sm:$0xff]   ;;  %v8596_v26 = vld [vmem:[#allocation15 + $0x104] ss:$16 sps:$4 sm:$0xff]  }
0x1ef1   : > { %v5473_v59 = vpack.c.bf16 %v5472_v29, %v5471_v24  ;;  %v8599_v24 = vld [vmem:[#allocation15 + $0x10c] ss:$16 sps:$4 sm:$0xff]   ;;  %v8594_v29 = vld [vmem:[#allocation15 + $0x100] ss:$16 sps:$4 sm:$0xff]  }
0x1ef3   : > { %7901 = vmatmul.mubr.msk.bf16.vlgmr.msra.gmra.mxu0 %vm4159_vm1, %v5473_v59 }
0x1ef4   : > { %7905 = vmatpush3.bf16.msra.mxu0 %v8544_v52  ;;  %7920 = vmatprep.mubr.msk.bf16.mxu0 %vm9289_vm5, %v9288_v21  ;;  %v8597_v52 = vld [vmem:[#allocation15 + $0x108] ss:$16 sps:$4 sm:$0xff]  }
0x1ef5   : > { %7906 = vmatprep.subr.bf16.mxu0 %v9288_v21 }
0x1ef8   : > { %7907 = vmatpush3.bf16.msra.mxu0 %v8545_v27 }
0x1ef9   : > { %7908 = vmatprep.subr.bf16.mxu0 %v9288_v21 }
0x1efc   : > { %7909 = vmatpush3.bf16.msra.mxu0 %v8546_v35 }
0x1efd   : > { %7910 = vmatprep.subr.bf16.mxu0 %v9288_v21 }
0x1f00   : > { %7911 = vmatpush3.bf16.msra.mxu0 %v8547_v36 }
0x1f01   : > { %7912 = vmatprep.subr.bf16.mxu0 %v9288_v21 }
0x1f04   : > { %7913 = vmatpush3.bf16.msra.mxu0 %v8548_v42 }
0x1f05   : > { %7914 = vmatprep.subr.bf16.mxu0 %v9288_v21 }
0x1f08   : > { %7915 = vmatpush3.bf16.msra.mxu0 %v8549_v28 }
0x1f09   : > { %7916 = vmatprep.subr.bf16.mxu0 %v9288_v21 }
0x1f0c   : > { %7917 = vmatpush3.bf16.msra.mxu0 %v8550_v57 }
0x1f0d   : > { %7918 = vmatprep.subr.bf16.mxu0 %v9288_v21 }
0x1f10   : > { %7919 = vmatpush3.bf16.msra.mxu0 %v8551_v22 }
0x1f11   : > { %5928 = vmatprep.subr.bf16.mxu0 %v8557_v4 }
0x1fb3   : > { %v5512_v23 = vpop.f32.mrf.mxu0 }
0x1fb5   : > { %v7902_v40 = vpop.f32.mrf.mxu0 }
0x1fb7   : > { %v5515_v41 = vpop.f32.mrf.mxu0 }
0x1fb8   : > { %v5519_v43 = vpack.c.bf16 %v5515_v41, %v5512_v23 }
0x1fb9   : > { %v7903_v44 = vpop.f32.mrf.mxu0 }
0x1fba   : > { %7921 = vmatmul.mubr.bf16.vlgmr.msra.gmra.mxu0 %v5519_v43 }
0x1fbb   : > { %5960 = vmatprep.mubr.bf16.mxu0 %v9286_v1  ;;  %5929 = vmatpush1.bf16.msra.mxu0 %v8555_v61 }
0x1fbc   : > { %5930 = vmatprep.subr.bf16.mxu0 %v8563_v7  ;;  %v8600_v7 = vld [vmem:[#allocation17 + $0x178] sm:$0xff]  }
0x1fbf   : > { %5931 = vmatpush1.bf16.msra.mxu0 %v8561_v62  ;;  %v8602_v62 = vld [vmem:[#allocation17 + $0x138] sm:$0xff]  }
0x1fc0   : > { %5932 = vmatprep.subr.bf16.mxu0 %v8569_v8  ;;  %v8604_v8 = vld [vmem:[#allocation17 + $0x170] sm:$0xff]  }
0x1fc3   : > { %5933 = vmatpush1.bf16.msra.mxu0 %v8567_v11  ;;  %v8606_v11 = vld [vmem:[#allocation17 + $0x130] sm:$0xff]  }
0x1fc4   : > { %5934 = vmatprep.subr.bf16.mxu0 %v8575_v17  ;;  %v8611_v17 = vld [vmem:[#allocation17 + $0x1a8] sm:$0xff]  }
0x1fc7   : > { %5935 = vmatpush1.bf16.msra.mxu0 %v8573_v15  ;;  %v8610_v15 = vld [vmem:[#allocation17 + $0x128] sm:$0xff]  }
0x1fc8   : > { %5936 = vmatprep.subr.bf16.mxu0 %v8581_v54  ;;  %v8613_v54 = vld [vmem:[#allocation17 + $0x1e0] sm:$0xff]  }
0x1fcb   : > { %5937 = vmatpush1.bf16.msra.mxu0 %v8579_v33  ;;  %v8615_v33 = vld [vmem:[#allocation17 + $0x1a0] sm:$0xff]  }
0x1fcc   : > { %5938 = vmatprep.subr.bf16.mxu0 %v8587_v16  ;;  %v8617_v16 = vld [vmem:[#allocation17 + $0x1d8] sm:$0xff]  }
0x1fcf   : > { %5939 = vmatpush1.bf16.msra.mxu0 %v8585_v49  ;;  %v8619_v49 = vld [vmem:[#allocation17 + $0x198] sm:$0xff]  }
0x1fd0   : > { %5940 = vmatprep.subr.bf16.mxu0 %v8593_v37  ;;  %v8621_v37 = vld [vmem:[#allocation17 + $0x1d0] sm:$0xff]  }
0x1fd3   : > { %5941 = vmatpush1.bf16.msra.mxu0 %v8591_v25  ;;  %v8623_v25 = vld [vmem:[#allocation17 + $0x190] sm:$0xff]  }
0x1fd4   : > { %5942 = vmatprep.subr.bf16.mxu0 %v8599_v24  ;;  %v8625_v24 = vld [vmem:[#allocation17 + $0x1c8] sm:$0xff]  }
0x1fd7   : > { %5943 = vmatpush1.bf16.msra.mxu0 %v8597_v52  ;;  %v8627_v52 = vld [vmem:[#allocation17 + $0x188] sm:$0xff]  }
0x207a   : > { %v5618_v46 = vpop.f32.mrf.mxu0 }
0x207b   : > { %v5625_v32 = vadd.f32 %v5618_v46, %v10188_v30 }
0x207c   : > { %v7922_v47 = vpop.f32.mrf.mxu0 }
0x207d   : > { %v10248_v34 = vadd.f32 %v5630_v45, %v5625_v32 }
0x207e   : > { %v5621_v50 = vpop.f32.mrf.mxu0 }
0x207f   : > { %v5626_v51 = vadd.f32 %v5621_v50, %v10194_v38  ;;  %5633 = vadd.xlane.f32.xlu1 %v10248_v34  ;;  %v5637_v1 = vmul.f32 %v10248_v34, %v10248_v34  ;;  %v8560_v38 = vld [vmem:[#allocation15 + $0x1c4] ss:$16 sps:$4 sm:$0xff]   ;;  %v5662_v50 = vrot.slane %v10210_v18, %v9831_v63 }
0x2080   : > { %v7923_v53 = vpop.f32.mrf.mxu0  ;;  %5887 = vmatprep.subr.bf16.mxu1 %v8560_v38 }
0x2081   : > { %v10252_v55 = vadd.f32 %v5630_v45, %v5626_v51  ;;  %5888 = vmatpush1.bf16.msra.mxu1 %v8558_v2  ;;  %v8601_v2 = vld [vmem:[#allocation17 + $0x1f8] sm:$0xff]  }
0x2082   : > { %5889 = vmatprep.subr.bf16.mxu1 %v8566_v3  ;;  %v8603_v3 = vld [vmem:[#allocation17 + $0x1b8] sm:$0xff]   ;;  %7595 = vmatprep.subr.bf16.mxu0 %v8601_v2 }
0x2083   : > { %5639 = vadd.xlane.f32.xlu1 %v5637_v1  ;;  %5635 = vadd.xlane.f32.xlu0 %v10252_v55  ;;  %v5638_v30 = vmul.f32 %v10252_v55, %v10252_v55 }
0x2085   : > { %5890 = vmatpush1.bf16.msra.mxu1 %v8564_v10  ;;  %v8605_v10 = vld [vmem:[#allocation17 + $0x1f0] sm:$0xff]  }
0x2086   : > { %5891 = vmatprep.subr.bf16.mxu1 %v8572_v13  ;;  %v8609_v13 = vld [vmem:[#allocation17 + $0x1e8] sm:$0xff]  }
0x2087   : > { %5641 = vadd.xlane.f32.xlu0 %v5638_v30 }
0x2089   : > { %5892 = vmatpush1.bf16.msra.mxu1 %v8570_v12  ;;  %v8607_v12 = vld [vmem:[#allocation17 + $0x1b0] sm:$0xff]  }
0x208a   : > { %5893 = vmatprep.subr.bf16.mxu1 %v8578_v14  ;;  %v8612_v14 = vld [vmem:[#allocation17 + $0x160] sm:$0xff]  }
0x208d   : > { %5894 = vmatpush1.bf16.msra.mxu1 %v8576_v31  ;;  %v8614_v31 = vld [vmem:[#allocation17 + $0x120] sm:$0xff]  }
0x208e   : > { %5895 = vmatprep.subr.bf16.mxu1 %v8584_v39  ;;  %v8616_v39 = vld [vmem:[#allocation17 + $0x158] sm:$0xff]  }
0x2091   : > { %5896 = vmatpush1.bf16.msra.mxu1 %v8582_v48  ;;  %v8618_v48 = vld [vmem:[#allocation17 + $0x118] sm:$0xff]  }
0x2092   : > { %5897 = vmatprep.subr.bf16.mxu1 %v8590_v19  ;;  %v8620_v19 = vld [vmem:[#allocation17 + $0x150] sm:$0xff]  }
0x2095   : > { %5898 = vmatpush1.bf16.msra.mxu1 %v8588_v20  ;;  %v8622_v20 = vld [vmem:[#allocation17 + $0x110] sm:$0xff]  }
0x2096   : > { %5899 = vmatprep.subr.bf16.mxu1 %v8596_v26  ;;  %v8624_v26 = vld [vmem:[#allocation17 + $0x148] sm:$0xff]  }
0x2099   : > { %5900 = vmatpush1.bf16.msra.mxu1 %v8594_v29  ;;  %v8626_v29 = vld [vmem:[#allocation17 + $0x108] sm:$0xff]  }
0x209a   : > { %7573 = vmatprep.subr.bf16.mxu1 %v8600_v7 }
0x2108   : > { %v5634_v59 = vpop.xlane.xlu1 %5633 }
0x2109   : > { %v5643_v27 = vmul.f32 0.0078125, %v5634_v59  ;;  %v8628_v59 = vld [vmem:[#allocation17 + $0x140] sm:$0xff]  }
0x210b   : > { %v5647_v42 = vmul.f32 %v5643_v27, %v5643_v27  ;;  %v5651_v46 = vsub.f32 %v10248_v34, %v5643_v27  ;;  %v8629_v27 = vld [vmem:[#allocation17 + $0x1c0] sm:$0xff]  }
0x210c   : > { %v5640_v35 = vpop.xlane.xlu1 %5639  ;;  %v5636_v36 = vpop.xlane.xlu0 %5635 }
0x210d   : > { %v5645_v28 = vmul.f32 0.0078125, %v5640_v35  ;;  %v5644_v57 = vmul.f32 0.0078125, %v5636_v36  ;;  %v8630_v35 = vld [vmem:[#allocation17 + $0x100] sm:$0xff]  }
0x210e   : > { %v8631_v36 = vld [vmem:[#allocation17 + $0x180] sm:$0xff]  }
0x210f   : > { %v5649_v22 = vsub.f32 %v5645_v28, %v5647_v42  ;;  %v5648_v41 = vmul.f32 %v5644_v57, %v5644_v57  ;;  %v5652_v51 = vsub.f32 %v10252_v55, %v5644_v57  ;;  %v5104_v42 = vld [vmem:[#allocation20 + $0x1] ss:$2 sm:$0xf] }
0x2110   : > { %v5642_v23 = vpop.xlane.xlu0 %5641  ;;  %v5708_v28 = vrot.slane %v5104_v42, %v9769_v58  ;;  %v5716_v57 = vrot.slane %v5104_v42, %v9788_v6 }
0x2111   : > { %v5653_v40 = vadd.f32 1e-05, %v5649_v22  ;;  %v5646_v43 = vmul.f32 0.0078125, %v5642_v23  ;;  %v5712_v22 = vrot.slane %v5104_v42, %v9777_v60  ;;  %v5720_v23 = vrot.slane %v5104_v42, %v9831_v63 }
0x2113   : > { %8722 = vrsqrt.f32 %v5653_v40  ;;  %v5650_v44 = vsub.f32 %v5646_v43, %v5648_v41 }
0x2115   : > { %v5654_v45 = vadd.f32 1e-05, %v5650_v44 }
0x2117   : > { %8724 = vrsqrt.f32 %v5654_v45 }
0x2120   : > { %v8723_v32 = vpop.eup %8722 }
0x2121   : > { %v5657_v47 = vmul.f32 %v8723_v32, %v5651_v46 }
0x2123   : > { %v5663_v30 = vmul.f32 %v5662_v50, %v5657_v47 }
0x2124   : > { %v8725_v53 = vpop.eup %8724 }
0x2125   : > { %v5658_v1 = vmul.f32 %v8725_v53, %v5652_v51  ;;  %v5669_v5 = vadd.f32 %v5668_v56, %v5663_v30 }
0x2127   : > { %v5664_v4 = vmul.f32 %v5662_v50, %v5658_v1 }
0x2129   : > { %v5670_v61 = vadd.f32 %v5668_v56, %v5664_v4 }
0x212b   : > { %v5671_v38 = vpack.c.bf16 %v5670_v61, %v5669_v5 }
0x212d   : > { %5918 = vmatmul.mubr.bf16.vlgmr.msra.gmra.mxu1 %v5671_v38  ;;  %5961 = vmatmul.mubr.bf16.vlgmr.msra.gmra.mxu0 %v5671_v38 }
0x212e   : > { %7574 = vmatpush3.bf16.msra.mxu1 %v8602_v62  ;;  %7596 = vmatpush3.bf16.msra.mxu0 %v8603_v3 }
0x212f   : > { %7575 = vmatprep.subr.bf16.mxu1 %v8604_v8  ;;  %7597 = vmatprep.subr.bf16.mxu0 %v8605_v10 }
0x2132   : > { %7576 = vmatpush3.bf16.msra.mxu1 %v8606_v11  ;;  %7598 = vmatpush3.bf16.msra.mxu0 %v8607_v12 }
0x2133   : > { %7577 = vmatprep.subr.bf16.mxu1 %v8608_v0  ;;  %7599 = vmatprep.subr.bf16.mxu0 %v8609_v13 }
0x2136   : > { %7578 = vmatpush3.bf16.msra.mxu1 %v8610_v15  ;;  %7600 = vmatpush3.bf16.msra.mxu0 %v8611_v17 }
0x2137   : > { %7579 = vmatprep.subr.bf16.mxu1 %v8612_v14  ;;  %7601 = vmatprep.subr.bf16.mxu0 %v8613_v54 }
0x213a   : > { %7580 = vmatpush3.bf16.msra.mxu1 %v8614_v31  ;;  %7602 = vmatpush3.bf16.msra.mxu0 %v8615_v33 }
0x213b   : > { %7581 = vmatprep.subr.bf16.mxu1 %v8616_v39  ;;  %7603 = vmatprep.subr.bf16.mxu0 %v8617_v16 }
0x213e   : > { %7582 = vmatpush3.bf16.msra.mxu1 %v8618_v48  ;;  %7604 = vmatpush3.bf16.msra.mxu0 %v8619_v49 }
0x213f   : > { %7583 = vmatprep.subr.bf16.mxu1 %v8620_v19  ;;  %7605 = vmatprep.subr.bf16.mxu0 %v8621_v37 }
0x2142   : > { %7584 = vmatpush3.bf16.msra.mxu1 %v8622_v20  ;;  %7606 = vmatpush3.bf16.msra.mxu0 %v8623_v25 }
0x2143   : > { %7585 = vmatprep.subr.bf16.mxu1 %v8624_v26  ;;  %7607 = vmatprep.subr.bf16.mxu0 %v8625_v24 }
0x2146   : > { %7586 = vmatpush3.bf16.msra.mxu1 %v8626_v29  ;;  %7608 = vmatpush3.bf16.msra.mxu0 %v8627_v52 }
0x2147   : > { %7587 = vmatprep.subr.bf16.mxu1 %v8628_v59  ;;  %7609 = vmatprep.subr.bf16.mxu0 %v8629_v27 }
0x214a   : > { %7588 = vmatpush3.bf16.msra.mxu1 %v8630_v35  ;;  %7610 = vmatpush3.bf16.msra.mxu0 %v8631_v36 }
0x214b   : > { %7924 = vmatprep.subr.bf16.mxu1 %v9288_v21 }
0x21ed   : > { %v5919_v40 = vpop.f32.mrf.mxu1  ;;  %v5962_v41 = vpop.f32.mrf.mxu0 }
0x21ee   : > { %v10270_v43 = vadd.f32 %v5919_v40, %v5708_v28  ;;  %v10272_v44 = vadd.f32 %v5962_v41, %v5716_v57 }
0x21ef   : > { %v5921_v45 = vpop.f32.mrf.mxu1  ;;  %v5964_v46 = vpop.f32.mrf.mxu0 }
0x21f0   : > { %v5971_v32 = vmul.f32 %v10270_v43, %v10270_v43  ;;  %v5973_v58 = vmul.f32 %v10272_v44, %v10272_v44  ;;  %v10278_v47 = vadd.f32 %v5921_v45, %v5712_v22  ;;  %v10280_v6 = vadd.f32 %v5964_v46, %v5720_v23 }
0x21f1   : > { %v5923_v60 = vpop.f32.mrf.mxu1  ;;  %v5966_v63 = vpop.f32.mrf.mxu0 }
0x21f2   : > { %v5979_v50 = vmul.f32 %v5971_v32, %v10270_v43  ;;  %v5981_v51 = vmul.f32 %v5973_v58, %v10272_v44  ;;  %v5972_v53 = vmul.f32 %v10278_v47, %v10278_v47  ;;  %v5974_v1 = vmul.f32 %v10280_v6, %v10280_v6 }
0x21f3   : > { %v10288_v30 = vadd.f32 %v5923_v60, %v5708_v28  ;;  %v10290_v56 = vadd.f32 %v5966_v63, %v5716_v57  ;;  %v5925_v4 = vpop.f32.mrf.mxu1  ;;  %v5968_v5 = vpop.f32.mrf.mxu0 }
0x21f4   : > { %v5987_v61 = vmul.f32 0.044715, %v5979_v50  ;;  %v5989_v38 = vmul.f32 0.044715, %v5981_v51  ;;  %v5980_v7 = vmul.f32 %v5972_v53, %v10278_v47  ;;  %v5982_v2 = vmul.f32 %v5974_v1, %v10280_v6 }
0x21f5   : > { %v5975_v62 = vmul.f32 %v10288_v30, %v10288_v30  ;;  %v5977_v3 = vmul.f32 %v10290_v56, %v10290_v56  ;;  %v10298_v8 = vadd.f32 %v5925_v4, %v5712_v22  ;;  %v10300_v10 = vadd.f32 %v5968_v5, %v5720_v23 }
0x21f6   : > { %v5995_v11 = vadd.f32 %v5987_v61, %v10270_v43  ;;  %v5997_v12 = vadd.f32 %v5989_v38, %v10272_v44  ;;  %v5988_v0 = vmul.f32 0.044715, %v5980_v7  ;;  %v5990_v13 = vmul.f32 0.044715, %v5982_v2 }
0x21f7   : > { %v5983_v15 = vmul.f32 %v5975_v62, %v10288_v30  ;;  %v5985_v17 = vmul.f32 %v5977_v3, %v10290_v56  ;;  %v5976_v14 = vmul.f32 %v10298_v8, %v10298_v8  ;;  %v5978_v54 = vmul.f32 %v10300_v10, %v10300_v10 }
0x21f8   : > { %v6003_v31 = vmul.f32 0.7978846, %v5995_v11  ;;  %v6005_v33 = vmul.f32 0.7978846, %v5997_v12  ;;  %v5996_v39 = vadd.f32 %v5988_v0, %v10278_v47  ;;  %v5998_v16 = vadd.f32 %v5990_v13, %v10280_v6 }
0x21f9   : > { %v5991_v48 = vmul.f32 0.044715, %v5983_v15  ;;  %v5993_v49 = vmul.f32 0.044715, %v5985_v17  ;;  %v5984_v19 = vmul.f32 %v5976_v14, %v10298_v8  ;;  %v5986_v37 = vmul.f32 %v5978_v54, %v10300_v10 }
0x21fa   : > { %8726 = vtanh.f32 %v6003_v31  ;;  %v6004_v20 = vmul.f32 0.7978846, %v5996_v39  ;;  %v6006_v25 = vmul.f32 0.7978846, %v5998_v16  ;;  %v8632_v39 = vld [vmem:[#allocation11 + $0x38] sm:$0xff]  }
0x21fb   : > { %8728 = vtanh.f32 %v6005_v33  ;;  %v5999_v26 = vadd.f32 %v5991_v48, %v10288_v30  ;;  %v6001_v24 = vadd.f32 %v5993_v49, %v10290_v56  ;;  %v5992_v29 = vmul.f32 0.044715, %v5984_v19 }
0x21fc   : > { %8730 = vtanh.f32 %v6004_v20  ;;  %v5994_v52 = vmul.f32 0.044715, %v5986_v37 }
0x21fd   : > { %8732 = vtanh.f32 %v6006_v25  ;;  %v6007_v59 = vmul.f32 0.7978846, %v5999_v26  ;;  %v6009_v27 = vmul.f32 0.7978846, %v6001_v24  ;;  %v6000_v35 = vadd.f32 %v5992_v29, %v10298_v8 }
0x21fe   : > { %v6002_v36 = vadd.f32 %v5994_v52, %v10300_v10 }
0x21ff   : > { %8734 = vtanh.f32 %v6007_v59  ;;  %v6008_v42 = vmul.f32 0.7978846, %v6000_v35  ;;  %v6390_v59 = vrot.slane %v10210_v18, %v9851_v9 }
0x2200   : > { %8736 = vtanh.f32 %v6009_v27  ;;  %v6010_v28 = vmul.f32 0.7978846, %v6002_v36 }
0x2201   : > { %8738 = vtanh.f32 %v6008_v42 }
0x2202   : > { %8740 = vtanh.f32 %v6010_v28 }
0x2207   : > { %v8727_v57 = vpop.eup %8726 }
0x2208   : > { %v8729_v22 = vpop.eup %8728  ;;  %v6019_v46 = vadd.f32 1.0, %v8727_v57 }
0x2209   : > { %v8731_v23 = vpop.eup %8730  ;;  %v6021_v60 = vadd.f32 1.0, %v8729_v22 }
0x220a   : > { %v8733_v40 = vpop.eup %8732  ;;  %v6020_v41 = vadd.f32 1.0, %v8731_v23  ;;  %v6027_v61 = vmul.f32 0.5, %v6019_v46 }
0x220b   : > { %v6022_v32 = vadd.f32 1.0, %v8733_v40  ;;  %v6029_v62 = vmul.f32 0.5, %v6021_v60 }
0x220c   : > { %v8735_v45 = vpop.eup %8734  ;;  %v6028_v5 = vmul.f32 0.5, %v6020_v41  ;;  %v6035_v17 = vmul.f32 %v6027_v61, %v10270_v43  ;;  %v8634_v43 = vld [vmem:[#allocation11 + $0x28] sm:$0xff]  }
0x220d   : > { %v8737_v58 = vpop.eup %8736  ;;  %v6023_v63 = vadd.f32 1.0, %v8735_v45  ;;  %v6030_v2 = vmul.f32 0.5, %v6022_v32  ;;  %v6037_v31 = vmul.f32 %v6029_v62, %v10272_v44  ;;  %v8635_v44 = vld [vmem:[#allocation11 + $0x20] sm:$0xff]  }
0x220e   : > { %v8739_v50 = vpop.eup %8738  ;;  %v6025_v51 = vadd.f32 1.0, %v8737_v58  ;;  %v6036_v13 = vmul.f32 %v6028_v5, %v10278_v47  ;;  %v8633_v47 = vld [vmem:[#allocation11 + $0x30] sm:$0xff]  }
0x220f   : > { %v8741_v53 = vpop.eup %8740  ;;  %v6031_v1 = vmul.f32 0.5, %v6023_v63  ;;  %v6024_v4 = vadd.f32 1.0, %v8739_v50  ;;  %v6038_v14 = vmul.f32 %v6030_v2, %v10280_v6  ;;  %v8636_v6 = vld [vmem:[#allocation11 + $0x18] sm:$0xff]  }
0x2210   : > { %v6033_v38 = vmul.f32 0.5, %v6025_v51  ;;  %v6026_v7 = vadd.f32 1.0, %v8741_v53 }
0x2211   : > { %v6032_v3 = vmul.f32 0.5, %v6024_v4  ;;  %v6039_v11 = vmul.f32 %v6031_v1, %v10288_v30 }
0x2212   : > { %v6034_v12 = vmul.f32 0.5, %v6026_v7  ;;  %v6041_v0 = vmul.f32 %v6033_v38, %v10290_v56  ;;  %v8637_v56 = vld [vmem:[#allocation11 + $0x10] sm:$0xff]  }
0x2213   : > { %v6040_v15 = vmul.f32 %v6032_v3, %v10298_v8  ;;  %v6043_v48 = vpack.c.bf16 %v6039_v11, %v6035_v17  ;;  %v8638_v8 = vld [vmem:[#allocation11 + $0x8] sm:$0xff]  }
0x2214   : > { %v6042_v54 = vmul.f32 %v6034_v12, %v10300_v10  ;;  %v6045_v30 = vpack.c.bf16 %v6041_v0, %v6037_v31  ;;  %v8639_v10 = vld [vmem:[#allocation11] sm:$0xff]  }
0x2215   : > { %v6044_v33 = vpack.c.bf16 %v6040_v15, %v6036_v13 }
0x2216   : > { %v6046_v16 = vpack.c.bf16 %v6042_v54, %v6038_v14 }
0x2217   : > { %6335 = vmatprep.mubr.bf16.mxu1 %v6044_v33 }
0x2218   : > { %6376 = vmatprep.mubr.bf16.mxu0 %v6046_v16  ;;  %6336 = vmatmul.mubr.bf16.vlgmr.msra.gmra.mxu1 %v6043_v48 }
0x2219   : > { %6377 = vmatmul.mubr.bf16.vlgmr.msra.gmra.mxu0 %v6045_v30  ;;  %7925 = vmatpush3.bf16.msra.mxu1 %v8632_v39 }
0x221a   : > { %7926 = vmatprep.subr.bf16.mxu1 %v9288_v21  ;;  %7940 = vmatprep.mubr.msk.bf16.mxu1 %vm9289_vm5, %v9288_v21 }
0x221d   : > { %7927 = vmatpush3.bf16.msra.mxu1 %v8633_v47 }
0x221e   : > { %7928 = vmatprep.subr.bf16.mxu1 %v9288_v21 }
0x2221   : > { %7929 = vmatpush3.bf16.msra.mxu1 %v8634_v43 }
0x2222   : > { %7930 = vmatprep.subr.bf16.mxu1 %v9288_v21 }
0x2225   : > { %7931 = vmatpush3.bf16.msra.mxu1 %v8635_v44 }
0x2226   : > { %7932 = vmatprep.subr.bf16.mxu1 %v9288_v21 }
0x2229   : > { %7933 = vmatpush3.bf16.msra.mxu1 %v8636_v6 }
0x222a   : > { %7934 = vmatprep.subr.bf16.mxu1 %v9288_v21 }
0x222d   : > { %7935 = vmatpush3.bf16.msra.mxu1 %v8637_v56 }
0x222e   : > { %7936 = vmatprep.subr.bf16.mxu1 %v9288_v21 }
0x2231   : > { %7937 = vmatpush3.bf16.msra.mxu1 %v8638_v8 }
0x2232   : > { %7938 = vmatprep.subr.bf16.mxu1 %v9288_v21 }
0x2235   : > { %7939 = vmatpush3.bf16.msra.mxu1 %v8639_v10 }
0x22d8   : > { %v7589_v49 = vpop.f32.mrf.mxu1 }
0x22d9   : > { %v7611_v19 = vpop.f32.mrf.mxu0 }
0x22da   : > { %v7590_v37 = vpop.f32.mrf.mxu1 }
0x22db   : > { %v7591_v20 = vadd.f32 %v7590_v37, %v7589_v49  ;;  %v7612_v25 = vpop.f32.mrf.mxu0 }
0x22dc   : > { %v7613_v26 = vadd.f32 %v7612_v25, %v7611_v19  ;;  %v7592_v24 = vpop.f32.mrf.mxu1 }
0x22dd   : > { %v7614_v29 = vpop.f32.mrf.mxu0 }
0x22de   : > { %v6379_v52 = vadd.f32 %v7613_v26, %v7591_v20  ;;  %v7593_v27 = vpop.f32.mrf.mxu1 }
0x22df   : > { %v7594_v35 = vadd.f32 %v7593_v27, %v7592_v24  ;;  %v7615_v21 = vpop.f32.mrf.mxu0 }
0x22e0   : > { %v6385_v36 = vadd.f32 %v6379_v52, %v10248_v34  ;;  %v7616_v42 = vadd.f32 %v7615_v21, %v7614_v29 }
0x22e2   : > { %v6391_v28 = vadd.f32 %v6390_v59, %v6385_v36  ;;  %v6382_v57 = vadd.f32 %v7616_v42, %v7594_v35 }
0x22e4   : > { %v6386_v22 = vadd.f32 %v6382_v57, %v10252_v55  ;;  %6499 = vst [vmem:[%s974_s9] sm:$0xff] %v6391_v28 }
0x22e6   : > { %v6392_v9 = vadd.f32 %v6390_v59, %v6386_v22 }
0x22e8   : > { %v6393_v18 = vpack.c.bf16 %v6392_v9, %v6391_v28  ;;  %6500 = vst [vmem:[%s974_s9 + $0x8] sm:$0xff] %v6392_v9 }
0x22ea   : > { %7941 = vmatmul.mubr.bf16.vlgmr.msra.gmra.mxu1 %v6393_v18 }
0x22eb   : > { %9123 = shalt.err (!%p9120_p0)
}
0x22ec   : > { %s9124_s8 = scalar_lea.hbm %s10354_s30, 256  ;;  %s9128_s9 = scalar_lea.hbm %s10564_s22, 512 }
0x22ed   : > { %p9125_p5 = scmp.ne.s32.totalorder %s10354_s30, %s9124_s8  ;;  %p9129_p2 = scmp.lt.s32.totalorder %s10354_s30, %s10564_s22 }
0x22ee   : > { %p9130_p7 = scmp.lt.s32.totalorder %s9128_s9, %s9124_s8 }
0x22ef   : > { %p9126_p1 = pnand %p9125_p5, %p10565_p8 }
0x22f0   : > { %p9131_p6 = por %p9130_p7, %p9129_p2 }
0x22f1   : > { %p9127_p13 = pneg %p9126_p1 }
0x22f3   : > { %p9132_p3 = pnand %p9131_p6, %p9127_p13 }
0x22f5   : > { %9135 = shalt.err (!%p9132_p3)
}
0x22f6   : > { %s10498_s0 = smov 128   ;;  %s9293_s29 = smov 8  }
0x22f7   : > { %7998 = dma.vmem_to_hbm [thread:$0]  (%p10565_p8), %s10346_s10, 256, %s10354_s30, %s10358_s27, %s10498_s0, %s10498_s0, %s9293_s29  }
0x22f8   : > { %s7304_s1 = sshll.u32 %s9440_s2, 4  ;;  %s10566_s13 = sld [smem:[#allocation60_spill]] }
0x22f9   : > { %s9136_s9 = scalar_lea.vmem %s6559_s14, 16  ;;  %s9294_s3 = smov [#allocation29]  }
0x22fa   : > { %p9137_p9 = scmp.ne.s32.totalorder %s6559_s14, %s9136_s9  ;;  %s9140_s26 = sshll.u32 %s9294_s3, 4  ;;  %s9141_s26 = int_to_ptr.vmem [resolvable:$false] %s9140_s26 }
0x22fb   : > { %s9142_s7 = scalar_lea.vmem %s9141_s26, 32  ;;  %p9143_p12 = scmp.lt.s32.totalorder %s6559_s14, %s9141_s26 }
0x22fc   : > { %p9138_p10 = pnand %p9137_p9, %p10565_p8  ;;  %p9144_p4 = scmp.lt.s32.totalorder %s9142_s7, %s9136_s9 }
0x22fe   : > { %s6556_s15 = scalar_lea.hbm %s10566_s13, %s7304_s1  ;;  %p9139_p11 = pneg %p9138_p10 }
0x22ff   : > { %p9145_p0 = por %p9144_p4, %p9143_p12 }
0x2301   : > { %p9146_p5 = pnand %p9145_p0, %p9139_p11 }
0x2303   : > { %9149 = shalt.err (!%p9146_p5)
}
0x2304   : > { %s9150_s10 = scalar_lea.hbm %s6556_s15, 16  ;;  %s9154_s6 = scalar_lea.hbm %s10566_s13, 32 }
0x2305   : > { %p9151_p1 = scmp.ne.s32.totalorder %s6556_s15, %s9150_s10  ;;  %p9155_p7 = scmp.lt.s32.totalorder %s6556_s15, %s10566_s13 }
0x2306   : > { %p9156_p6 = scmp.lt.s32.totalorder %s9154_s6, %s9150_s10 }
0x2307   : > { %p9152_p13 = pnand %p9151_p1, %p10565_p8 }
0x2308   : > { %p9157_p3 = por %p9156_p6, %p9155_p7 }
0x2309   : > { %p9153_p2 = pneg %p9152_p13 }
0x230b   : > { %p9158_p9 = pnand %p9157_p3, %p9153_p2 }
0x230d   : > { %9161 = shalt.err (!%p9158_p9)
}
0x230e   : > { %7999 = dma.vmem_to_hbm [thread:$0]  (%p10565_p8), %s6559_s14, 16, %s6556_s15, %s10358_s27  }
0x230f   : > { %s967_s7 = scalar_lea.vmem [#allocation26], %s6879_s17  ;;  %s10567_s0 = sshll.u32 %s9440_s2, 8 }
0x2310   : > { %s6526_s9 = sshll.u32 %s967_s7, 4  ;;  %s10568_s10 = sld [smem:[#allocation58_spill]]  ;;  %s10404_s9 = int_to_ptr.vmem [resolvable:$true] %s6526_s9 }
0x2311   : > { %s6504_s14 = scalar_lea.sflag [#allocation5], %s9686_s4  ;;  %s9162_s17 = scalar_lea.vmem %s10404_s9, 256 }
0x2312   : > { %p9163_p10 = scmp.ne.s32.totalorder %s10404_s9, %s9162_s17  ;;  %s9295_s27 = smov [#allocation26]  }
0x2313   : > { %s9166_s15 = sshll.u32 %s9295_s27, 4  ;;  %s9167_s15 = int_to_ptr.vmem [resolvable:$false] %s9166_s15 }
0x2314   : > { %p9164_p11 = pnand %p9163_p10, %p10565_p8  ;;  %s9168_s1 = scalar_lea.vmem %s9167_s15, 512 }
0x2315   : > { %p9169_p4 = scmp.lt.s32.totalorder %s10404_s9, %s9167_s15  ;;  %p9170_p0 = scmp.lt.s32.totalorder %s9168_s1, %s9162_s17 }
0x2316   : > { %s10411_s30 = scalar_lea.hbm %s10568_s10, %s10567_s0  ;;  %p9165_p12 = pneg %p9164_p11 }
0x2317   : > { %p9171_p5 = por %p9170_p0, %p9169_p4 }
0x2319   : > { %p9172_p1 = pnand %p9171_p5, %p9165_p12 }
0x23aa   : > { %v6492_v34 = vpop.f32.mrf.mxu1 }
0x23ab   : > { %6501 = vst [vmem:[%s967_s7] sm:$0xff] %v6492_v34 }
0x23ac   : > { %v7942_v55 = vpop.f32.mrf.mxu1 }
0x23ae   : > { %v6495_v23 = vpop.f32.mrf.mxu1 }
0x23af   : > { %6502 = vst [vmem:[%s967_s7 + $0x8] sm:$0xff] %v6495_v23 }
0x23b0   : > { %v7943_v40 = vpop.f32.mrf.mxu1 }
0x23b1   : > { %9175 = shalt.err (!%p9172_p1)
}
0x23b2   : > { %s9176_s2 = scalar_lea.hbm %s10411_s30, 256  ;;  %s9180_s8 = scalar_lea.hbm %s10568_s10, 512 }
0x23b3   : > { %p9177_p13 = scmp.ne.s32.totalorder %s10411_s30, %s9176_s2  ;;  %p9181_p6 = scmp.lt.s32.totalorder %s10411_s30, %s10568_s10 }
0x23b4   : > { %p9182_p3 = scmp.lt.s32.totalorder %s9180_s8, %s9176_s2 }
0x23b5   : > { %p9178_p2 = pnand %p9177_p13, %p10565_p8 }
0x23b6   : > { %p9183_p9 = por %p9182_p3, %p9181_p6 }
0x23b7   : > { %p9179_p7 = pneg %p9178_p2 }
0x23b9   : > { %p9184_p10 = pnand %p9183_p9, %p9179_p7 }
0x23bb   : > { %9187 = shalt.err (!%p9184_p10)
}
0x23bc   : > { %s10569_s3 = smov 128  }
0x23bd   : > { %7997 = dma.vmem_to_hbm [thread:$0]  (%p10565_p8), %s10404_s9, 256, %s10411_s30, %s6504_s14, %s10569_s3, %s10569_s3, %s9293_s29  }
0x23be PF: > { %s6570_s26 = sand.u32 1, %s9250_s24   ;;  %p10570_p11 = scmp.ne.s32.totalorder %s10540_s20, 0 }
0x23bf   : > { %p10571_p12 = scmp.ge.s32.totalorder %s9262_s5, 2  ;;  %s6571_s17 = scalar_lea.sflag [#allocation5], %s6570_s26 }
0x23c1   : > { %p8048_p4 = pnand %p10571_p12, %p10570_p11 }
0x23c3   : > { %p8049_p0 = pneg %p8048_p4 }
0x23c5   : > { %9241 = dma.done.wait (%p8049_p0), %s6571_s17, 256  }
0x23c6   : > { %9243 = vsyncadd (%p8049_p0), %s6571_s17, 4294967040  ;;  %s10572_s23 = sadd.s32 4294967294, %s9262_s5  }
0x23c7   : > { %s6579_s27 = sand.u32 1, %s10572_s23  }
0x23c8   : > { %s6580_s15 = scalar_lea.sflag [#allocation28], %s6579_s27 }
0x23c9   : > { %9245 = dma.done.wait (%p8049_p0), %s6580_s15, 272  }
0x23ca   : > { %9247 = vsyncadd (%p8049_p0), %s6580_s15, 4294967024  ;;  %p51_p8 = scmp.ge.s32.totalorder %s9578_s28, 4   ;;  %s10573_s24 = smov %s9254_s25 }
0x23cb   : > { %s10574_s25 = smov %s9258_s16  ;;  %s10575_s16 = smov %s9589_s21 }
0x23cc   : > { %s10576_s5 = smov %s9578_s28  ;;  %53 = sbr.rel (!%p51_p8) target bundleno = 36 (0x24), region = 258 }
0x23d1   :  { %6593 = vsyncpa [#allocation4], 1 }
0x23d2   :  { %6595 = vsyncpa [#allocation4 + $0x1], 1 }
0x23d3   :  { %6596 = vsyncpa [#allocation7], 1 }
0x23d4   :  { %6598 = vsyncpa [#allocation7 + $0x1], 1 }
0x23d5   :  { %6599 = vsyncpa [#allocation10], 1 }
0x23d6   :  { %6600 = vsyncpa [#allocation13], 1 }
0x23d7   :  { %6601 = vsyncpa [#allocation16], 1 }
0x23d8   :  { %6602 = vsyncpa [#allocation19], 1 }
0x23d9   :  { %6603 = vsyncpa [#allocation22], 1 }
0x23da   :  { %6604 = vsyncpa [#allocation25], 1 }
0x23db   :  { %6605 = vsyncpa [#allocation5], 1 }
0x23dc   :  { %6607 = vsyncpa [#allocation5 + $0x1], 1 }
0x23dd   :  { %6608 = vsyncpa [#allocation28], 1 }
0x23de   :  { %6610 = vsyncpa [#allocation28 + $0x1], 1 }

</bundles_post_ra>
